<compile_context>
chip_gen: v5e
topology: v5e:2x2
jax: 0.10.0
libtpu: 0.0.40
codegen_flags: <defaults>
</compile_context>

<pallas_src>
import functools
import math

import jax
import jax.numpy as jnp
import numpy as np
from jax import lax
from jax.experimental import pallas as pl
from jax.experimental.pallas import tpu as pltpu


def _round_up(v, m):
    return (v + m - 1) // m * m


# ---------------------------------------------------------------------------
# Fused Pallas kernel
# ---------------------------------------------------------------------------
def _fused_subsampling6_kernel(x_ref, w1_ref, b1_ref, w2_ref, b2_ref,
                               wl_ref, pebl_ref, o_ref, h_scr, *, mrows):
    """Row r = b_local*Tq + q of every operand is (batch b_local, window q).
    Rows with q >= t2 are garbage and are sliced off by the wrapper; every
    +1-row shifted read only ever contaminates those rows.

    x_ref   : (MR, 6*idim)        bf16  MR = Bb*Tq, cols = (frame phase, feat)
    w1_ref  : (4, 6*idim, F1P)    bf16  conv1: phases 0/1/2 + cross-window tap
    b1_ref  : (1, F1P)            f32
    w2_ref  : (5, F1P, f2*odim)   bf16  conv2 time taps (freq, in_ch folded)
    b2_ref  : (1, f2*odim)        f32
    wl_ref  : (f2*odim, ODIM_P)   bf16  Linear, sqrt(odim) folded, N padded
    pebl_ref: (MR, ODIM_P)        f32   positional encoding + Linear bias
    o_ref   : (MR, ODIM_P)        f32
    h_scr   : (3, MR+1, F1P)      bf16  staged conv1 phase 0/1 + cross term
    """
    f1p = h_scr.shape[-1]
    x = x_ref[...]
    b1 = b1_ref[...]

    # --- Conv2d(1, odim, 3, stride=2) + ReLU --------------------------------
    # h1 time index = 3*q + p.  Phases 0/1 and the first two taps of phase 2
    # read only frames inside window q; phase 2's last time tap reads frame 0
    # of window q+1 and is applied via the shifted read of `c3` below.
    d0 = jnp.dot(x, w1_ref[0], preferred_element_type=jnp.float32)
    d1 = jnp.dot(x, w1_ref[1], preferred_element_type=jnp.float32)
    d2 = jnp.dot(x, w1_ref[2], preferred_element_type=jnp.float32)
    c3 = jnp.dot(x, w1_ref[3], preferred_element_type=jnp.float32)

    h10 = jnp.maximum(d0 + b1, 0.0).astype(jnp.bfloat16)   # phase 0
    h11 = jnp.maximum(d1 + b1, 0.0).astype(jnp.bfloat16)   # phase 1

    # Stage phase 0/1 and the raw cross-window term so they can be re-read at
    # a +1 row offset (conv2's stride-3 taps / phase 2's last tap).
    h_scr[0, pl.ds(0, mrows), :] = h10
    h_scr[1, pl.ds(0, mrows), :] = h11
    h_scr[2, pl.ds(0, mrows), :] = c3.astype(jnp.bfloat16)
    zrow = jnp.zeros((1, f1p), jnp.bfloat16)
    for p in range(3):
        h_scr[p, pl.ds(mrows, 1), :] = zrow          # pad row read by +1 shifts

    c3s = h_scr[2, pl.ds(1, mrows), :].astype(jnp.float32)
    h12 = jnp.maximum(d2 + c3s + b1, 0.0).astype(jnp.bfloat16)   # phase 2

    # --- Conv2d(odim, odim, 5, stride=3) + ReLU ------------------------------
    # Output row r needs h1 phase k%3 at window offset k//3, i.e. row r + k//3.
    acc = jnp.dot(h10, w2_ref[0], preferred_element_type=jnp.float32)
    acc += jnp.dot(h11, w2_ref[1], preferred_element_type=jnp.float32)
    acc += jnp.dot(h12, w2_ref[2], preferred_element_type=jnp.float32)
    acc += jnp.dot(h_scr[0, pl.ds(1, mrows), :], w2_ref[3],
                   preferred_element_type=jnp.float32)
    acc += jnp.dot(h_scr[1, pl.ds(1, mrows), :], w2_ref[4],
                   preferred_element_type=jnp.float32)
    h2 = jnp.maximum(acc + b2_ref[...], 0.0).astype(jnp.bfloat16)

    # --- Linear(odim*f2, odim) (*sqrt(odim) folded) + positional encoding ----
    # TODO(synk): dropout inside PositionalEncoding is identity here (eval mode).
    y = jnp.dot(h2, wl_ref[...], preferred_element_type=jnp.float32)
    o_ref[...] = y + pebl_ref[...]


# ---------------------------------------------------------------------------
# Plain-JAX glue (pad + contiguous reshape only) and wrapper
# ---------------------------------------------------------------------------
def sinusoidal_pe(length, d_model):
    position = jnp.arange(length, dtype=jnp.float32)[:, None]
    div_term = jnp.exp(
        jnp.arange(0, d_model, 2, dtype=jnp.float32) * -(math.log(10000.0) / d_model)
    )
    pe = jnp.zeros((length, d_model), dtype=jnp.float32)
    pe = pe.at[:, 0::2].set(jnp.sin(position * div_term))
    pe = pe.at[:, 1::2].set(jnp.cos(position * div_term))
    return pe


def conv2d_subsampling6_forward(x, x_mask, folded, idim, odim, *, block_batch=8):
    """x: (B, T, idim) float32, x_mask: (B, 1, T) bool or None."""
    B, T, _ = x.shape
    t1 = (T - 3) // 2 + 1
    f1 = (idim - 3) // 2 + 1
    t2 = (t1 - 5) // 3 + 1
    f2 = (f1 - 5) // 3 + 1
    Tq = t2 + 2                                   # windows the kernel touches
    F1P = _round_up(f1 * odim, 128)
    ODIM_P = _round_up(odim, 128)
    assert t2 >= 1
    # Invariant (review note): every h1 row conv2 consumes (<= 3*t2+1) is a
    # *real* conv1 row (<= t1-1); only never-consumed rows see padded input.
    assert t1 - 1 >= 3 * t2 + 1

    # Batch blocking: Bb elements per grid step.  For large B keep
    # NB = ceil(B/Bb) >= 4 so each v7x TensorCore gets >= 2 pipelined steps;
    # scratch/block VMEM per step scales with Bb*Tq (size against 64 MiB v7x).
    Bb = max(1, min(block_batch, B))
    NB = -(-B // Bb)
    Bp = NB * Bb
    MR = Bb * Tq

    # Pad + contiguous reshape only (no transpose): row (b, q) holds raw
    # frames [6q, 6q+6); phase selection lives in w1f's zero rows.
    xp = jnp.pad(x, ((0, Bp - B), (0, 6 * Tq - T), (0, 0)))
    xr = xp.reshape(Bp * Tq, 6 * idim).astype(jnp.bfloat16)

    # Positional encoding + folded Linear bias, tiled over the block's batch
    # rows (rows q >= t2 and lanes >= odim are garbage, sliced off below).
    pe = sinusoidal_pe(t2, odim)
    pe_blk = jnp.zeros((Tq, ODIM_P), jnp.float32)
    pe_blk = pe_blk.at[:t2, :odim].set(pe + folded["bl"][None, :])
    pebl = jnp.tile(pe_blk, (Bb, 1))                       # (MR, ODIM_P)

    kernel = functools.partial(_fused_subsampling6_kernel, mrows=MR)
    out = pl.pallas_call(
        kernel,
        out_shape=jax.ShapeDtypeStruct((Bp * Tq, ODIM_P), jnp.float32),
        grid=(NB,),
        in_specs=[
            pl.BlockSpec((MR, 6 * idim), lambda i: (i, 0)),          # x
            pl.BlockSpec((4, 6 * idim, F1P), lambda i: (0, 0, 0)),   # w1f
            pl.BlockSpec((1, F1P), lambda i: (0, 0)),                # b1t
            pl.BlockSpec((5, F1P, f2 * odim), lambda i: (0, 0, 0)),  # w2f
            pl.BlockSpec((1, f2 * odim), lambda i: (0, 0)),          # b2t
            pl.BlockSpec((f2 * odim, ODIM_P), lambda i: (0, 0)),     # wl
            pl.BlockSpec((MR, ODIM_P), lambda i: (0, 0)),            # pe+bias
        ],
        out_specs=pl.BlockSpec((MR, ODIM_P), lambda i: (i, 0)),
        scratch_shapes=[pltpu.VMEM((3, MR + 1, F1P), jnp.bfloat16)],
        compiler_params=pltpu.CompilerParams(
            dimension_semantics=("parallel",),     # batch blocks over 2 TCs
            vmem_limit_bytes=48 * 1024 * 1024,     # <= v7x 64 MiB physical
        ),
    )(xr, folded["w1f"], folded["b1t"], folded["w2f"], folded["b2t"],
      folded["wl"], pebl)

    out = out.reshape(Bp, Tq, ODIM_P)[:B, :t2, :odim]

    if x_mask is None:
        return out, None
    return out, x_mask[:, :, :-2:2][:, :, :-4:3]


# ---------------------------------------------------------------------------
# Parameters: torch-layout init + offline folding/permutation/padding
# ---------------------------------------------------------------------------
def init_torch_params(key, idim, odim):
    """Random parameters in the original torch layouts."""
    f2 = (((idim - 1) // 2) - 2) // 3
    ks = jax.random.split(key, 6)
    return {
        "w1": jax.random.normal(ks[0], (odim, 1, 3, 3), jnp.float32) * 0.1,
        "b1": jax.random.normal(ks[1], (odim,), jnp.float32) * 0.01,
        "w2": jax.random.normal(ks[2], (odim, odim, 5, 5), jnp.float32) * 0.05,
        "b2": jax.random.normal(ks[3], (odim,), jnp.float32) * 0.01,
        "w_lin": jax.random.normal(ks[4], (odim, odim * f2), jnp.float32) * 0.05,
        "b_lin": jax.random.normal(ks[5], (odim,), jnp.float32) * 0.01,
    }


def fold_params(tp, idim, odim):
    """Offline folding: 6-frame phase selection, stride-2 freq windows,
    channel-major flatten, sqrt(d_model) scale and lane padding all baked into
    the (bf16) weight matrices."""
    f1 = (idim - 3) // 2 + 1
    f2 = (f1 - 5) // 3 + 1
    F1 = f1 * odim
    F1P = _round_up(F1, 128)
    ODIM_P = _round_up(odim, 128)
    scale = math.sqrt(odim)

    w1 = np.asarray(tp["w1"]); b1 = np.asarray(tp["b1"])
    w2 = np.asarray(tp["w2"]); b2 = np.asarray(tp["b2"])
    wl = np.asarray(tp["w_lin"]); bl = np.asarray(tp["b_lin"])

    # conv1: K = (frame phase within the 6-frame window) * idim + input feat.
    # w1f[p], p in {0,1,2}: in-window taps of h1 time-phase p.
    # w1f[3]: phase 2's last time tap (frame 0 of the NEXT window; row-shifted
    # at run time).
    w1f = np.zeros((4, 6 * idim, F1P), np.float32)
    for p in range(3):
        for k in range(3 if p < 2 else 2):
            slot = 2 * p + k
            for fi in range(f1):
                for kj in range(3):
                    w1f[p, slot * idim + 2 * fi + kj,
                        fi * odim:(fi + 1) * odim] = w1[:, 0, k, kj]
    for fi in range(f1):
        for kj in range(3):
            w1f[3, 2 * fi + kj, fi * odim:(fi + 1) * odim] = w1[:, 0, 2, kj]

    # conv2 time-tap k: rows = (freq window fi, in_ch), cols = (fj, out_ch).
    w2f = np.zeros((5, F1P, f2 * odim), np.float32)
    for k in range(5):
        for fj in range(f2):
            for kj in range(5):
                fi = 3 * fj + kj
                w2f[k, fi * odim:(fi + 1) * odim,
                    fj * odim:(fj + 1) * odim] = w2[:, :, k, kj].T

    # Linear: torch flattens conv2's (C, F) channel-major (col = oc*f2 + fj);
    # h2 lanes are (fj, oc)-ordered -> permute rows; fold sqrt(odim); pad the
    # N dim to a 128-lane multiple so the final store is unmasked.
    wlp = wl.reshape(odim, odim, f2).transpose(2, 1, 0).reshape(f2 * odim, odim)
    wl_pad = np.zeros((f2 * odim, ODIM_P), np.float32)
    wl_pad[:, :odim] = wlp * scale

    b1t = np.zeros((1, F1P), np.float32)
    b1t[0, :F1] = np.tile(b1, f1)

    return {
        "w1f": jnp.asarray(w1f, jnp.bfloat16),
        "b1t": jnp.asarray(b1t, jnp.float32),
        "w2f": jnp.asarray(w2f, jnp.bfloat16),
        "b2t": jnp.asarray(np.tile(b2, f2)[None, :], jnp.float32),
        "wl": jnp.asarray(wl_pad, jnp.bfloat16),
        "bl": jnp.asarray(bl * scale, jnp.float32),   # folded into pe in wrapper
    }


# ---------------------------------------------------------------------------
# Plain-XLA f32 reference (numeric self-check of the fused kernel)
# ---------------------------------------------------------------------------
def reference_forward(x, x_mask, tp, odim):
    hp = lax.Precision.HIGHEST
    h = lax.conv_general_dilated(x[:, None, :, :], tp["w1"], (2, 2), "VALID",
                                 dimension_numbers=("NCHW", "OIHW", "NCHW"),
                                 precision=hp)
    h = jnp.maximum(h + tp["b1"][None, :, None, None], 0.0)
    h = lax.conv_general_dilated(h, tp["w2"], (3, 3), "VALID",
                                 dimension_numbers=("NCHW", "OIHW", "NCHW"),
                                 precision=hp)
    h = jnp.maximum(h + tp["b2"][None, :, None, None], 0.0)
    b, c, t, f = h.shape
    h = h.transpose(0, 2, 1, 3).reshape(b, t, c * f)
    y = jnp.einsum("btk,nk->btn", h, tp["w_lin"], precision=hp) + tp["b_lin"]
    y = y * math.sqrt(odim) + sinusoidal_pe(t, odim)[None]
    if x_mask is None:
        return y, None
    return y, x_mask[:, :, :-2:2][:, :, :-4:3]


# ---------------------------------------------------------------------------
if __name__ == "__main__":
    B, T, idim, odim = 2, 32, 40, 32
    key = jax.random.PRNGKey(0)
    k_param, k_x = jax.random.split(key)

    tp = init_torch_params(k_param, idim, odim)
    folded = fold_params(tp, idim, odim)

    x = jax.random.normal(k_x, (B, T, idim), jnp.float32)
    x_mask = jnp.ones((B, 1, T), dtype=jnp.bool_)

    out, out_mask = conv2d_subsampling6_forward(x, x_mask, folded, idim, odim)
    out, out_mask = jax.block_until_ready((out, out_mask))

    t2 = (((T - 3) // 2 + 1) - 5) // 3 + 1
    assert out.shape == (B, t2, odim), out.shape
    assert out_mask.shape == (B, 1, t2), out_mask.shape

    # Self-check vs. plain-XLA f32 reference (relative + abs floor to budget
    # only for the bf16 MXU path, not for folding/permutation mistakes).
    ref_out, ref_mask = reference_forward(x, x_mask, tp, odim)
    np.testing.assert_allclose(np.asarray(out), np.asarray(ref_out),
                               rtol=0.05, atol=0.15)
    assert bool(jnp.all(out_mask == ref_mask))
    print("KERNEL_OK")
</pallas_src>

<mosaic_0001>
module attributes {stable_mosaic.version = 11 : i64} {
  func.func @_fused_subsampling6_kernel(%arg0: i32, %arg1: memref<12x240xbf16, #tpu.memory_space<vmem>>, %arg2: memref<4x240x640xbf16, #tpu.memory_space<vmem>>, %arg3: memref<1x640xf32, #tpu.memory_space<vmem>>, %arg4: memref<5x640x160xbf16, #tpu.memory_space<vmem>>, %arg5: memref<1x160xf32, #tpu.memory_space<vmem>>, %arg6: memref<160x128xbf16, #tpu.memory_space<vmem>>, %arg7: memref<12x128xf32, #tpu.memory_space<vmem>>, %arg8: memref<12x128xf32, #tpu.memory_space<vmem>>, %arg9: memref<3x13x640xbf16, #tpu.memory_space<vmem>>) attributes {dimension_semantics = [#tpu.dimension_semantics<parallel>], iteration_bounds = array<i64: 1>, scalar_prefetch = 0 : i64, scratch_operands = 1 : i64, tpu.core_type = #tpu.core_type<tc>, window_params = [{transform_indices = @transform_0, window_bounds = array<i64: 12, 240>}, {pipeline_mode = #tpu.pipeline_mode<synchronous>, transform_indices = @transform_1, window_bounds = array<i64: 4, 240, 640>}, {pipeline_mode = #tpu.pipeline_mode<synchronous>, transform_indices = @transform_2, window_bounds = array<i64: 1, 640>}, {pipeline_mode = #tpu.pipeline_mode<synchronous>, transform_indices = @transform_3, window_bounds = array<i64: 5, 640, 160>}, {pipeline_mode = #tpu.pipeline_mode<synchronous>, transform_indices = @transform_4, window_bounds = array<i64: 1, 160>}, {pipeline_mode = #tpu.pipeline_mode<synchronous>, transform_indices = @transform_5, window_bounds = array<i64: 160, 128>}, {pipeline_mode = #tpu.pipeline_mode<synchronous>, transform_indices = @transform_6, window_bounds = array<i64: 12, 128>}, {transform_indices = @transform_7, window_bounds = array<i64: 12, 128>}]} {
    %c0 = arith.constant 0 : index
    %c0_0 = arith.constant 0 : index
    %0 = vector.load %arg1[%c0, %c0_0] : memref<12x240xbf16, #tpu.memory_space<vmem>>, vector<12x240xbf16>
    %c0_1 = arith.constant 0 : index
    %c0_2 = arith.constant 0 : index
    %1 = vector.load %arg3[%c0_1, %c0_2] : memref<1x640xf32, #tpu.memory_space<vmem>>, vector<1x640xf32>
    %c0_3 = arith.constant 0 : index
    %c0_4 = arith.constant 0 : index
    %c0_5 = arith.constant 0 : index
    %2 = vector.load %arg2[%c0_3, %c0_4, %c0_5] : memref<4x240x640xbf16, #tpu.memory_space<vmem>>, vector<1x240x640xbf16>
    %3 = vector.shape_cast %2 : vector<1x240x640xbf16> to vector<240x640xbf16>
    %cst = arith.constant dense<0.000000e+00> : vector<12x640xf32>
    %4 = tpu.matmul %0, %3, %cst {dimension_numbers = #tpu.dot_dimension_numbers<[1], [0], [0], [1], [0, 0, 1, 1], [], []>} : vector<12x240xbf16>, vector<240x640xbf16>, vector<12x640xf32> -> vector<12x640xf32>
    %c1 = arith.constant 1 : index
    %c0_6 = arith.constant 0 : index
    %c0_7 = arith.constant 0 : index
    %5 = vector.load %arg2[%c1, %c0_6, %c0_7] : memref<4x240x640xbf16, #tpu.memory_space<vmem>>, vector<1x240x640xbf16>
    %6 = vector.shape_cast %5 : vector<1x240x640xbf16> to vector<240x640xbf16>
    %cst_8 = arith.constant dense<0.000000e+00> : vector<12x640xf32>
    %7 = tpu.matmul %0, %6, %cst_8 {dimension_numbers = #tpu.dot_dimension_numbers<[1], [0], [0], [1], [0, 0, 1, 1], [], []>} : vector<12x240xbf16>, vector<240x640xbf16>, vector<12x640xf32> -> vector<12x640xf32>
    %c2 = arith.constant 2 : index
    %c0_9 = arith.constant 0 : index
    %c0_10 = arith.constant 0 : index
    %8 = vector.load %arg2[%c2, %c0_9, %c0_10] : memref<4x240x640xbf16, #tpu.memory_space<vmem>>, vector<1x240x640xbf16>
    %9 = vector.shape_cast %8 : vector<1x240x640xbf16> to vector<240x640xbf16>
    %cst_11 = arith.constant dense<0.000000e+00> : vector<12x640xf32>
    %10 = tpu.matmul %0, %9, %cst_11 {dimension_numbers = #tpu.dot_dimension_numbers<[1], [0], [0], [1], [0, 0, 1, 1], [], []>} : vector<12x240xbf16>, vector<240x640xbf16>, vector<12x640xf32> -> vector<12x640xf32>
    %c3 = arith.constant 3 : index
    %c0_12 = arith.constant 0 : index
    %c0_13 = arith.constant 0 : index
    %11 = vector.load %arg2[%c3, %c0_12, %c0_13] : memref<4x240x640xbf16, #tpu.memory_space<vmem>>, vector<1x240x640xbf16>
    %12 = vector.shape_cast %11 : vector<1x240x640xbf16> to vector<240x640xbf16>
    %cst_14 = arith.constant dense<0.000000e+00> : vector<12x640xf32>
    %13 = tpu.matmul %0, %12, %cst_14 {dimension_numbers = #tpu.dot_dimension_numbers<[1], [0], [0], [1], [0, 0, 1, 1], [], []>} : vector<12x240xbf16>, vector<240x640xbf16>, vector<12x640xf32> -> vector<12x640xf32>
    %14 = vector.broadcast %1 : vector<1x640xf32> to vector<12x640xf32>
    %15 = arith.addf %4, %14 : vector<12x640xf32>
    %cst_15 = arith.constant 0.000000e+00 : f32
    %16 = vector.broadcast %cst_15 : f32 to vector<12x640xf32>
    %17 = arith.maximumf %15, %16 : vector<12x640xf32>
    %18 = arith.truncf %17 : vector<12x640xf32> to vector<12x640xbf16>
    %19 = vector.broadcast %1 : vector<1x640xf32> to vector<12x640xf32>
    %20 = arith.addf %7, %19 : vector<12x640xf32>
    %cst_16 = arith.constant 0.000000e+00 : f32
    %21 = vector.broadcast %cst_16 : f32 to vector<12x640xf32>
    %22 = arith.maximumf %20, %21 : vector<12x640xf32>
    %23 = arith.truncf %22 : vector<12x640xf32> to vector<12x640xbf16>
    %c0_17 = arith.constant 0 : index
    %c0_18 = arith.constant 0 : index
    %c0_19 = arith.constant 0 : index
    %24 = vector.load %arg9[%c0_17, %c0_18, %c0_19] : memref<3x13x640xbf16, #tpu.memory_space<vmem>>, vector<1x12x640xbf16>
    %25 = vector.shape_cast %24 : vector<1x12x640xbf16> to vector<12x640xbf16>
    %26 = vector.shape_cast %18 : vector<12x640xbf16> to vector<1x12x640xbf16>
    tpu.vector_store %arg9[%c0_17, %c0_18, %c0_19], %26 {strides = array<i32>} : memref<3x13x640xbf16, #tpu.memory_space<vmem>>, vector<1x12x640xbf16>,
    %c1_20 = arith.constant 1 : index
    %c0_21 = arith.constant 0 : index
    %c0_22 = arith.constant 0 : index
    %27 = vector.load %arg9[%c1_20, %c0_21, %c0_22] : memref<3x13x640xbf16, #tpu.memory_space<vmem>>, vector<1x12x640xbf16>
    %28 = vector.shape_cast %27 : vector<1x12x640xbf16> to vector<12x640xbf16>
    %29 = vector.shape_cast %23 : vector<12x640xbf16> to vector<1x12x640xbf16>
    tpu.vector_store %arg9[%c1_20, %c0_21, %c0_22], %29 {strides = array<i32>} : memref<3x13x640xbf16, #tpu.memory_space<vmem>>, vector<1x12x640xbf16>,
    %30 = arith.truncf %13 : vector<12x640xf32> to vector<12x640xbf16>
    %c2_23 = arith.constant 2 : index
    %c0_24 = arith.constant 0 : index
    %c0_25 = arith.constant 0 : index
    %31 = vector.load %arg9[%c2_23, %c0_24, %c0_25] : memref<3x13x640xbf16, #tpu.memory_space<vmem>>, vector<1x12x640xbf16>
    %32 = vector.shape_cast %31 : vector<1x12x640xbf16> to vector<12x640xbf16>
    %33 = vector.shape_cast %30 : vector<12x640xbf16> to vector<1x12x640xbf16>
    tpu.vector_store %arg9[%c2_23, %c0_24, %c0_25], %33 {strides = array<i32>} : memref<3x13x640xbf16, #tpu.memory_space<vmem>>, vector<1x12x640xbf16>,
    %cst_26 = arith.constant 0.000000e+00 : bf16
    %34 = vector.broadcast %cst_26 : bf16 to vector<1x640xbf16>
    %c0_27 = arith.constant 0 : index
    %c12 = arith.constant 12 : index
    %c0_28 = arith.constant 0 : index
    %35 = vector.load %arg9[%c0_27, %c12, %c0_28] : memref<3x13x640xbf16, #tpu.memory_space<vmem>>, vector<1x1x640xbf16>
    %36 = vector.shape_cast %35 : vector<1x1x640xbf16> to vector<1x640xbf16>
    %37 = vector.shape_cast %34 : vector<1x640xbf16> to vector<1x1x640xbf16>
    tpu.vector_store %arg9[%c0_27, %c12, %c0_28], %37 {strides = array<i32>} : memref<3x13x640xbf16, #tpu.memory_space<vmem>>, vector<1x1x640xbf16>,
    %c1_29 = arith.constant 1 : index
    %c12_30 = arith.constant 12 : index
    %c0_31 = arith.constant 0 : index
    %38 = vector.load %arg9[%c1_29, %c12_30, %c0_31] : memref<3x13x640xbf16, #tpu.memory_space<vmem>>, vector<1x1x640xbf16>
    %39 = vector.shape_cast %38 : vector<1x1x640xbf16> to vector<1x640xbf16>
    %40 = vector.shape_cast %34 : vector<1x640xbf16> to vector<1x1x640xbf16>
    tpu.vector_store %arg9[%c1_29, %c12_30, %c0_31], %40 {strides = array<i32>} : memref<3x13x640xbf16, #tpu.memory_space<vmem>>, vector<1x1x640xbf16>,
    %c2_32 = arith.constant 2 : index
    %c12_33 = arith.constant 12 : index
    %c0_34 = arith.constant 0 : index
    %41 = vector.load %arg9[%c2_32, %c12_33, %c0_34] : memref<3x13x640xbf16, #tpu.memory_space<vmem>>, vector<1x1x640xbf16>
    %42 = vector.shape_cast %41 : vector<1x1x640xbf16> to vector<1x640xbf16>
    %43 = vector.shape_cast %34 : vector<1x640xbf16> to vector<1x1x640xbf16>
    tpu.vector_store %arg9[%c2_32, %c12_33, %c0_34], %43 {strides = array<i32>} : memref<3x13x640xbf16, #tpu.memory_space<vmem>>, vector<1x1x640xbf16>,
    %c2_35 = arith.constant 2 : index
    %c1_36 = arith.constant 1 : index
    %c0_37 = arith.constant 0 : index
    %44 = vector.load %arg9[%c2_35, %c1_36, %c0_37] : memref<3x13x640xbf16, #tpu.memory_space<vmem>>, vector<1x12x640xbf16>
    %45 = vector.shape_cast %44 : vector<1x12x640xbf16> to vector<12x640xbf16>
    %46 = arith.extf %45 : vector<12x640xbf16> to vector<12x640xf32>
    %47 = arith.addf %10, %46 : vector<12x640xf32>
    %48 = vector.broadcast %1 : vector<1x640xf32> to vector<12x640xf32>
    %49 = arith.addf %47, %48 : vector<12x640xf32>
    %cst_38 = arith.constant 0.000000e+00 : f32
    %50 = vector.broadcast %cst_38 : f32 to vector<12x640xf32>
    %51 = arith.maximumf %49, %50 : vector<12x640xf32>
    %52 = arith.truncf %51 : vector<12x640xf32> to vector<12x640xbf16>
    %c0_39 = arith.constant 0 : index
    %c0_40 = arith.constant 0 : index
    %c0_41 = arith.constant 0 : index
    %53 = vector.load %arg4[%c0_39, %c0_40, %c0_41] : memref<5x640x160xbf16, #tpu.memory_space<vmem>>, vector<1x640x160xbf16>
    %54 = vector.shape_cast %53 : vector<1x640x160xbf16> to vector<640x160xbf16>
    %cst_42 = arith.constant dense<0.000000e+00> : vector<12x160xf32>
    %55 = tpu.matmul %18, %54, %cst_42 {dimension_numbers = #tpu.dot_dimension_numbers<[1], [0], [0], [1], [0, 0, 1, 1], [], []>} : vector<12x640xbf16>, vector<640x160xbf16>, vector<12x160xf32> -> vector<12x160xf32>
    %c1_43 = arith.constant 1 : index
    %c0_44 = arith.constant 0 : index
    %c0_45 = arith.constant 0 : index
    %56 = vector.load %arg4[%c1_43, %c0_44, %c0_45] : memref<5x640x160xbf16, #tpu.memory_space<vmem>>, vector<1x640x160xbf16>
    %57 = vector.shape_cast %56 : vector<1x640x160xbf16> to vector<640x160xbf16>
    %cst_46 = arith.constant dense<0.000000e+00> : vector<12x160xf32>
    %58 = tpu.matmul %23, %57, %cst_46 {dimension_numbers = #tpu.dot_dimension_numbers<[1], [0], [0], [1], [0, 0, 1, 1], [], []>} : vector<12x640xbf16>, vector<640x160xbf16>, vector<12x160xf32> -> vector<12x160xf32>
    %59 = arith.addf %55, %58 : vector<12x160xf32>
    %c2_47 = arith.constant 2 : index
    %c0_48 = arith.constant 0 : index
    %c0_49 = arith.constant 0 : index
    %60 = vector.load %arg4[%c2_47, %c0_48, %c0_49] : memref<5x640x160xbf16, #tpu.memory_space<vmem>>, vector<1x640x160xbf16>
    %61 = vector.shape_cast %60 : vector<1x640x160xbf16> to vector<640x160xbf16>
    %cst_50 = arith.constant dense<0.000000e+00> : vector<12x160xf32>
    %62 = tpu.matmul %52, %61, %cst_50 {dimension_numbers = #tpu.dot_dimension_numbers<[1], [0], [0], [1], [0, 0, 1, 1], [], []>} : vector<12x640xbf16>, vector<640x160xbf16>, vector<12x160xf32> -> vector<12x160xf32>
    %63 = arith.addf %59, %62 : vector<12x160xf32>
    %c0_51 = arith.constant 0 : index
    %c1_52 = arith.constant 1 : index
    %c0_53 = arith.constant 0 : index
    %64 = vector.load %arg9[%c0_51, %c1_52, %c0_53] : memref<3x13x640xbf16, #tpu.memory_space<vmem>>, vector<1x12x640xbf16>
    %65 = vector.shape_cast %64 : vector<1x12x640xbf16> to vector<12x640xbf16>
    %c3_54 = arith.constant 3 : index
    %c0_55 = arith.constant 0 : index
    %c0_56 = arith.constant 0 : index
    %66 = vector.load %arg4[%c3_54, %c0_55, %c0_56] : memref<5x640x160xbf16, #tpu.memory_space<vmem>>, vector<1x640x160xbf16>
    %67 = vector.shape_cast %66 : vector<1x640x160xbf16> to vector<640x160xbf16>
    %cst_57 = arith.constant dense<0.000000e+00> : vector<12x160xf32>
    %68 = tpu.matmul %65, %67, %cst_57 {dimension_numbers = #tpu.dot_dimension_numbers<[1], [0], [0], [1], [0, 0, 1, 1], [], []>} : vector<12x640xbf16>, vector<640x160xbf16>, vector<12x160xf32> -> vector<12x160xf32>
    %69 = arith.addf %63, %68 : vector<12x160xf32>
    %c1_58 = arith.constant 1 : index
    %c1_59 = arith.constant 1 : index
    %c0_60 = arith.constant 0 : index
    %70 = vector.load %arg9[%c1_58, %c1_59, %c0_60] : memref<3x13x640xbf16, #tpu.memory_space<vmem>>, vector<1x12x640xbf16>
    %71 = vector.shape_cast %70 : vector<1x12x640xbf16> to vector<12x640xbf16>
    %c4 = arith.constant 4 : index
    %c0_61 = arith.constant 0 : index
    %c0_62 = arith.constant 0 : index
    %72 = vector.load %arg4[%c4, %c0_61, %c0_62] : memref<5x640x160xbf16, #tpu.memory_space<vmem>>, vector<1x640x160xbf16>
    %73 = vector.shape_cast %72 : vector<1x640x160xbf16> to vector<640x160xbf16>
    %cst_63 = arith.constant dense<0.000000e+00> : vector<12x160xf32>
    %74 = tpu.matmul %71, %73, %cst_63 {dimension_numbers = #tpu.dot_dimension_numbers<[1], [0], [0], [1], [0, 0, 1, 1], [], []>} : vector<12x640xbf16>, vector<640x160xbf16>, vector<12x160xf32> -> vector<12x160xf32>
    %75 = arith.addf %69, %74 : vector<12x160xf32>
    %c0_64 = arith.constant 0 : index
    %c0_65 = arith.constant 0 : index
    %76 = vector.load %arg5[%c0_64, %c0_65] : memref<1x160xf32, #tpu.memory_space<vmem>>, vector<1x160xf32>
    %77 = vector.broadcast %76 : vector<1x160xf32> to vector<12x160xf32>
    %78 = arith.addf %75, %77 : vector<12x160xf32>
    %cst_66 = arith.constant 0.000000e+00 : f32
    %79 = vector.broadcast %cst_66 : f32 to vector<12x160xf32>
    %80 = arith.maximumf %78, %79 : vector<12x160xf32>
    %81 = arith.truncf %80 : vector<12x160xf32> to vector<12x160xbf16>
    %c0_67 = arith.constant 0 : index
    %c0_68 = arith.constant 0 : index
    %82 = vector.load %arg6[%c0_67, %c0_68] : memref<160x128xbf16, #tpu.memory_space<vmem>>, vector<160x128xbf16>
    %cst_69 = arith.constant dense<0.000000e+00> : vector<12x128xf32>
    %83 = tpu.matmul %81, %82, %cst_69 {dimension_numbers = #tpu.dot_dimension_numbers<[1], [0], [0], [1], [0, 0, 1, 1], [], []>} : vector<12x160xbf16>, vector<160x128xbf16>, vector<12x128xf32> -> vector<12x128xf32>
    %c0_70 = arith.constant 0 : index
    %c0_71 = arith.constant 0 : index
    %84 = vector.load %arg7[%c0_70, %c0_71] : memref<12x128xf32, #tpu.memory_space<vmem>>, vector<12x128xf32>
    %85 = arith.addf %83, %84 : vector<12x128xf32>
    %c0_72 = arith.constant 0 : index
    %c0_73 = arith.constant 0 : index
    %86 = vector.load %arg8[%c0_72, %c0_73] : memref<12x128xf32, #tpu.memory_space<vmem>>, vector<12x128xf32>
    tpu.vector_store %arg8[%c0_72, %c0_73], %85 {strides = array<i32>} : memref<12x128xf32, #tpu.memory_space<vmem>>, vector<12x128xf32>,
    return
  }
  func.func @transform_0(%arg0: i32) -> (i32, i32) {
    %c0_i32 = arith.constant 0 : i32
    %c0_i32_0 = arith.constant 0 : i32
    return %arg0, %c0_i32 : i32, i32
  }
  func.func @transform_1(%arg0: i32) -> (i32, i32, i32) {
    %c0_i32 = arith.constant 0 : i32
    %c0_i32_0 = arith.constant 0 : i32
    %c0_i32_1 = arith.constant 0 : i32
    %c0_i32_2 = arith.constant 0 : i32
    return %c0_i32, %c0_i32_0, %c0_i32_1 : i32, i32, i32
  }
  func.func @transform_2(%arg0: i32) -> (i32, i32) {
    %c0_i32 = arith.constant 0 : i32
    %c0_i32_0 = arith.constant 0 : i32
    %c0_i32_1 = arith.constant 0 : i32
    return %c0_i32, %c0_i32_0 : i32, i32
  }
  func.func @transform_3(%arg0: i32) -> (i32, i32, i32) {
    %c0_i32 = arith.constant 0 : i32
    %c0_i32_0 = arith.constant 0 : i32
    %c0_i32_1 = arith.constant 0 : i32
    %c0_i32_2 = arith.constant 0 : i32
    return %c0_i32, %c0_i32_0, %c0_i32_1 : i32, i32, i32
  }
  func.func @transform_4(%arg0: i32) -> (i32, i32) {
    %c0_i32 = arith.constant 0 : i32
    %c0_i32_0 = arith.constant 0 : i32
    %c0_i32_1 = arith.constant 0 : i32
    return %c0_i32, %c0_i32_0 : i32, i32
  }
  func.func @transform_5(%arg0: i32) -> (i32, i32) {
    %c0_i32 = arith.constant 0 : i32
    %c0_i32_0 = arith.constant 0 : i32
    %c0_i32_1 = arith.constant 0 : i32
    return %c0_i32, %c0_i32_0 : i32, i32
  }
  func.func @transform_6(%arg0: i32) -> (i32, i32) {
    %c0_i32 = arith.constant 0 : i32
    %c0_i32_0 = arith.constant 0 : i32
    %c0_i32_1 = arith.constant 0 : i32
    return %c0_i32, %c0_i32_0 : i32, i32
  }
  func.func @transform_7(%arg0: i32) -> (i32, i32) {
    %c0_i32 = arith.constant 0 : i32
    %c0_i32_0 = arith.constant 0 : i32
    return %arg0, %c0_i32 : i32, i32
  }
}

</mosaic_0001>

<bundles_post_ra>
// kernel: tpu_custom_call.1
= control target key start
LH: loop header
LB: loop body
LE: loop exit
PB: predicated region body
PF: predicated region fallthrough
CT: control target
= control target key end

     0   :  { %vm793_vm0 = vcmask 916480   ;;  %s15177_s0 = inlined_call_operand.vmem [shape: bf16[12,240], index: 0, kind: input, shape index: {}]   ;;  %s15178_s1 = inlined_call_operand.vmem [shape: bf16[4,240,640], index: 1, kind: input, shape index: {}]   ;;  %s15179_s2 = inlined_call_operand.vmem [shape: f32[1,640], index: 2, kind: input, shape index: {}]   ;;  %s15180_s3 = inlined_call_operand.vmem [shape: bf16[5,640,160], index: 3, kind: input, shape index: {}]   ;;  %s15181_s4 = inlined_call_operand.vmem [shape: f32[1,160], index: 4, kind: input, shape index: {}]   ;;  %s15182_s5 = inlined_call_operand.vmem [shape: bf16[160,128], index: 5, kind: input, shape index: {}]   ;;  %s15183_s6 = inlined_call_operand.vmem [shape: f32[12,128], index: 6, kind: input, shape index: {}]   ;;  %s15184_s7 = inlined_call_operand.hbm [shape: f32[12,128], index: 7, kind: output, shape index: {}]  }
   0x1   :  { %v6579_v0 = vld [vmem:[%s15178_s1 + $0x820] sm:$0xf]  ;;  %v9922_v1 = vld [vmem:[%s15178_s1 + $0x830] sm:$0xf0]  ;;  %v6719_v2 = vld [vmem:[%s15178_s1 + $0x938] sm:$0xf] }
   0x2   :  { %v6580_v3 = vor.u32 %v9922_v1, %v6579_v0  ;;  %v9957_v4 = vld [vmem:[%s15178_s1 + $0x948] sm:$0xf0]  ;;  %v9920_v5 = vld [vmem:[%s15178_s1 + $0x824] sm:$0xf]  ;;  %v6581_v6 = vld [vmem:[%s15178_s1 + $0x834] sm:$0xf0] }
   0x3   :  { %v6720_v7 = vor.u32 %v9957_v4, %v6719_v2  ;;  %v6584_v8 = vor.u32 %v9920_v5, %v6581_v6  ;;  %v9955_v9 = vld [vmem:[%s15178_s1 + $0x93c] sm:$0xf]  ;;  %v6721_v10 = vld [vmem:[%s15178_s1 + $0x94c] sm:$0xf0]  ;;  %v6559_v11 = vld [vmem:[%s15178_s1 + $0x7f8] sm:$0xf] }
   0x4   :  { %797 = vmatpush.bf16.msra.mxu0 %v6580_v3  ;;  %v6724_v12 = vor.u32 %v9955_v9, %v6721_v10  ;;  %v9917_v13 = vld [vmem:[%s15178_s1 + $0x808] sm:$0xf0]  ;;  %v6699_v14 = vld [vmem:[%s15178_s1 + $0x910] sm:$0xf]  ;;  %v9952_v15 = vld [vmem:[%s15178_s1 + $0x920] sm:$0xf0] }
   0x5   :  { %812 = vmatpush.bf16.msra.mxu1 %v6720_v7  ;;  %825 = vmatpush.bf16.msra.mxu2 %v6584_v8  ;;  %v6560_v16 = vor.u32 %v9917_v13, %v6559_v11  ;;  %v6700_v17 = vor.u32 %v9952_v15, %v6699_v14  ;;  %v9915_v18 = vld [vmem:[%s15178_s1 + $0x7fc] sm:$0xf]  ;;  %v6561_v19 = vld [vmem:[%s15178_s1 + $0x80c] sm:$0xf0]  ;;  %v9950_v20 = vld [vmem:[%s15178_s1 + $0x914] sm:$0xf] }
   0x6   :  { %840 = vmatpush.bf16.msra.mxu3 %v6724_v12  ;;  %v6564_v21 = vor.u32 %v9915_v18, %v6561_v19  ;;  %v6701_v22 = vld [vmem:[%s15178_s1 + $0x924] sm:$0xf0]  ;;  %v6539_v23 = vld [vmem:[%s15178_s1 + $0x7d0] sm:$0xf]  ;;  %v9912_v24 = vld [vmem:[%s15178_s1 + $0x7e0] sm:$0xf0] }
   0x7   :  { %v6704_v25 = vor.u32 %v9950_v20, %v6701_v22  ;;  %v6679_v26 = vld [vmem:[%s15178_s1 + $0x8e8] sm:$0xf]  ;;  %v9947_v27 = vld [vmem:[%s15178_s1 + $0x8f8] sm:$0xf0]  ;;  %v9910_v28 = vld [vmem:[%s15178_s1 + $0x7d4] sm:$0xf]  ;;  %v6540_v29 = vor.u32 %v9912_v24, %v6539_v23 }
   0x8   :  { %798 = vmatpush.bf16.msra.mxu0 %v6560_v16  ;;  %v6541_v30 = vld [vmem:[%s15178_s1 + $0x7e4] sm:$0xf0]  ;;  %v9945_v31 = vld [vmem:[%s15178_s1 + $0x8ec] sm:$0xf]  ;;  %v6681_v32 = vld [vmem:[%s15178_s1 + $0x8fc] sm:$0xf0]  ;;  %v6680_v33 = vor.u32 %v9947_v27, %v6679_v26 }
   0x9   :  { %813 = vmatpush.bf16.msra.mxu1 %v6700_v17  ;;  %826 = vmatpush.bf16.msra.mxu2 %v6564_v21  ;;  %v6544_v34 = vor.u32 %v9910_v28, %v6541_v30  ;;  %v6519_v35 = vld [vmem:[%s15178_s1 + $0x7a8] sm:$0xf]  ;;  %v9907_v36 = vld [vmem:[%s15178_s1 + $0x7b8] sm:$0xf0]  ;;  %v6659_v37 = vld [vmem:[%s15178_s1 + $0x8c0] sm:$0xf]  ;;  %v6684_v38 = vor.u32 %v9945_v31, %v6681_v32 }
   0xa   :  { %841 = vmatpush.bf16.msra.mxu3 %v6704_v25  ;;  %v9942_v39 = vld [vmem:[%s15178_s1 + $0x8d0] sm:$0xf0]  ;;  %v9905_v40 = vld [vmem:[%s15178_s1 + $0x7ac] sm:$0xf]  ;;  %v6521_v41 = vld [vmem:[%s15178_s1 + $0x7bc] sm:$0xf0]  ;;  %v6520_v44 = vor.u32 %v9907_v36, %v6519_v35 }
   0xb   :  { %v9940_v42 = vld [vmem:[%s15178_s1 + $0x8c4] sm:$0xf]  ;;  %v6661_v43 = vld [vmem:[%s15178_s1 + $0x8d4] sm:$0xf0]  ;;  %v6660_v45 = vor.u32 %v9942_v39, %v6659_v37  ;;  %v6524_v46 = vor.u32 %v9905_v40, %v6521_v41  ;;  %v6499_v47 = vld [vmem:[%s15178_s1 + $0x780] sm:$0xf] }
   0xc   :  { %799 = vmatpush.bf16.msra.mxu0 %v6540_v29  ;;  %v9902_v48 = vld [vmem:[%s15178_s1 + $0x790] sm:$0xf0]  ;;  %v6639_v49 = vld [vmem:[%s15178_s1 + $0x898] sm:$0xf]  ;;  %v6664_v50 = vor.u32 %v9940_v42, %v6661_v43  ;;  %v9937_v51 = vld [vmem:[%s15178_s1 + $0x8a8] sm:$0xf0] }
   0xd   :  { %814 = vmatpush.bf16.msra.mxu1 %v6680_v33  ;;  %827 = vmatpush.bf16.msra.mxu2 %v6544_v34  ;;  %v9900_v52 = vld [vmem:[%s15178_s1 + $0x784] sm:$0xf]  ;;  %v6501_v53 = vld [vmem:[%s15178_s1 + $0x794] sm:$0xf0]  ;;  %v9935_v54 = vld [vmem:[%s15178_s1 + $0x89c] sm:$0xf]  ;;  %v6500_v56 = vor.u32 %v9902_v48, %v6499_v47  ;;  %v6640_v57 = vor.u32 %v9937_v51, %v6639_v49 }
   0xe   :  { %842 = vmatpush.bf16.msra.mxu3 %v6684_v38  ;;  %v6641_v55 = vld [vmem:[%s15178_s1 + $0x8ac] sm:$0xf0]  ;;  %v6504_v58 = vor.u32 %v9900_v52, %v6501_v53  ;;  %v6479_v59 = vld [vmem:[%s15178_s1 + $0x758] sm:$0xf]  ;;  %v9897_v60 = vld [vmem:[%s15178_s1 + $0x768] sm:$0xf0] }
   0xf   :  { %v6619_v61 = vld [vmem:[%s15178_s1 + $0x870] sm:$0xf]  ;;  %v6644_v62 = vor.u32 %v9935_v54, %v6641_v55  ;;  %v9932_v63 = vld [vmem:[%s15178_s1 + $0x880] sm:$0xf0]  ;;  %v9895_v0 = vld [vmem:[%s15178_s1 + $0x75c] sm:$0xf]  ;;  %v6480_v4 = vor.u32 %v9897_v60, %v6479_v59 }
  0x10   :  { %800 = vmatpush.bf16.msra.mxu0 %v6520_v44  ;;  %v6481_v1 = vld [vmem:[%s15178_s1 + $0x76c] sm:$0xf0]  ;;  %v9930_v2 = vld [vmem:[%s15178_s1 + $0x874] sm:$0xf]  ;;  %v6621_v3 = vld [vmem:[%s15178_s1 + $0x884] sm:$0xf0]  ;;  %v6620_v6 = vor.u32 %v9932_v63, %v6619_v61 }
  0x11   :  { %815 = vmatpush.bf16.msra.mxu1 %v6660_v45  ;;  %828 = vmatpush.bf16.msra.mxu2 %v6524_v46  ;;  %v6459_v5 = vld [vmem:[%s15178_s1 + $0x730] sm:$0xf]  ;;  %v6484_v7 = vor.u32 %v9895_v0, %v6481_v1  ;;  %v9892_v8 = vld [vmem:[%s15178_s1 + $0x740] sm:$0xf0]  ;;  %v6599_v9 = vld [vmem:[%s15178_s1 + $0x848] sm:$0xf]  ;;  %v6624_v11 = vor.u32 %v9930_v2, %v6621_v3 }
  0x12   :  { %843 = vmatpush.bf16.msra.mxu3 %v6664_v50  ;;  %v9927_v10 = vld [vmem:[%s15178_s1 + $0x858] sm:$0xf0]  ;;  %v9890_v12 = vld [vmem:[%s15178_s1 + $0x734] sm:$0xf]  ;;  %v6461_v13 = vld [vmem:[%s15178_s1 + $0x744] sm:$0xf0]  ;;  %v6460_v18 = vor.u32 %v9892_v8, %v6459_v5 }
  0x13   :  { %v9925_v14 = vld [vmem:[%s15178_s1 + $0x84c] sm:$0xf]  ;;  %v6601_v15 = vld [vmem:[%s15178_s1 + $0x85c] sm:$0xf0]  ;;  %v6587_v16 = vld [vmem:[%s15178_s1 + $0x828] sm:$0xf]  ;;  %v6600_v22 = vor.u32 %v9927_v10, %v6599_v9  ;;  %v6464_v23 = vor.u32 %v9890_v12, %v6461_v13 }
  0x14   :  { %801 = vmatpush.bf16.msra.mxu0 %v6500_v56  ;;  %v9923_v17 = vld [vmem:[%s15178_s1 + $0x838] sm:$0xf0]  ;;  %v6727_v19 = vld [vmem:[%s15178_s1 + $0x940] sm:$0xf]  ;;  %v9958_v20 = vld [vmem:[%s15178_s1 + $0x950] sm:$0xf0]  ;;  %v6604_v27 = vor.u32 %v9925_v14, %v6601_v15 }
  0x15   :  { %816 = vmatpush.bf16.msra.mxu1 %v6640_v57  ;;  %829 = vmatpush.bf16.msra.mxu2 %v6504_v58  ;;  %v6439_v21 = vld [vmem:[%s15178_s1 + $0x708] sm:$0xf]  ;;  %v9887_v24 = vld [vmem:[%s15178_s1 + $0x718] sm:$0xf0]  ;;  %v9885_v25 = vld [vmem:[%s15178_s1 + $0x70c] sm:$0xf]  ;;  %v6588_v28 = vor.u32 %v9923_v17, %v6587_v16  ;;  %v6728_v32 = vor.u32 %v9958_v20, %v6727_v19 }
  0x16   :  { %844 = vmatpush.bf16.msra.mxu3 %v6644_v62  ;;  %v6441_v26 = vld [vmem:[%s15178_s1 + $0x71c] sm:$0xf0]  ;;  %v9921_v30 = vld [vmem:[%s15178_s1 + $0x82c] sm:$0xf]  ;;  %v9918_v33 = vld [vmem:[%s15178_s1 + $0x810] sm:$0xf0]  ;;  %v6440_v36 = vor.u32 %v9887_v24, %v6439_v21 }
  0x17   :  { %v6567_v29 = vld [vmem:[%s15178_s1 + $0x800] sm:$0xf]  ;;  %v9956_v34 = vld [vmem:[%s15178_s1 + $0x944] sm:$0xf]  ;;  %v6729_v35 = vld [vmem:[%s15178_s1 + $0x954] sm:$0xf0]  ;;  %v6444_v39 = vor.u32 %v9885_v25, %v6441_v26 }
  0x18   :  { %802 = vmatpush.bf16.msra.mxu0 %v6480_v4  ;;  %v6589_v31 = vld [vmem:[%s15178_s1 + $0x83c] sm:$0xf0]  ;;  %v6707_v37 = vld [vmem:[%s15178_s1 + $0x918] sm:$0xf]  ;;  %v9953_v38 = vld [vmem:[%s15178_s1 + $0x928] sm:$0xf0]  ;;  %v6568_v45 = vor.u32 %v9918_v33, %v6567_v29  ;;  %v6732_v46 = vor.u32 %v9956_v34, %v6729_v35 }
  0x19   :  { %817 = vmatpush.bf16.msra.mxu1 %v6620_v6  ;;  %830 = vmatpush.bf16.msra.mxu2 %v6484_v7  ;;  %v6592_v40 = vor.u32 %v9921_v30, %v6589_v31  ;;  %v6547_v41 = vld [vmem:[%s15178_s1 + $0x7d8] sm:$0xf]  ;;  %v9913_v42 = vld [vmem:[%s15178_s1 + $0x7e8] sm:$0xf0]  ;;  %v9916_v43 = vld [vmem:[%s15178_s1 + $0x804] sm:$0xf]  ;;  %v6708_v50 = vor.u32 %v9953_v38, %v6707_v37 }
  0x1a   :  { %845 = vmatpush.bf16.msra.mxu3 %v6624_v11  ;;  %v6569_v44 = vld [vmem:[%s15178_s1 + $0x814] sm:$0xf0]  ;;  %v9951_v47 = vld [vmem:[%s15178_s1 + $0x91c] sm:$0xf]  ;;  %v6431_v48 = vld [vmem:[%s15177_s0] sm:$0xf]  ;;  %v6548_v59 = vor.u32 %v9913_v42, %v6547_v41 }
  0x1b   :  { %v9659_v49 = vld [vmem:[%s15177_s0 + $0x4] sm:$0x30]  ;;  %v6709_v51 = vld [vmem:[%s15178_s1 + $0x92c] sm:$0xf0]  ;;  %v9658_v52 = vld [vmem:[%s15177_s0 + $0x4] sm:$0xf]  ;;  %v6572_v58 = vor.u32 %v9916_v43, %v6569_v44 }
  0x1c   :  { %803 = vmatpush.bf16.msra.mxu0 %v6460_v18  ;;  %v6433_v53 = vld [vmem:[%s15177_s0 + $0x8] sm:$0x30]  ;;  %v6687_v54 = vld [vmem:[%s15178_s1 + $0x8f0] sm:$0xf]  ;;  %v9948_v55 = vld [vmem:[%s15178_s1 + $0x900] sm:$0xf0]  ;;  %v10704_v56 = vor.u32 %v9659_v49, %v6431_v48  ;;  %v6712_v60 = vor.u32 %v9951_v47, %v6709_v51 }
  0x1d   :  { %818 = vmatpush.bf16.msra.mxu1 %v6600_v22  ;;  %831 = vmatpush.bf16.msra.mxu2 %v6464_v23  ;;  %v10706_v57 = vor.u32 %v9658_v52, %v6433_v53  ;;  %v6527_v61 = vld [vmem:[%s15178_s1 + $0x7b0] sm:$0xf]  ;;  %v9911_v62 = vld [vmem:[%s15178_s1 + $0x7dc] sm:$0xf]  ;;  %v6688_v0 = vor.u32 %v9948_v55, %v6687_v54  ;;  %v9908_v1 = vld [vmem:[%s15178_s1 + $0x7c0] sm:$0xf0] }
  0x1e   :  { %846 = vmatpush.bf16.msra.mxu3 %v6604_v27  ;;  %v6549_v63 = vld [vmem:[%s15178_s1 + $0x7ec] sm:$0xf0]  ;;  %v9946_v2 = vld [vmem:[%s15178_s1 + $0x8f4] sm:$0xf]  ;;  %v6689_v3 = vld [vmem:[%s15178_s1 + $0x904] sm:$0xf0]  ;;  %v6528_v7 = vor.u32 %v9908_v1, %v6527_v61 }
  0x1f   :  { %v6667_v4 = vld [vmem:[%s15178_s1 + $0x8c8] sm:$0xf]  ;;  %v9943_v5 = vld [vmem:[%s15178_s1 + $0x8d8] sm:$0xf0]  ;;  %v6552_v6 = vor.u32 %v9911_v62, %v6549_v63  ;;  %v6692_v8 = vor.u32 %v9946_v2, %v6689_v3  ;;  %v9906_v10 = vld [vmem:[%s15178_s1 + $0x7b4] sm:$0xf] }
  0x20   :  { %804 = vmatpush.bf16.msra.mxu0 %v6440_v36  ;;  %6737 = vmatmul.msk.bf16.vlgmr.msra.gmra.mxu1 %vm793_vm0, %v10706_v57  ;;  %v6507_v9 = vld [vmem:[%s15178_s1 + $0x788] sm:$0xf]  ;;  %v6668_v12 = vor.u32 %v9943_v5, %v6667_v4  ;;  %v9903_v13 = vld [vmem:[%s15178_s1 + $0x798] sm:$0xf0]  ;;  %v9941_v14 = vld [vmem:[%s15178_s1 + $0x8cc] sm:$0xf] }
  0x21   :  { %853 = vmatpush.bf16.msrb.mxu1 %v6588_v28  ;;  %832 = vmatpush.bf16.msra.mxu2 %v6444_v39  ;;  %v6529_v11 = vld [vmem:[%s15178_s1 + $0x7c4] sm:$0xf0]  ;;  %v6669_v15 = vld [vmem:[%s15178_s1 + $0x8dc] sm:$0xf0]  ;;  %v9938_v17 = vld [vmem:[%s15178_s1 + $0x8b0] sm:$0xf0]  ;;  %v6508_v19 = vor.u32 %v9903_v13, %v6507_v9 }
  0x22   :  { %868 = vmatpush.bf16.msrb.mxu3 %v6728_v32  ;;  %v6647_v16 = vld [vmem:[%s15178_s1 + $0x8a0] sm:$0xf]  ;;  %v6532_v18 = vor.u32 %v9906_v10, %v6529_v11  ;;  %v6672_v20 = vor.u32 %v9941_v14, %v6669_v15  ;;  %v9901_v22 = vld [vmem:[%s15178_s1 + $0x78c] sm:$0xf]  ;;  %v9898_v25 = vld [vmem:[%s15178_s1 + $0x770] sm:$0xf0] }
  0x23   :  { %805 = vmatmul.bf16.vlgmr.msra.gmra.mxu0 %v10704_v56  ;;  %6738 = vmatmul.msk.bf16.vlgmr.msra.gmra.mxu3 %vm793_vm0, %v10706_v57  ;;  %v6487_v21 = vld [vmem:[%s15178_s1 + $0x760] sm:$0xf]  ;;  %v6648_v24 = vor.u32 %v9938_v17, %v6647_v16  ;;  %v9936_v26 = vld [vmem:[%s15178_s1 + $0x8a4] sm:$0xf]  ;;  %v6649_v27 = vld [vmem:[%s15178_s1 + $0x8b4] sm:$0xf0] }
  0x24   :  { %881 = vmatpush.bf16.msrb.mxu0 %v6592_v40  ;;  %833 = vmatmul.bf16.vlgmr.msra.gmra.mxu2 %v10704_v56  ;;  %v6509_v23 = vld [vmem:[%s15178_s1 + $0x79c] sm:$0xf0]  ;;  %v6627_v28 = vld [vmem:[%s15178_s1 + $0x878] sm:$0xf]  ;;  %v9933_v29 = vld [vmem:[%s15178_s1 + $0x888] sm:$0xf0]  ;;  %v6488_v31 = vor.u32 %v9898_v25, %v6487_v21  ;;  %v6652_v32 = vor.u32 %v9936_v26, %v6649_v27 }
  0x25   :  { %854 = vmatpush.bf16.msrb.mxu1 %v6568_v45  ;;  %896 = vmatpush.bf16.msrb.mxu2 %v6732_v46  ;;  %v6512_v30 = vor.u32 %v9901_v22, %v6509_v23  ;;  %v6467_v33 = vld [vmem:[%s15178_s1 + $0x738] sm:$0xf]  ;;  %v9896_v34 = vld [vmem:[%s15178_s1 + $0x764] sm:$0xf]  ;;  %v6628_v36 = vor.u32 %v9933_v29, %v6627_v28  ;;  %v9893_v37 = vld [vmem:[%s15178_s1 + $0x748] sm:$0xf0] }
  0x26   :  { %869 = vmatpush.bf16.msrb.mxu3 %v6708_v50  ;;  %v6489_v35 = vld [vmem:[%s15178_s1 + $0x774] sm:$0xf0]  ;;  %v9931_v38 = vld [vmem:[%s15178_s1 + $0x87c] sm:$0xf]  ;;  %v6629_v39 = vld [vmem:[%s15178_s1 + $0x88c] sm:$0xf0]  ;;  %v6468_v46 = vor.u32 %v9893_v37, %v6467_v33 }
  0x27   :  { %v6607_v40 = vld [vmem:[%s15178_s1 + $0x850] sm:$0xf]  ;;  %v9928_v41 = vld [vmem:[%s15178_s1 + $0x860] sm:$0xf0]  ;;  %v6492_v42 = vor.u32 %v9896_v34, %v6489_v35  ;;  %v6632_v47 = vor.u32 %v9931_v38, %v6629_v39  ;;  %v9891_v49 = vld [vmem:[%s15178_s1 + $0x73c] sm:$0xf] }
  0x28   :  { %882 = vmatpush.bf16.msrb.mxu0 %v6572_v58  ;;  %v6595_v43 = vld [vmem:[%s15178_s1 + $0x830] sm:$0xf]  ;;  %v9924_v44 = vld [vmem:[%s15178_s1 + $0x840] sm:$0xf0]  ;;  %v6608_v51 = vor.u32 %v9928_v41, %v6607_v40  ;;  %v9926_v52 = vld [vmem:[%s15178_s1 + $0x854] sm:$0xf] }
  0x29   :  { %855 = vmatpush.bf16.msrb.mxu1 %v6548_v59  ;;  %897 = vmatpush.bf16.msrb.mxu2 %v6712_v60  ;;  %v6447_v45 = vld [vmem:[%s15178_s1 + $0x710] sm:$0xf]  ;;  %v9888_v48 = vld [vmem:[%s15178_s1 + $0x720] sm:$0xf0]  ;;  %v6609_v53 = vld [vmem:[%s15178_s1 + $0x864] sm:$0xf0]  ;;  %v6596_v55 = vor.u32 %v9924_v44, %v6595_v43 }
  0x2a   :  { %870 = vmatpush.bf16.msrb.mxu3 %v6688_v0  ;;  %v6469_v50 = vld [vmem:[%s15178_s1 + $0x74c] sm:$0xf0]  ;;  %v6735_v54 = vld [vmem:[%s15178_s1 + $0x948] sm:$0xf]  ;;  %v9959_v58 = vld [vmem:[%s15178_s1 + $0x958] sm:$0xf0]  ;;  %v6448_v0 = vor.u32 %v9888_v48, %v6447_v45  ;;  %v6612_v1 = vor.u32 %v9926_v52, %v6609_v53 }
  0x2b   :  { %v6884_v59 = vld [vmem:[%s15178_s1 + $0x118] sm:$0xf]  ;;  %v9697_v60 = vld [vmem:[%s15178_s1 + $0x128] sm:$0xf0]  ;;  %v6472_v61 = vor.u32 %v9891_v49, %v6469_v50  ;;  %v6575_v62 = vld [vmem:[%s15178_s1 + $0x808] sm:$0xf]  ;;  %v6736_v4 = vor.u32 %v9959_v58, %v6735_v54 }
  0x2c   :  { %883 = vmatpush.bf16.msrb.mxu0 %v6552_v6  ;;  %v9919_v63 = vld [vmem:[%s15178_s1 + $0x818] sm:$0xf0]  ;;  %v9886_v2 = vld [vmem:[%s15178_s1 + $0x714] sm:$0xf]  ;;  %v6449_v3 = vld [vmem:[%s15178_s1 + $0x724] sm:$0xf0]  ;;  %v6885_v5 = vor.u32 %v9697_v60, %v6884_v59 }
  0x2d   :  { %856 = vmatpush.bf16.msrb.mxu1 %v6528_v7  ;;  %898 = vmatpush.bf16.msrb.mxu2 %v6692_v8  ;;  %v6715_v6 = vld [vmem:[%s15178_s1 + $0x920] sm:$0xf]  ;;  %v7024_v7 = vld [vmem:[%s15178_s1 + $0x230] sm:$0xf]  ;;  %v9732_v8 = vld [vmem:[%s15178_s1 + $0x240] sm:$0xf0]  ;;  %v6576_v9 = vor.u32 %v9919_v63, %v6575_v62  ;;  %v6452_v13 = vor.u32 %v9886_v2, %v6449_v3 }
  0x2e   :  { %871 = vmatpush.bf16.msrb.mxu3 %v6668_v12  ;;  %v9954_v10 = vld [vmem:[%s15178_s1 + $0x930] sm:$0xf0]  ;;  %v6864_v11 = vld [vmem:[%s15178_s1 + $0xf0] sm:$0xf]  ;;  %v9692_v12 = vld [vmem:[%s15178_s1 + $0x100] sm:$0xf0]  ;;  %v7025_v16 = vor.u32 %v9732_v8, %v7024_v7 }
  0x2f   :  { %v6555_v14 = vld [vmem:[%s15178_s1 + $0x7e0] sm:$0xf]  ;;  %v9914_v15 = vld [vmem:[%s15178_s1 + $0x7f0] sm:$0xf0]  ;;  %v6716_v17 = vor.u32 %v9954_v10, %v6715_v6  ;;  %v9727_v21 = vld [vmem:[%s15178_s1 + $0x218] sm:$0xf0] }
  0x30   :  { %884 = vmatpush.bf16.msrb.mxu0 %v6532_v18  ;;  %v6865_v18 = vor.u32 %v9692_v12, %v6864_v11  ;;  %v6556_v22 = vor.u32 %v9914_v15, %v6555_v14  ;;  %v9949_v23 = vld [vmem:[%s15178_s1 + $0x908] sm:$0xf0]  ;;  %v9687_v25 = vld [vmem:[%s15178_s1 + $0xd8] sm:$0xf0]  ;;  %v6535_v26 = vld [vmem:[%s15178_s1 + $0x7b8] sm:$0xf] }
  0x31   :  { %857 = vmatpush.bf16.msrb.mxu1 %v6508_v19  ;;  %899 = vmatpush.bf16.msrb.mxu2 %v6672_v20  ;;  %v6695_v19 = vld [vmem:[%s15178_s1 + $0x8f8] sm:$0xf]  ;;  %v7004_v20 = vld [vmem:[%s15178_s1 + $0x208] sm:$0xf]  ;;  %v9909_v27 = vld [vmem:[%s15178_s1 + $0x7c8] sm:$0xf0] }
  0x32   :  { %872 = vmatpush.bf16.msrb.mxu3 %v6648_v24  ;;  %v6844_v24 = vld [vmem:[%s15178_s1 + $0xc8] sm:$0xf]  ;;  %v7005_v28 = vor.u32 %v9727_v21, %v7004_v20  ;;  %v6696_v29 = vor.u32 %v9949_v23, %v6695_v19  ;;  %v9722_v33 = vld [vmem:[%s15178_s1 + $0x1f0] sm:$0xf0]  ;;  %v6536_v34 = vor.u32 %v9909_v27, %v6535_v26  ;;  %v9944_v35 = vld [vmem:[%s15178_s1 + $0x8e0] sm:$0xf0] }
  0x33   :  { %v9682_v37 = vld [vmem:[%s15178_s1 + $0xb0] sm:$0xf0]  ;;  %v6515_v38 = vld [vmem:[%s15178_s1 + $0x790] sm:$0xf]  ;;  %v9904_v39 = vld [vmem:[%s15178_s1 + $0x7a0] sm:$0xf0] }
  0x34   :  { %885 = vmatpush.bf16.msrb.mxu0 %v6512_v30  ;;  %v6845_v30 = vor.u32 %v9687_v25, %v6844_v24  ;;  %v6655_v43 = vld [vmem:[%s15178_s1 + $0x8a8] sm:$0xf]  ;;  %v6964_v44 = vld [vmem:[%s15178_s1 + $0x1b8] sm:$0xf]  ;;  %v9717_v45 = vld [vmem:[%s15178_s1 + $0x1c8] sm:$0xf0] }
  0x35   :  { %858 = vmatpush.bf16.msrb.mxu1 %v6488_v31  ;;  %900 = vmatpush.bf16.msrb.mxu2 %v6652_v32  ;;  %v6675_v31 = vld [vmem:[%s15178_s1 + $0x8d0] sm:$0xf]  ;;  %v6984_v32 = vld [vmem:[%s15178_s1 + $0x1e0] sm:$0xf]  ;;  %v6804_v48 = vld [vmem:[%s15178_s1 + $0x78] sm:$0xf]  ;;  %v6965_v52 = vor.u32 %v9717_v45, %v6964_v44 }
  0x36   :  { %873 = vmatpush.bf16.msrb.mxu3 %v6628_v36  ;;  %v6824_v36 = vld [vmem:[%s15178_s1 + $0xa0] sm:$0xf]  ;;  %v6985_v40 = vor.u32 %v9722_v33, %v6984_v32  ;;  %v6676_v41 = vor.u32 %v9944_v35, %v6675_v31  ;;  %v9677_v49 = vld [vmem:[%s15178_s1 + $0x88] sm:$0xf0]  ;;  %v6495_v50 = vld [vmem:[%s15178_s1 + $0x768] sm:$0xf] }
  0x37   :  { %v6805_v54 = vor.u32 %v9677_v49, %v6804_v48  ;;  %v6944_v58 = vld [vmem:[%s15178_s1 + $0x190] sm:$0xf]  ;;  %v9712_v59 = vld [vmem:[%s15178_s1 + $0x1a0] sm:$0xf0]  ;;  %v6615_v6 = vld [vmem:[%s15178_s1 + $0x858] sm:$0xf] }
  0x38   :  { %886 = vmatpush.bf16.msrb.mxu0 %v6492_v42  ;;  %v6825_v42 = vor.u32 %v9682_v37, %v6824_v36  ;;  %v6784_v62 = vld [vmem:[%s15178_s1 + $0x50] sm:$0xf]  ;;  %v9672_v63 = vld [vmem:[%s15178_s1 + $0x60] sm:$0xf0]  ;;  %v6945_v2 = vor.u32 %v9712_v59, %v6944_v58  ;;  %v6924_v7 = vld [vmem:[%s15178_s1 + $0x168] sm:$0xf] }
  0x39   :  { %859 = vmatpush.bf16.msrb.mxu1 %v6468_v46  ;;  %901 = vmatpush.bf16.msrb.mxu2 %v6632_v47  ;;  %v6516_v46 = vor.u32 %v9904_v39, %v6515_v38  ;;  %v9939_v47 = vld [vmem:[%s15178_s1 + $0x8b8] sm:$0xf0]  ;;  %v9929_v10 = vld [vmem:[%s15178_s1 + $0x868] sm:$0xf0]  ;;  %v6764_v11 = vld [vmem:[%s15178_s1 + $0x28] sm:$0xf] }
  0x3a   :  { %874 = vmatpush.bf16.msrb.mxu3 %v6608_v51  ;;  %v9899_v51 = vld [vmem:[%s15178_s1 + $0x778] sm:$0xf0]  ;;  %v6656_v53 = vor.u32 %v9939_v47, %v6655_v43  ;;  %v6886_v15 = vld [vmem:[%s15178_s1 + $0x12c] sm:$0xf0]  ;;  %v6744_v19 = vld [vmem:[%s15178_s1] sm:$0xf]  ;;  %v6616_v20 = vor.u32 %v9929_v10, %v6615_v6 }
  0x3b   :  { %v6496_v60 = vor.u32 %v9899_v51, %v6495_v50  ;;  %v9707_v8 = vld [vmem:[%s15178_s1 + $0x178] sm:$0xf0]  ;;  %v6904_v23 = vld [vmem:[%s15178_s1 + $0x140] sm:$0xf]  ;;  %v9702_v24 = vld [vmem:[%s15178_s1 + $0x150] sm:$0xf0] }
  0x3c   :  { %887 = vmatpush.bf16.msrb.mxu0 %v6472_v61  ;;  %v9934_v61 = vld [vmem:[%s15178_s1 + $0x890] sm:$0xf0]  ;;  %v9667_v12 = vld [vmem:[%s15178_s1 + $0x38] sm:$0xf0]  ;;  %v6866_v31 = vld [vmem:[%s15178_s1 + $0x104] sm:$0xf0] }
  0x3d   :  { %860 = vmatpush.bf16.msrb.mxu1 %v6448_v0  ;;  %902 = vmatpush.bf16.msrb.mxu2 %v6612_v1  ;;  %v6475_v0 = vld [vmem:[%s15178_s1 + $0x740] sm:$0xf]  ;;  %v9894_v1 = vld [vmem:[%s15178_s1 + $0x750] sm:$0xf0]  ;;  %v9695_v14 = vld [vmem:[%s15178_s1 + $0x11c] sm:$0xf]  ;;  %v6765_v21 = vor.u32 %v9667_v12, %v6764_v11 }
  0x3e   :  { %909 = vmatpush.bf16.msra.mxu3 %v6596_v55  ;;  %v6635_v55 = vld [vmem:[%s15178_s1 + $0x880] sm:$0xf]  ;;  %v6889_v26 = vor.u32 %v9695_v14, %v6886_v15  ;;  %v9690_v27 = vld [vmem:[%s15178_s1 + $0xf4] sm:$0xf]  ;;  %v7032_v32 = vld [vmem:[%s15178_s1 + $0x238] sm:$0xf] }
  0x3f   :  { %6739 = vmatmul.msk.bf16.vlgmr.msrb.gmra.mxu3 %vm793_vm0, %v10706_v57  ;;  %v6636_v3 = vor.u32 %v9934_v61, %v6635_v55  ;;  %v9733_v33 = vld [vmem:[%s15178_s1 + $0x248] sm:$0xf0]  ;;  %v7006_v36 = vld [vmem:[%s15178_s1 + $0x21c] sm:$0xf0]  ;;  %v6869_v39 = vor.u32 %v9690_v27, %v6866_v31  ;;  %v9728_v47 = vld [vmem:[%s15178_s1 + $0x220] sm:$0xf0] }
  0x40   :  { %888 = vmatpush.bf16.msrb.mxu0 %v6452_v13  ;;  %6740 = vmatmul.msk.bf16.vlgmr.msrb.gmra.mxu2 %vm793_vm0, %v10706_v57  ;;  %v9889_v13 = vld [vmem:[%s15178_s1 + $0x728] sm:$0xf0]  ;;  %v6846_v45 = vld [vmem:[%s15178_s1 + $0xdc] sm:$0xf0]  ;;  %v9720_v48 = vld [vmem:[%s15178_s1 + $0x1e4] sm:$0xf] }
  0x41   :  { %924 = vmatpush.bf16.msra.mxu1 %v6736_v4  ;;  %1338 = vmatpush.bf16.msra.mxu2 %v6885_v5  ;;  %v6785_v4 = vor.u32 %v9672_v63, %v6784_v62  ;;  %v6455_v5 = vld [vmem:[%s15178_s1 + $0x718] sm:$0xf]  ;;  %v9725_v35 = vld [vmem:[%s15178_s1 + $0x20c] sm:$0xf]  ;;  %v9688_v55 = vld [vmem:[%s15178_s1 + $0xe0] sm:$0xf0] }
  0x42   :  { %910 = vmatpush.bf16.msra.mxu3 %v6576_v9  ;;  %861 = vmatmul.bf16.vlgmr.msrb.gmra.mxu1 %v10704_v56  ;;  %v6476_v9 = vor.u32 %v9894_v1, %v6475_v0  ;;  %v6456_v25 = vor.u32 %v9889_v13, %v6455_v5  ;;  %v9693_v43 = vld [vmem:[%s15178_s1 + $0x108] sm:$0xf0]  ;;  %v7009_v44 = vor.u32 %v9725_v35, %v7006_v36  ;;  %v6986_v49 = vld [vmem:[%s15178_s1 + $0x1f4] sm:$0xf0]  ;;  %v9723_v61 = vld [vmem:[%s15178_s1 + $0x1f8] sm:$0xf0] }
  0x43   :  { %889 = vmatmul.bf16.vlgmr.msrb.gmra.mxu0 %v10704_v56  ;;  %v6989_v58 = vor.u32 %v9720_v48, %v6986_v49  ;;  %v6826_v59 = vld [vmem:[%s15178_s1 + $0xb4] sm:$0xf0]  ;;  %v9715_v62 = vld [vmem:[%s15178_s1 + $0x1bc] sm:$0xf]  ;;  %v6966_v63 = vld [vmem:[%s15178_s1 + $0x1cc] sm:$0xf0] }
  0x44   :  { %1353 = vmatpush.bf16.msra.mxu0 %v7025_v16  ;;  %v6925_v16 = vor.u32 %v9707_v8, %v6924_v7  ;;  %v9675_v1 = vld [vmem:[%s15178_s1 + $0x7c] sm:$0xf]  ;;  %v6832_v5 = vld [vmem:[%s15178_s1 + $0xa8] sm:$0xf]  ;;  %v6969_v7 = vor.u32 %v9715_v62, %v6966_v63  ;;  %v6972_v8 = vld [vmem:[%s15178_s1 + $0x1c0] sm:$0xf] }
  0x45   :  { %925 = vmatpush.bf16.msra.mxu1 %v6716_v17  ;;  %1339 = vmatpush.bf16.msra.mxu2 %v6865_v18  ;;  %v9730_v17 = vld [vmem:[%s15178_s1 + $0x234] sm:$0xf]  ;;  %v7026_v18 = vld [vmem:[%s15178_s1 + $0x244] sm:$0xf0]  ;;  %v9683_v6 = vld [vmem:[%s15178_s1 + $0xb8] sm:$0xf0] }
  0x46   :  { %911 = vmatpush.bf16.msra.mxu3 %v6556_v22  ;;  %v9662_v22 = vld [vmem:[%s15178_s1 + $0x10] sm:$0xf0] }
  0x47   :  { %v6745_v37 = vor.u32 %v9662_v22, %v6744_v19 }
  0x48   :  { %1354 = vmatpush.bf16.msra.mxu0 %v7005_v28  ;;  %v6892_v28 = vld [vmem:[%s15178_s1 + $0x120] sm:$0xf] }
  0x49   :  { %926 = vmatpush.bf16.msra.mxu1 %v6696_v29  ;;  %1340 = vmatpush.bf16.msra.mxu2 %v6845_v30  ;;  %v9698_v29 = vld [vmem:[%s15178_s1 + $0x130] sm:$0xf0]  ;;  %v7029_v30 = vor.u32 %v9730_v17, %v7026_v18 }
  0x4a   :  { %912 = vmatpush.bf16.msra.mxu3 %v6536_v34  ;;  %v6905_v34 = vor.u32 %v9702_v24, %v6904_v23  ;;  %v6893_v38 = vor.u32 %v9698_v29, %v6892_v28 }
  0x4c   :  { %1355 = vmatpush.bf16.msra.mxu0 %v6985_v40  ;;  %v7033_v40 = vor.u32 %v9733_v33, %v7032_v32 }
  0x4d   :  { %927 = vmatpush.bf16.msra.mxu1 %v6676_v41  ;;  %1341 = vmatpush.bf16.msra.mxu2 %v6825_v42  ;;  %v9685_v41 = vld [vmem:[%s15178_s1 + $0xcc] sm:$0xf]  ;;  %v6872_v42 = vld [vmem:[%s15178_s1 + $0xf8] sm:$0xf] }
  0x4e   :  { %913 = vmatpush.bf16.msra.mxu3 %v6516_v46  ;;  %v7012_v46 = vld [vmem:[%s15178_s1 + $0x210] sm:$0xf]  ;;  %v6873_v50 = vor.u32 %v9693_v43, %v6872_v42  ;;  %v6849_v51 = vor.u32 %v9685_v41, %v6846_v45 }
  0x50   :  { %1356 = vmatpush.bf16.msra.mxu0 %v6965_v52  ;;  %v7013_v52 = vor.u32 %v9728_v47, %v7012_v46 }
  0x51   :  { %928 = vmatpush.bf16.msra.mxu1 %v6656_v53  ;;  %1342 = vmatpush.bf16.msra.mxu2 %v6805_v54  ;;  %v9680_v53 = vld [vmem:[%s15178_s1 + $0xa4] sm:$0xf]  ;;  %v6852_v54 = vld [vmem:[%s15178_s1 + $0xd0] sm:$0xf] }
  0x52   :  { %914 = vmatpush.bf16.msra.mxu3 %v6496_v60  ;;  %v6992_v60 = vld [vmem:[%s15178_s1 + $0x1e8] sm:$0xf]  ;;  %v6853_v0 = vor.u32 %v9688_v55, %v6852_v54 }
  0x54   :  { %1357 = vmatpush.bf16.msra.mxu0 %v6945_v2  ;;  %v6829_v2 = vor.u32 %v9680_v53, %v6826_v59 }
  0x55   :  { %929 = vmatpush.bf16.msra.mxu1 %v6636_v3  ;;  %1343 = vmatpush.bf16.msra.mxu2 %v6785_v4  ;;  %v6993_v3 = vor.u32 %v9723_v61, %v6992_v60  ;;  %v6806_v4 = vld [vmem:[%s15178_s1 + $0x8c] sm:$0xf0] }
  0x56   :  { %915 = vmatpush.bf16.msra.mxu3 %v6476_v9  ;;  %v9718_v9 = vld [vmem:[%s15178_s1 + $0x1d0] sm:$0xf0] }
  0x58   :  { %1358 = vmatpush.bf16.msra.mxu0 %v6925_v16 }
  0x59   :  { %930 = vmatpush.bf16.msra.mxu1 %v6616_v20  ;;  %1344 = vmatpush.bf16.msra.mxu2 %v6765_v21 }
  0x5a   :  { %916 = vmatpush.bf16.msra.mxu3 %v6456_v25 }
  0x5c   :  { %1359 = vmatpush.bf16.msra.mxu0 %v6905_v34  ;;  %6741 = vmatmul.msk.bf16.vlgmr.msra.gmra.mxu1 %vm793_vm0, %v10706_v57 }
  0x5d   :  { %1366 = vmatpush.bf16.msrb.mxu1 %v6889_v26  ;;  %1345 = vmatpush.bf16.msra.mxu2 %v6745_v37 }
  0x5e   :  { %1381 = vmatpush.bf16.msrb.mxu3 %v7029_v30 }
  0x5f   :  { %7042 = vmatmul.msk.bf16.vlgmr.msra.gmra.mxu0 %vm793_vm0, %v10706_v57  ;;  %917 = vmatmul.bf16.vlgmr.msra.gmra.mxu3 %v10704_v56 }
  0x60   :  { %1394 = vmatpush.bf16.msrb.mxu0 %v6893_v38  ;;  %1346 = vmatmul.bf16.vlgmr.msra.gmra.mxu2 %v10704_v56 }
  0x61   :  { %1367 = vmatpush.bf16.msrb.mxu1 %v6869_v39  ;;  %1409 = vmatpush.bf16.msrb.mxu2 %v7033_v40 }
  0x62   :  { %1382 = vmatpush.bf16.msrb.mxu3 %v7009_v44 }
  0x64   :  { %1395 = vmatpush.bf16.msrb.mxu0 %v6873_v50 }
  0x65   :  { %1368 = vmatpush.bf16.msrb.mxu1 %v6849_v51  ;;  %1410 = vmatpush.bf16.msrb.mxu2 %v7013_v52 }
  0x66   :  { %1383 = vmatpush.bf16.msrb.mxu3 %v6989_v58 }
  0x67   :  { %12 = vsyncpa [#allocation4], 0  ;;  %v9710_v10 = vld [vmem:[%s15178_s1 + $0x194] sm:$0xf]  ;;  %v6946_v11 = vld [vmem:[%s15178_s1 + $0x1a4] sm:$0xf0]  ;;  %v6833_v12 = vor.u32 %v9683_v6, %v6832_v5  ;;  %v6809_v13 = vor.u32 %v9675_v1, %v6806_v4  ;;  %v6973_v14 = vor.u32 %v9718_v9, %v6972_v8 }
  0x68   :  { %1396 = vmatpush.bf16.msrb.mxu0 %v6853_v0  ;;  %v9670_v15 = vld [vmem:[%s15178_s1 + $0x54] sm:$0xf]  ;;  %v6812_v16 = vld [vmem:[%s15178_s1 + $0x80] sm:$0xf]  ;;  %v6949_v18 = vor.u32 %v9710_v10, %v6946_v11  ;;  %v6786_v19 = vld [vmem:[%s15178_s1 + $0x64] sm:$0xf0] }
  0x69   :  { %1369 = vmatpush.bf16.msrb.mxu1 %v6829_v2  ;;  %1411 = vmatpush.bf16.msrb.mxu2 %v6993_v3  ;;  %v9678_v17 = vld [vmem:[%s15178_s1 + $0x90] sm:$0xf0]  ;;  %v6952_v20 = vld [vmem:[%s15178_s1 + $0x198] sm:$0xf]  ;;  %v9713_v21 = vld [vmem:[%s15178_s1 + $0x1a8] sm:$0xf0]  ;;  %v6789_v25 = vor.u32 %v9670_v15, %v6786_v19 }
  0x6a   :  { %1384 = vmatpush.bf16.msrb.mxu3 %v6969_v7  ;;  %v9705_v22 = vld [vmem:[%s15178_s1 + $0x16c] sm:$0xf]  ;;  %v6926_v23 = vld [vmem:[%s15178_s1 + $0x17c] sm:$0xf0]  ;;  %v6813_v24 = vor.u32 %v9678_v17, %v6812_v16  ;;  %v6953_v26 = vor.u32 %v9713_v21, %v6952_v20  ;;  %v6792_v28 = vld [vmem:[%s15178_s1 + $0x58] sm:$0xf] }
  0x6b   :  { %v9665_v27 = vld [vmem:[%s15178_s1 + $0x2c] sm:$0xf]  ;;  %v6929_v30 = vor.u32 %v9705_v22, %v6926_v23  ;;  %v6766_v31 = vld [vmem:[%s15178_s1 + $0x3c] sm:$0xf0]  ;;  %v6932_v32 = vld [vmem:[%s15178_s1 + $0x170] sm:$0xf] }
  0x6c   :  { %1397 = vmatpush.bf16.msrb.mxu0 %v6833_v12  ;;  %v9673_v29 = vld [vmem:[%s15178_s1 + $0x68] sm:$0xf0]  ;;  %v9708_v33 = vld [vmem:[%s15178_s1 + $0x180] sm:$0xf0]  ;;  %v6906_v35 = vld [vmem:[%s15178_s1 + $0x154] sm:$0xf0]  ;;  %v6769_v40 = vor.u32 %v9665_v27, %v6766_v31 }
  0x6d   :  { %1370 = vmatpush.bf16.msrb.mxu1 %v6809_v13  ;;  %1412 = vmatpush.bf16.msrb.mxu2 %v6973_v14  ;;  %v9700_v34 = vld [vmem:[%s15178_s1 + $0x144] sm:$0xf]  ;;  %v6793_v36 = vor.u32 %v9673_v29, %v6792_v28  ;;  %v6894_v38 = vld [vmem:[%s15178_s1 + $0x134] sm:$0xf0]  ;;  %v6933_v41 = vor.u32 %v9708_v33, %v6932_v32  ;;  %v6772_v43 = vld [vmem:[%s15178_s1 + $0x30] sm:$0xf] }
  0x6e   :  { %1385 = vmatpush.bf16.msrb.mxu3 %v6949_v18  ;;  %v9696_v37 = vld [vmem:[%s15178_s1 + $0x124] sm:$0xf]  ;;  %v6746_v42 = vld [vmem:[%s15178_s1 + $0x14] sm:$0xf0]  ;;  %v6909_v45 = vor.u32 %v9700_v34, %v6906_v35  ;;  %v6912_v46 = vld [vmem:[%s15178_s1 + $0x148] sm:$0xf] }
  0x6f   :  { %v9660_v39 = vld [vmem:[%s15178_s1 + $0x4] sm:$0xf]  ;;  %v9703_v47 = vld [vmem:[%s15178_s1 + $0x158] sm:$0xf0]  ;;  %v6897_v49 = vor.u32 %v9696_v37, %v6894_v38  ;;  %v7034_v50 = vld [vmem:[%s15178_s1 + $0x24c] sm:$0xf0] }
  0x70   :  { %1398 = vmatpush.bf16.msrb.mxu0 %v6813_v24  ;;  %v9668_v44 = vld [vmem:[%s15178_s1 + $0x40] sm:$0xf0]  ;;  %v9731_v48 = vld [vmem:[%s15178_s1 + $0x23c] sm:$0xf]  ;;  %v6900_v51 = vld [vmem:[%s15178_s1 + $0x128] sm:$0xf]  ;;  %v6749_v58 = vor.u32 %v9660_v39, %v6746_v42  ;;  %v6913_v59 = vor.u32 %v9703_v47, %v6912_v46 }
  0x71   :  { %1371 = vmatpush.bf16.msrb.mxu1 %v6789_v25  ;;  %1413 = vmatpush.bf16.msrb.mxu2 %v6953_v26  ;;  %v9699_v52 = vld [vmem:[%s15178_s1 + $0x138] sm:$0xf0]  ;;  %v6773_v53 = vor.u32 %v9668_v44, %v6772_v43  ;;  %v6874_v55 = vld [vmem:[%s15178_s1 + $0x10c] sm:$0xf0]  ;;  %v6752_v60 = vld [vmem:[%s15178_s1 + $0x8] sm:$0xf]  ;;  %v7037_v62 = vor.u32 %v9731_v48, %v7034_v50 }
  0x72   :  { %1386 = vmatpush.bf16.msrb.mxu3 %v6929_v30  ;;  %v9691_v54 = vld [vmem:[%s15178_s1 + $0xfc] sm:$0xf]  ;;  %v6901_v63 = vor.u32 %v9699_v52, %v6900_v51  ;;  %v9726_v0 = vld [vmem:[%s15178_s1 + $0x214] sm:$0xf]  ;;  %v7040_v1 = vld [vmem:[%s15178_s1 + $0x240] sm:$0xf] }
  0x73   :  { %v9663_v61 = vld [vmem:[%s15178_s1 + $0x18] sm:$0xf0]  ;;  %v9734_v2 = vld [vmem:[%s15178_s1 + $0x250] sm:$0xf0]  ;;  %v6877_v3 = vor.u32 %v9691_v54, %v6874_v55  ;;  %v7014_v4 = vld [vmem:[%s15178_s1 + $0x224] sm:$0xf0] }
  0x74   :  { %1399 = vmatpush.bf16.msrb.mxu0 %v6793_v36  ;;  %v6880_v5 = vld [vmem:[%s15178_s1 + $0x100] sm:$0xf]  ;;  %v9694_v6 = vld [vmem:[%s15178_s1 + $0x110] sm:$0xf0]  ;;  %v6753_v7 = vor.u32 %v9663_v61, %v6752_v60  ;;  %v6854_v9 = vld [vmem:[%s15178_s1 + $0xe4] sm:$0xf0]  ;;  %v7041_v10 = vor.u32 %v9734_v2, %v7040_v1  ;;  %v7017_v11 = vor.u32 %v9726_v0, %v7014_v4 }
  0x75   :  { %1372 = vmatpush.bf16.msrb.mxu1 %v6769_v40  ;;  %1414 = vmatpush.bf16.msrb.mxu2 %v6933_v41  ;;  %v9686_v8 = vld [vmem:[%s15178_s1 + $0xd4] sm:$0xf]  ;;  %v6881_v12 = vor.u32 %v9694_v6, %v6880_v5  ;;  %v9721_v13 = vld [vmem:[%s15178_s1 + $0x1ec] sm:$0xf]  ;;  %v7020_v14 = vld [vmem:[%s15178_s1 + $0x218] sm:$0xf] }
  0x76   :  { %1387 = vmatpush.bf16.msrb.mxu3 %v6909_v45  ;;  %v9729_v15 = vld [vmem:[%s15178_s1 + $0x228] sm:$0xf0]  ;;  %v6857_v16 = vor.u32 %v9686_v8, %v6854_v9  ;;  %v6994_v17 = vld [vmem:[%s15178_s1 + $0x1fc] sm:$0xf0]  ;;  %v6860_v18 = vld [vmem:[%s15178_s1 + $0xd8] sm:$0xf] }
  0x77   :  { %v9689_v19 = vld [vmem:[%s15178_s1 + $0xe8] sm:$0xf0]  ;;  %v6834_v21 = vld [vmem:[%s15178_s1 + $0xbc] sm:$0xf0]  ;;  %v7021_v22 = vor.u32 %v9729_v15, %v7020_v14  ;;  %v6997_v23 = vor.u32 %v9721_v13, %v6994_v17  ;;  %v9716_v25 = vld [vmem:[%s15178_s1 + $0x1c4] sm:$0xf] }
  0x78   :  { %1400 = vmatpush.bf16.msrb.mxu0 %v6773_v53  ;;  %v9681_v20 = vld [vmem:[%s15178_s1 + $0xac] sm:$0xf]  ;;  %v6861_v24 = vor.u32 %v9689_v19, %v6860_v18  ;;  %v7000_v26 = vld [vmem:[%s15178_s1 + $0x1f0] sm:$0xf]  ;;  %v9724_v27 = vld [vmem:[%s15178_s1 + $0x200] sm:$0xf0] }
  0x79   :  { %1373 = vmatpush.bf16.msrb.mxu1 %v6749_v58  ;;  %1415 = vmatpush.bf16.msrb.mxu2 %v6913_v59  ;;  %v6837_v28 = vor.u32 %v9681_v20, %v6834_v21  ;;  %v6974_v29 = vld [vmem:[%s15178_s1 + $0x1d4] sm:$0xf0]  ;;  %v6840_v30 = vld [vmem:[%s15178_s1 + $0xb0] sm:$0xf]  ;;  %v9684_v31 = vld [vmem:[%s15178_s1 + $0xc0] sm:$0xf0]  ;;  %v7001_v34 = vor.u32 %v9724_v27, %v7000_v26 }
  0x7a   :  { %1422 = vmatpush.bf16.msra.mxu3 %v6897_v49  ;;  %v9676_v32 = vld [vmem:[%s15178_s1 + $0x84] sm:$0xf]  ;;  %v6814_v33 = vld [vmem:[%s15178_s1 + $0x94] sm:$0xf0]  ;;  %v6977_v35 = vor.u32 %v9716_v25, %v6974_v29  ;;  %v6841_v36 = vor.u32 %v9684_v31, %v6840_v30  ;;  %v9711_v37 = vld [vmem:[%s15178_s1 + $0x19c] sm:$0xf] }
  0x7b   :  { %7043 = vmatmul.msk.bf16.vlgmr.msrb.gmra.mxu3 %vm793_vm0, %v10706_v57  ;;  %v6980_v38 = vld [vmem:[%s15178_s1 + $0x1c8] sm:$0xf]  ;;  %v9719_v39 = vld [vmem:[%s15178_s1 + $0x1d8] sm:$0xf0]  ;;  %v6817_v40 = vor.u32 %v9676_v32, %v6814_v33  ;;  %v6954_v41 = vld [vmem:[%s15178_s1 + $0x1ac] sm:$0xf0] }
  0x7c   :  { %1401 = vmatpush.bf16.msrb.mxu0 %v6753_v7  ;;  %1374 = vmatmul.bf16.vlgmr.msrb.gmra.mxu1 %v10704_v56  ;;  %v6820_v42 = vld [vmem:[%s15178_s1 + $0x88] sm:$0xf]  ;;  %v9679_v43 = vld [vmem:[%s15178_s1 + $0x98] sm:$0xf0]  ;;  %v6794_v45 = vld [vmem:[%s15178_s1 + $0x6c] sm:$0xf0]  ;;  %v6981_v46 = vor.u32 %v9719_v39, %v6980_v38  ;;  %v6957_v47 = vor.u32 %v9711_v37, %v6954_v41 }
  0x7d   :  { %1437 = vmatpush.bf16.msra.mxu1 %v7037_v62  ;;  %1450 = vmatpush.bf16.msra.mxu2 %v6901_v63  ;;  %v9671_v44 = vld [vmem:[%s15178_s1 + $0x5c] sm:$0xf]  ;;  %v6821_v48 = vor.u32 %v9679_v43, %v6820_v42  ;;  %v9706_v49 = vld [vmem:[%s15178_s1 + $0x174] sm:$0xf]  ;;  %v6960_v50 = vld [vmem:[%s15178_s1 + $0x1a0] sm:$0xf] }
  0x7e   :  { %1423 = vmatpush.bf16.msra.mxu3 %v6877_v3  ;;  %7044 = vmatmul.msk.bf16.vlgmr.msrb.gmra.mxu2 %vm793_vm0, %v10706_v57  ;;  %v9714_v51 = vld [vmem:[%s15178_s1 + $0x1b0] sm:$0xf0]  ;;  %v6797_v52 = vor.u32 %v9671_v44, %v6794_v45  ;;  %v6934_v53 = vld [vmem:[%s15178_s1 + $0x184] sm:$0xf0]  ;;  %v6800_v54 = vld [vmem:[%s15178_s1 + $0x60] sm:$0xf] }
  0x7f   :  { %1402 = vmatmul.bf16.vlgmr.msrb.gmra.mxu0 %v10704_v56  ;;  %v9674_v55 = vld [vmem:[%s15178_s1 + $0x70] sm:$0xf0]  ;;  %v6774_v59 = vld [vmem:[%s15178_s1 + $0x44] sm:$0xf0]  ;;  %v6961_v60 = vor.u32 %v9714_v51, %v6960_v50  ;;  %v6937_v61 = vor.u32 %v9706_v49, %v6934_v53  ;;  %v9661_v63 = vld [vmem:[%s15178_s1 + $0xc] sm:$0xf] }
  0x80   :  { %1465 = vmatpush.bf16.msra.mxu0 %v7041_v10  ;;  %v9666_v58 = vld [vmem:[%s15178_s1 + $0x34] sm:$0xf]  ;;  %v6801_v62 = vor.u32 %v9674_v55, %v6800_v54  ;;  %v9701_v0 = vld [vmem:[%s15178_s1 + $0x14c] sm:$0xf]  ;;  %v6940_v1 = vld [vmem:[%s15178_s1 + $0x178] sm:$0xf] }
  0x81   :  { %1438 = vmatpush.bf16.msra.mxu1 %v7017_v11  ;;  %1451 = vmatpush.bf16.msra.mxu2 %v6881_v12  ;;  %v9709_v2 = vld [vmem:[%s15178_s1 + $0x188] sm:$0xf0]  ;;  %v6777_v3 = vor.u32 %v9666_v58, %v6774_v59  ;;  %v6914_v4 = vld [vmem:[%s15178_s1 + $0x15c] sm:$0xf0]  ;;  %v6780_v5 = vld [vmem:[%s15178_s1 + $0x38] sm:$0xf] }
  0x82   :  { %1424 = vmatpush.bf16.msra.mxu3 %v6857_v16  ;;  %v9669_v6 = vld [vmem:[%s15178_s1 + $0x48] sm:$0xf0]  ;;  %v6754_v7 = vld [vmem:[%s15178_s1 + $0x1c] sm:$0xf0]  ;;  %v7189_v8 = vld [vmem:[%s15178_s1 + $0x370] sm:$0xf]  ;;  %v6941_v10 = vor.u32 %v9709_v2, %v6940_v1  ;;  %v6917_v14 = vor.u32 %v9701_v0, %v6914_v4 }
  0x83   :  { %v9772_v9 = vld [vmem:[%s15178_s1 + $0x380] sm:$0xf0]  ;;  %v7329_v11 = vld [vmem:[%s15178_s1 + $0x488] sm:$0xf]  ;;  %v9807_v12 = vld [vmem:[%s15178_s1 + $0x498] sm:$0xf0]  ;;  %v6781_v15 = vor.u32 %v9669_v6, %v6780_v5  ;;  %v6757_v19 = vor.u32 %v9661_v63, %v6754_v7 }
  0x84   :  { %1466 = vmatpush.bf16.msra.mxu0 %v7021_v22  ;;  %v6760_v13 = vld [vmem:[%s15178_s1 + $0x10] sm:$0xf]  ;;  %v9664_v16 = vld [vmem:[%s15178_s1 + $0x20] sm:$0xf0]  ;;  %v7190_v20 = vor.u32 %v9772_v9, %v7189_v8  ;;  %v7169_v21 = vld [vmem:[%s15178_s1 + $0x348] sm:$0xf] }
  0x85   :  { %1439 = vmatpush.bf16.msra.mxu1 %v6997_v23  ;;  %1452 = vmatpush.bf16.msra.mxu2 %v6861_v24  ;;  %v6920_v17 = vld [vmem:[%s15178_s1 + $0x150] sm:$0xf]  ;;  %v9704_v18 = vld [vmem:[%s15178_s1 + $0x160] sm:$0xf0]  ;;  %v9770_v22 = vld [vmem:[%s15178_s1 + $0x374] sm:$0xf]  ;;  %v7330_v24 = vor.u32 %v9807_v12, %v7329_v11  ;;  %v6761_v31 = vor.u32 %v9664_v16, %v6760_v13 }
  0x86   :  { %1425 = vmatpush.bf16.msra.mxu3 %v6837_v28  ;;  %v7191_v23 = vld [vmem:[%s15178_s1 + $0x384] sm:$0xf0]  ;;  %v9767_v25 = vld [vmem:[%s15178_s1 + $0x358] sm:$0xf0]  ;;  %v9805_v26 = vld [vmem:[%s15178_s1 + $0x48c] sm:$0xf]  ;;  %v6921_v28 = vor.u32 %v9704_v18, %v6920_v17 }
  0x87   :  { %v7331_v27 = vld [vmem:[%s15178_s1 + $0x49c] sm:$0xf0]  ;;  %v9802_v30 = vld [vmem:[%s15178_s1 + $0x470] sm:$0xf0]  ;;  %v7194_v32 = vor.u32 %v9770_v22, %v7191_v23  ;;  %v7170_v33 = vor.u32 %v9767_v25, %v7169_v21  ;;  %v7311_v41 = vld [vmem:[%s15178_s1 + $0x474] sm:$0xf0] }
  0x88   :  { %1467 = vmatpush.bf16.msra.mxu0 %v7001_v34  ;;  %v7309_v29 = vld [vmem:[%s15178_s1 + $0x460] sm:$0xf]  ;;  %v7334_v34 = vor.u32 %v9805_v26, %v7331_v27  ;;  %v9762_v39 = vld [vmem:[%s15178_s1 + $0x330] sm:$0xf0]  ;;  %v7289_v42 = vld [vmem:[%s15178_s1 + $0x438] sm:$0xf] }
  0x89   :  { %1440 = vmatpush.bf16.msra.mxu1 %v6977_v35  ;;  %1453 = vmatpush.bf16.msra.mxu2 %v6841_v36  ;;  %v7149_v35 = vld [vmem:[%s15178_s1 + $0x320] sm:$0xf]  ;;  %v9765_v36 = vld [vmem:[%s15178_s1 + $0x34c] sm:$0xf]  ;;  %v7310_v38 = vor.u32 %v9802_v30, %v7309_v29  ;;  %v7151_v49 = vld [vmem:[%s15178_s1 + $0x334] sm:$0xf0] }
  0x8a   :  { %1426 = vmatpush.bf16.msra.mxu3 %v6817_v40  ;;  %v7171_v37 = vld [vmem:[%s15178_s1 + $0x35c] sm:$0xf0]  ;;  %v9800_v40 = vld [vmem:[%s15178_s1 + $0x464] sm:$0xf]  ;;  %v9797_v43 = vld [vmem:[%s15178_s1 + $0x448] sm:$0xf0]  ;;  %v7150_v45 = vor.u32 %v9762_v39, %v7149_v35 }
  0x8b   :  { %v7174_v44 = vor.u32 %v9765_v36, %v7171_v37  ;;  %v7290_v50 = vor.u32 %v9797_v43, %v7289_v42  ;;  %v9757_v51 = vld [vmem:[%s15178_s1 + $0x308] sm:$0xf0]  ;;  %v7291_v53 = vld [vmem:[%s15178_s1 + $0x44c] sm:$0xf0]  ;;  %v9792_v55 = vld [vmem:[%s15178_s1 + $0x420] sm:$0xf0] }
  0x8c   :  { %1468 = vmatpush.bf16.msra.mxu0 %v6981_v46  ;;  %v7314_v46 = vor.u32 %v9800_v40, %v7311_v41  ;;  %v7269_v54 = vld [vmem:[%s15178_s1 + $0x410] sm:$0xf]  ;;  %v9752_v1 = vld [vmem:[%s15178_s1 + $0x2e0] sm:$0xf0]  ;;  %v9790_v2 = vld [vmem:[%s15178_s1 + $0x414] sm:$0xf] }
  0x8d   :  { %1441 = vmatpush.bf16.msra.mxu1 %v6957_v47  ;;  %1454 = vmatpush.bf16.msra.mxu2 %v6821_v48  ;;  %v7129_v47 = vld [vmem:[%s15178_s1 + $0x2f8] sm:$0xf]  ;;  %v9760_v48 = vld [vmem:[%s15178_s1 + $0x324] sm:$0xf]  ;;  %v7131_v63 = vld [vmem:[%s15178_s1 + $0x30c] sm:$0xf0]  ;;  %v7270_v0 = vor.u32 %v9792_v55, %v7269_v54 }
  0x8e   :  { %1427 = vmatpush.bf16.msra.mxu3 %v6797_v52  ;;  %v9795_v52 = vld [vmem:[%s15178_s1 + $0x43c] sm:$0xf]  ;;  %v7154_v58 = vor.u32 %v9760_v48, %v7151_v49  ;;  %v7130_v59 = vor.u32 %v9757_v51, %v7129_v47  ;;  %v7249_v4 = vld [vmem:[%s15178_s1 + $0x3e8] sm:$0xf]  ;;  %v7229_v16 = vld [vmem:[%s15178_s1 + $0x3c0] sm:$0xf] }
  0x8f   :  { %v9787_v5 = vld [vmem:[%s15178_s1 + $0x3f8] sm:$0xf0]  ;;  %v7089_v9 = vld [vmem:[%s15178_s1 + $0x2a8] sm:$0xf]  ;;  %v9782_v17 = vld [vmem:[%s15178_s1 + $0x3d0] sm:$0xf0] }
  0x90   :  { %1469 = vmatpush.bf16.msra.mxu0 %v6961_v60  ;;  %v7294_v60 = vor.u32 %v9795_v52, %v7291_v53  ;;  %v7111_v11 = vld [vmem:[%s15178_s1 + $0x2e4] sm:$0xf0]  ;;  %v7250_v12 = vor.u32 %v9787_v5, %v7249_v4  ;;  %v9747_v13 = vld [vmem:[%s15178_s1 + $0x2b8] sm:$0xf0]  ;;  %v7069_v21 = vld [vmem:[%s15178_s1 + $0x280] sm:$0xf] }
  0x91   :  { %1442 = vmatpush.bf16.msra.mxu1 %v6937_v61  ;;  %1455 = vmatpush.bf16.msra.mxu2 %v6801_v62  ;;  %v7109_v61 = vld [vmem:[%s15178_s1 + $0x2d0] sm:$0xf]  ;;  %v9755_v62 = vld [vmem:[%s15178_s1 + $0x2fc] sm:$0xf]  ;;  %v9745_v22 = vld [vmem:[%s15178_s1 + $0x2ac] sm:$0xf] }
  0x92   :  { %1428 = vmatpush.bf16.msra.mxu3 %v6777_v3  ;;  %v7271_v3 = vld [vmem:[%s15178_s1 + $0x424] sm:$0xf0]  ;;  %v7134_v6 = vor.u32 %v9755_v62, %v7131_v63  ;;  %v7110_v7 = vor.u32 %v9752_v1, %v7109_v61  ;;  %v7091_v23 = vld [vmem:[%s15178_s1 + $0x2bc] sm:$0xf0]  ;;  %v9742_v25 = vld [vmem:[%s15178_s1 + $0x290] sm:$0xf0] }
  0x93   :  { %v7274_v8 = vor.u32 %v9790_v2, %v7271_v3  ;;  %v9780_v26 = vld [vmem:[%s15178_s1 + $0x3c4] sm:$0xf]  ;;  %v7231_v27 = vld [vmem:[%s15178_s1 + $0x3d4] sm:$0xf0]  ;;  %v9777_v29 = vld [vmem:[%s15178_s1 + $0x3a8] sm:$0xf0]  ;;  %v7094_v30 = vor.u32 %v9745_v22, %v7091_v23 }
  0x94   :  { %1470 = vmatpush.bf16.msra.mxu0 %v6941_v10  ;;  %v9750_v10 = vld [vmem:[%s15178_s1 + $0x2d4] sm:$0xf]  ;;  %v7234_v35 = vor.u32 %v9780_v26, %v7231_v27  ;;  %v9737_v36 = vld [vmem:[%s15178_s1 + $0x268] sm:$0xf0]  ;;  %v9740_v37 = vld [vmem:[%s15178_s1 + $0x284] sm:$0xf] }
  0x95   :  { %1443 = vmatpush.bf16.msra.mxu1 %v6917_v14  ;;  %1456 = vmatpush.bf16.msra.mxu2 %v6781_v15  ;;  %v9785_v14 = vld [vmem:[%s15178_s1 + $0x3ec] sm:$0xf]  ;;  %v7251_v15 = vld [vmem:[%s15178_s1 + $0x3fc] sm:$0xf0]  ;;  %v7114_v18 = vor.u32 %v9750_v10, %v7111_v11  ;;  %v9775_v40 = vld [vmem:[%s15178_s1 + $0x39c] sm:$0xf] }
  0x96   :  { %1429 = vmatpush.bf16.msra.mxu3 %v6757_v19  ;;  %v7090_v19 = vor.u32 %v9747_v13, %v7089_v9  ;;  %v7211_v41 = vld [vmem:[%s15178_s1 + $0x3ac] sm:$0xf0]  ;;  %v9768_v49 = vld [vmem:[%s15178_s1 + $0x360] sm:$0xf0]  ;;  %vm2066_vm1 = vcmask 1042434   ;;  %vm2069_vm3 = vcmask 1046534  }
  0x97   :  { %v7337_v42 = vld [vmem:[%s15178_s1 + $0x490] sm:$0xf]  ;;  %v7214_v53 = vor.u32 %v9775_v40, %v7211_v41  ;;  %vm2067_vm2 = vsmask.f32 2304  ;;  %v9763_v61 = vld [vmem:[%s15178_s1 + $0x338] sm:$0xf0] }
  0x98   :  { %1471 = vmatpush.bf16.msra.mxu0 %v6921_v28  ;;  %7045 = vmatmul.msk.bf16.vlgmr.msra.gmra.mxu1 %vm793_vm0, %v10706_v57  ;;  %v7209_v28 = vld [vmem:[%s15178_s1 + $0x398] sm:$0xf]  ;;  %v7177_v48 = vld [vmem:[%s15178_s1 + $0x350] sm:$0xf]  ;;  %v7317_v62 = vld [vmem:[%s15178_s1 + $0x468] sm:$0xf] }
  0x99   :  { %1884 = vmatpush.bf16.msrb.mxu1 %v7190_v20  ;;  %1457 = vmatpush.bf16.msra.mxu2 %v6761_v31  ;;  %v7254_v20 = vor.u32 %v9785_v14, %v7251_v15  ;;  %v7197_v31 = vld [vmem:[%s15178_s1 + $0x378] sm:$0xf]  ;;  %v7210_v39 = vor.u32 %v9777_v29, %v7209_v28  ;;  %v7051_v54 = vld [vmem:[%s15178_s1 + $0x26c] sm:$0xf0]  ;;  %vm2070_vm4 = vsmask.f32 6400  ;;  %v7178_v63 = vor.u32 %v9768_v49, %v7177_v48  ;;  %vm11628_vm5 = vmand %vm2066_vm1, %vm2067_vm2 }
  0x9a   :  { %1899 = vmatpush.bf16.msrb.mxu3 %v7330_v24  ;;  %v7230_v24 = vor.u32 %v9782_v17, %v7229_v16  ;;  %v9766_v1 = vld [vmem:[%s15178_s1 + $0x354] sm:$0xf]  ;;  %v7179_v2 = vld [vmem:[%s15178_s1 + $0x364] sm:$0xf0]  ;;  %vm11633_vm6 = vmand %vm2069_vm3, %vm2070_vm4  ;;  %vm2516_vm8 = vcmask 1046528   ;;  %vm6107_vm9 = vcmask 261120  }
  0x9b   :  { %7046 = vmatmul.msk.bf16.vlgmr.msra.gmra.mxu0 %vm793_vm0, %v10706_v57  ;;  %1430 = vmatmul.bf16.vlgmr.msra.gmra.mxu3 %v10704_v56  ;;  %v9806_v3 = vld [vmem:[%s15178_s1 + $0x494] sm:$0xf]  ;;  %v7339_v4 = vld [vmem:[%s15178_s1 + $0x4a4] sm:$0xf0]  ;;  %v7182_v10 = vor.u32 %v9766_v1, %v7179_v2  ;;  %v7137_v11 = vld [vmem:[%s15178_s1 + $0x300] sm:$0xf] }
  0x9c   :  { %1912 = vmatpush.bf16.msrb.mxu0 %v7194_v32  ;;  %1458 = vmatmul.bf16.vlgmr.msra.gmra.mxu2 %v10704_v56  ;;  %v9773_v32 = vld [vmem:[%s15178_s1 + $0x388] sm:$0xf0]  ;;  %v7297_v13 = vld [vmem:[%s15178_s1 + $0x440] sm:$0xf]  ;;  %v2091_v16 = vld [vmem:[#allocation2 + $0x64] sm:$0x44] }
  0x9d   :  { %1885 = vmatpush.bf16.msrb.mxu1 %v7170_v33  ;;  %1927 = vmatpush.bf16.msrb.mxu2 %v7334_v34  ;;  %v7049_v33 = vld [vmem:[%s15178_s1 + $0x258] sm:$0xf]  ;;  %v7070_v34 = vor.u32 %v9742_v25, %v7069_v21  ;;  %v7198_v43 = vor.u32 %v9773_v32, %v7197_v31  ;;  %v820_v55 = vpop.f32.mrf.mxu1  ;;  %v7159_v21 = vld [vmem:[%s15178_s1 + $0x33c] sm:$0xf0]  ;;  %v9801_v23 = vld [vmem:[%s15178_s1 + $0x46c] sm:$0xf] }
  0x9e   :  { %1900 = vmatpush.bf16.msrb.mxu3 %v7310_v38  ;;  %v7071_v38 = vld [vmem:[%s15178_s1 + $0x294] sm:$0xf0]  ;;  %v7050_v52 = vor.u32 %v9737_v36, %v7049_v33  ;;  %vm11669_vm7 = vmor %vm11633_vm6, %vm11628_vm5  ;;  %v9753_v31 = vld [vmem:[%s15178_s1 + $0x2e8] sm:$0xf0]  ;;  %s10409_s21 = smov [#allocation3]   ;;  %s6147_s24 = sshll.u32 %s15184_s7, 4  ;;  %s6148_s24 = int_to_ptr.hbm [resolvable:$true] %s6147_s24 }
  0x9f   :  { %v7074_v47 = vor.u32 %v9740_v37, %v7071_v38  ;;  %v2092_v27 = vsel %vm11669_vm7, 0, %v2091_v16  ;;  %v7277_v32 = vld [vmem:[%s15178_s1 + $0x418] sm:$0xf]  ;;  %v9793_v33 = vld [vmem:[%s15178_s1 + $0x428] sm:$0xf0]  ;;  %s6145_s22 = sshll.u32 %s10409_s21, 4  ;;  %s6146_s22 = int_to_ptr.vmem [resolvable:$true] %s6145_s22 }
  0xa0   :  { %1913 = vmatpush.bf16.msrb.mxu0 %v7174_v44  ;;  %v9808_v44 = vld [vmem:[%s15178_s1 + $0x4a0] sm:$0xf0]  ;;  %v806_v51 = vpop.f32.mrf.mxu0  ;;  %v7299_v41 = vld [vmem:[%s15178_s1 + $0x454] sm:$0xf0]  ;;  %2093 = vst [vmem:[#allocation2 + $0x64] sm:$0x44] %v2092_v27 }
  0xa1   :  { %1886 = vmatpush.bf16.msrb.mxu1 %v7150_v45  ;;  %1928 = vmatpush.bf16.msrb.mxu2 %v7314_v46  ;;  %v9771_v45 = vld [vmem:[%s15178_s1 + $0x37c] sm:$0xf]  ;;  %v7199_v46 = vld [vmem:[%s15178_s1 + $0x38c] sm:$0xf0]  ;;  %v9756_v38 = vld [vmem:[%s15178_s1 + $0x304] sm:$0xf] }
  0xa2   :  { %1901 = vmatpush.bf16.msrb.mxu3 %v7290_v50  ;;  %v9735_v50 = vld [vmem:[%s15178_s1 + $0x25c] sm:$0xf]  ;;  %v9796_v40 = vld [vmem:[%s15178_s1 + $0x444] sm:$0xf]  ;;  %s10410_s25 = smov 128   ;;  %s10411_s26 = smov 8  }
  0xa3   :  { %v9783_v1 = vld [vmem:[%s15178_s1 + $0x3d8] sm:$0xf0] }
  0xa4   :  { %1914 = vmatpush.bf16.msrb.mxu0 %v7154_v58  ;;  %v7338_v58 = vor.u32 %v9808_v44, %v7337_v42 }
  0xa5   :  { %1887 = vmatpush.bf16.msrb.mxu1 %v7130_v59  ;;  %1929 = vmatpush.bf16.msrb.mxu2 %v7294_v60  ;;  %v7202_v59 = vor.u32 %v9771_v45, %v7199_v46  ;;  %v7157_v60 = vld [vmem:[%s15178_s1 + $0x328] sm:$0xf]  ;;  %v7097_v45 = vld [vmem:[%s15178_s1 + $0x2b0] sm:$0xf] }
  0xa6   :  { %1902 = vmatpush.bf16.msrb.mxu3 %v7270_v0  ;;  %v9803_v0 = vld [vmem:[%s15178_s1 + $0x478] sm:$0xf0]  ;;  %v848_v15 = vpop.f32.mrf.mxu3  ;;  %v7158_v17 = vor.u32 %v9763_v61, %v7157_v60  ;;  %v7257_v46 = vld [vmem:[%s15178_s1 + $0x3f0] sm:$0xf] }
  0xa7   :  { %v7318_v9 = vor.u32 %v9803_v0, %v7317_v62  ;;  %v834_v14 = vpop.f32.mrf.mxu2  ;;  %v7237_v0 = vld [vmem:[%s15178_s1 + $0x3c8] sm:$0xf] }
  0xa8   :  { %1915 = vmatpush.bf16.msrb.mxu0 %v7134_v6  ;;  %v7054_v6 = vor.u32 %v9735_v50, %v7051_v54  ;;  %v849_v22 = vadd.f32 %v848_v15, %v834_v14  ;;  %v7302_v50 = vor.u32 %v9796_v40, %v7299_v41  ;;  %v7217_v14 = vld [vmem:[%s15178_s1 + $0x3a0] sm:$0xf]  ;;  %v9769_v41 = vld [vmem:[%s15178_s1 + $0x368] sm:$0xf0] }
  0xa9   :  { %1888 = vmatpush.bf16.msrb.mxu1 %v7110_v7  ;;  %1930 = vmatpush.bf16.msrb.mxu2 %v7274_v8  ;;  %v821_v7 = vadd.f32 %v820_v55, %v806_v51  ;;  %v9788_v51 = vld [vmem:[%s15178_s1 + $0x400] sm:$0xf0]  ;;  %v9786_v8 = vld [vmem:[%s15178_s1 + $0x3f4] sm:$0xf] }
  0xaa   :  { %1903 = vmatpush.bf16.msrb.mxu3 %v7250_v12  ;;  %v9758_v12 = vld [vmem:[%s15178_s1 + $0x310] sm:$0xf0]  ;;  %v9748_v55 = vld [vmem:[%s15178_s1 + $0x2c0] sm:$0xf0]  ;;  %v7258_v61 = vor.u32 %v9788_v51, %v7257_v46  ;;  %v7494_v46 = vld [vmem:[%s15178_s1 + $0x5c8] sm:$0xf] }
  0xab   :  { %v2053_v26 = vpack.c.bf16 %v849_v22, %v821_v7  ;;  %v7138_v36 = vor.u32 %v9758_v12, %v7137_v11  ;;  %v7098_v2 = vor.u32 %v9748_v55, %v7097_v45  ;;  %v9743_v7 = vld [vmem:[%s15178_s1 + $0x298] sm:$0xf0]  ;;  %v7057_v12 = vld [vmem:[%s15178_s1 + $0x260] sm:$0xf]  ;;  %v9877_v55 = vld [vmem:[%s15178_s1 + $0x6c8] sm:$0xf0] }
  0xac   :  { %1916 = vmatpush.bf16.msrb.mxu0 %v7114_v18  ;;  %v7342_v18 = vor.u32 %v9806_v3, %v7339_v4  ;;  %v9746_v4 = vld [vmem:[%s15178_s1 + $0x2b4] sm:$0xf]  ;;  %v7205_v22 = vld [vmem:[%s15178_s1 + $0x380] sm:$0xf] }
  0xad   :  { %1889 = vmatpush.bf16.msrb.mxu1 %v7090_v19  ;;  %1931 = vmatpush.bf16.msrb.mxu2 %v7254_v20  ;;  %v9798_v19 = vld [vmem:[%s15178_s1 + $0x450] sm:$0xf0]  ;;  %v9761_v20 = vld [vmem:[%s15178_s1 + $0x32c] sm:$0xf]  ;;  %2060 = vst [vmem:[#allocation2 + $0x50] sm:$0xff] %v2053_v26 }
  0xae   :  { %1904 = vmatpush.bf16.msrb.mxu3 %v7230_v24  ;;  %v7319_v24 = vld [vmem:[%s15178_s1 + $0x47c] sm:$0xf0]  ;;  %v7298_v28 = vor.u32 %v9798_v19, %v7297_v13  ;;  %v7162_v29 = vor.u32 %v9761_v20, %v7159_v21  ;;  %v850_v48 = vpop.f32.mrf.mxu3  ;;  %v9738_v13 = vld [vmem:[%s15178_s1 + $0x270] sm:$0xf0]  ;;  %v9781_v20 = vld [vmem:[%s15178_s1 + $0x3cc] sm:$0xf] }
  0xaf   :  { %v7322_v37 = vor.u32 %v9801_v23, %v7319_v24  ;;  %v7079_v19 = vld [vmem:[%s15178_s1 + $0x29c] sm:$0xf0]  ;;  %v9774_v23 = vld [vmem:[%s15178_s1 + $0x390] sm:$0xf0]  ;;  %v7345_v24 = vld [vmem:[%s15178_s1 + $0x498] sm:$0xf] }
  0xb0   :  { %1917 = vmatpush.bf16.msrb.mxu0 %v7094_v30  ;;  %v7117_v30 = vld [vmem:[%s15178_s1 + $0x2d8] sm:$0xf]  ;;  %v7239_v21 = vld [vmem:[%s15178_s1 + $0x3dc] sm:$0xf0]  ;;  %v9809_v26 = vld [vmem:[%s15178_s1 + $0x4a8] sm:$0xf0] }
  0xb1   :  { %1890 = vmatpush.bf16.msrb.mxu1 %v7070_v34  ;;  %1932 = vmatpush.bf16.msrb.mxu2 %v7234_v35  ;;  %v808_v34 = vpop.f32.mrf.mxu0  ;;  %v822_v35 = vpop.f32.mrf.mxu1  ;;  %v7118_v49 = vor.u32 %v9753_v31, %v7117_v30  ;;  %v7058_v30 = vor.u32 %v9738_v13, %v7057_v12  ;;  %v7242_v31 = vor.u32 %v9781_v20, %v7239_v21  ;;  %v7594_v12 = vld [vmem:[%s15178_s1 + $0x690] sm:$0xf]  ;;  %v9872_v13 = vld [vmem:[%s15178_s1 + $0x6a0] sm:$0xf0] }
  0xb2   :  { %1905 = vmatpush.bf16.msrb.mxu3 %v7210_v39  ;;  %v7139_v39 = vld [vmem:[%s15178_s1 + $0x314] sm:$0xf0]  ;;  %v823_v42 = vadd.f32 %v822_v35, %v808_v34  ;;  %v7206_v35 = vor.u32 %v9774_v23, %v7205_v22  ;;  %v7595_v21 = vor.u32 %v9872_v13, %v7594_v12 }
  0xb3   :  { %v7142_v44 = vor.u32 %v9756_v38, %v7139_v39  ;;  %v7219_v34 = vld [vmem:[%s15178_s1 + $0x3b4] sm:$0xf0]  ;;  %v7634_v38 = vld [vmem:[%s15178_s1 + $0x6e0] sm:$0xf]  ;;  %v9882_v39 = vld [vmem:[%s15178_s1 + $0x6f0] sm:$0xf0] }
  0xb4   :  { %1918 = vmatpush.bf16.msrb.mxu0 %v7074_v47  ;;  %v836_v47 = vpop.f32.mrf.mxu2  ;;  %v7374_v13 = vld [vmem:[%s15178_s1 + $0x4d8] sm:$0xf] }
  0xb5   :  { %1891 = vmatpush.bf16.msrb.mxu1 %v7050_v52  ;;  %1933 = vmatpush.bf16.msrb.mxu2 %v7214_v53  ;;  %v9751_v52 = vld [vmem:[%s15178_s1 + $0x2dc] sm:$0xf]  ;;  %v7119_v53 = vld [vmem:[%s15178_s1 + $0x2ec] sm:$0xf0]  ;;  %v851_v54 = vadd.f32 %v850_v48, %v836_v47 }
  0xb6   :  { %1940 = vmatpush.bf16.msra.mxu3 %v7198_v43  ;;  %v7278_v43 = vor.u32 %v9793_v33, %v7277_v32  ;;  %v7122_v62 = vor.u32 %v9751_v52, %v7119_v53  ;;  %v7059_v32 = vld [vmem:[%s15178_s1 + $0x274] sm:$0xf0]  ;;  %v9776_v33 = vld [vmem:[%s15178_s1 + $0x3a4] sm:$0xf]  ;;  %v9847_v47 = vld [vmem:[%s15178_s1 + $0x5d8] sm:$0xf0] }
  0xb7   :  { %7347 = vmatmul.msk.bf16.vlgmr.msrb.gmra.mxu3 %vm793_vm0, %v10706_v57  ;;  %v2056_v60 = vpack.c.bf16 %v851_v54, %v823_v42  ;;  %v7325_v42 = vld [vmem:[%s15178_s1 + $0x470] sm:$0xf]  ;;  %v7222_v48 = vor.u32 %v9776_v33, %v7219_v34  ;;  %v7614_v54 = vld [vmem:[%s15178_s1 + $0x6b8] sm:$0xf]  ;;  %v9789_v34 = vld [vmem:[%s15178_s1 + $0x408] sm:$0xf0] }
  0xb8   :  { %7348 = vmatmul.msk.bf16.vlgmr.msrb.gmra.mxu2 %vm793_vm0, %v10706_v57  ;;  %1919 = vmatpush.bf16.msrb.mxu0 %v7054_v6  ;;  %v7099_v6 = vld [vmem:[%s15178_s1 + $0x2c4] sm:$0xf0]  ;;  %v7265_v33 = vld [vmem:[%s15178_s1 + $0x3f8] sm:$0xf] }
  0xb9   :  { %1955 = vmatpush.bf16.msra.mxu1 %v7338_v58  ;;  %1968 = vmatpush.bf16.msra.mxu2 %v7202_v59  ;;  %v9791_v58 = vld [vmem:[%s15178_s1 + $0x41c] sm:$0xf]  ;;  %v7279_v59 = vld [vmem:[%s15178_s1 + $0x42c] sm:$0xf0]  ;;  %2063 = vst [vmem:[#allocation2 + $0x64] sm:$0x33] %v2056_v60  ;;  %v7102_v11 = vor.u32 %v9746_v4, %v7099_v6  ;;  %v7615_v4 = vor.u32 %v9877_v55, %v7614_v54 }
  0xba   :  { %1941 = vmatpush.bf16.msra.mxu3 %v7178_v63  ;;  %1892 = vmatmul.bf16.vlgmr.msrb.gmra.mxu1 %v10704_v56  ;;  %v7077_v63 = vld [vmem:[%s15178_s1 + $0x288] sm:$0xf]  ;;  %v7282_v3 = vor.u32 %v9791_v58, %v7279_v59  ;;  %v2094_v60 = vld [vmem:[#allocation2 + $0x6c] sm:$0x44]  ;;  %v9744_v55 = vld [vmem:[%s15178_s1 + $0x2a0] sm:$0xf0] }
  0xbb   :  { %1920 = vmatmul.bf16.vlgmr.msrb.gmra.mxu0 %v10704_v56  ;;  %v7078_v15 = vor.u32 %v9743_v7, %v7077_v63  ;;  %v7305_v63 = vld [vmem:[%s15178_s1 + $0x448] sm:$0xf] }
  0xbc   :  { %1983 = vmatpush.bf16.msra.mxu0 %v7342_v18  ;;  %v9741_v18 = vld [vmem:[%s15178_s1 + $0x28c] sm:$0xf]  ;;  %v7145_v7 = vld [vmem:[%s15178_s1 + $0x308] sm:$0xf] }
  0xbd   :  { %1956 = vmatpush.bf16.msra.mxu1 %v7318_v9  ;;  %1969 = vmatpush.bf16.msra.mxu2 %v7182_v10  ;;  %v7259_v9 = vld [vmem:[%s15178_s1 + $0x404] sm:$0xf0]  ;;  %v7238_v10 = vor.u32 %v9783_v1, %v7237_v0  ;;  %v9799_v0 = vld [vmem:[%s15178_s1 + $0x458] sm:$0xf0] }
  0xbe   :  { %1942 = vmatpush.bf16.msra.mxu3 %v7158_v17  ;;  %v7262_v16 = vor.u32 %v9786_v8, %v7259_v9  ;;  %v9778_v17 = vld [vmem:[%s15178_s1 + $0x3b0] sm:$0xf0]  ;;  %v2095_v8 = vsel %vm11669_vm7, 0, %v2094_v60 }
  0xbf   :  { %v7218_v27 = vor.u32 %v9778_v17, %v7217_v14  ;;  %v862_v40 = vpop.f32.mrf.mxu1  ;;  %2096 = vst [vmem:[#allocation2 + $0x6c] sm:$0x44] %v2095_v8  ;;  %v9739_v8 = vld [vmem:[%s15178_s1 + $0x278] sm:$0xf0] }
  0xc0   :  { %1984 = vmatpush.bf16.msra.mxu0 %v7322_v37  ;;  %v7185_v37 = vld [vmem:[%s15178_s1 + $0x358] sm:$0xf] }
  0xc1   :  { %1957 = vmatpush.bf16.msra.mxu1 %v7298_v28  ;;  %1970 = vmatpush.bf16.msra.mxu2 %v7162_v29  ;;  %v7082_v28 = vor.u32 %v9741_v18, %v7079_v19  ;;  %v9736_v29 = vld [vmem:[%s15178_s1 + $0x264] sm:$0xf]  ;;  %v7186_v52 = vor.u32 %v9769_v41, %v7185_v37  ;;  %v7454_v18 = vld [vmem:[%s15178_s1 + $0x578] sm:$0xf]  ;;  %v9837_v19 = vld [vmem:[%s15178_s1 + $0x588] sm:$0xf0] }
  0xc2   :  { %1943 = vmatpush.bf16.msra.mxu3 %v7138_v36  ;;  %v7346_v36 = vor.u32 %v9809_v26, %v7345_v24  ;;  %v7062_v45 = vor.u32 %v9736_v29, %v7059_v32  ;;  %v876_v51 = vpop.f32.mrf.mxu3  ;;  %v7125_v26 = vld [vmem:[%s15178_s1 + $0x2e0] sm:$0xf]  ;;  %v9754_v32 = vld [vmem:[%s15178_s1 + $0x2f0] sm:$0xf0]  ;;  %v9832_v37 = vld [vmem:[%s15178_s1 + $0x560] sm:$0xf0] }
  0xc3   :  { %v877_v58 = vadd.f32 %v876_v51, %v862_v40  ;;  %v904_v59 = vpop.f32.mrf.mxu2  ;;  %v7105_v40 = vld [vmem:[%s15178_s1 + $0x2b8] sm:$0xf]  ;;  %v7126_v41 = vor.u32 %v9754_v32, %v7125_v26  ;;  %v9812_v26 = vld [vmem:[%s15178_s1 + $0x4c0] sm:$0xf0]  ;;  %v9843_v32 = vld [vmem:[%s15178_s1 + $0x5b8] sm:$0xf0] }
  0xc4   :  { %1985 = vmatpush.bf16.msra.mxu0 %v7302_v50  ;;  %v7165_v50 = vld [vmem:[%s15178_s1 + $0x330] sm:$0xf] }
  0xc5   :  { %1958 = vmatpush.bf16.msra.mxu1 %v7278_v43  ;;  %1971 = vmatpush.bf16.msra.mxu2 %v7142_v44  ;;  %v9804_v43 = vld [vmem:[%s15178_s1 + $0x480] sm:$0xf0]  ;;  %v890_v44 = vpop.f32.mrf.mxu0 }
  0xc6   :  { %1944 = vmatpush.bf16.msra.mxu3 %v7118_v49  ;;  %v7635_v49 = vor.u32 %v9882_v39, %v7634_v38  ;;  %v7326_v53 = vor.u32 %v9804_v43, %v7325_v42  ;;  %v905_v1 = vadd.f32 %v904_v59, %v890_v44  ;;  %v7266_v42 = vor.u32 %v9789_v34, %v7265_v33  ;;  %v9749_v43 = vld [vmem:[%s15178_s1 + $0x2c8] sm:$0xf0]  ;;  %v7554_v44 = vld [vmem:[%s15178_s1 + $0x640] sm:$0xf]  ;;  %v7456_v34 = vld [vmem:[%s15178_s1 + $0x58c] sm:$0xf0] }
  0xc7   :  { %v864_v17 = vpop.f32.mrf.mxu1  ;;  %v9857_v59 = vld [vmem:[%s15178_s1 + $0x628] sm:$0xf0] }
  0xc8   :  { %1986 = vmatpush.bf16.msra.mxu0 %v7282_v3  ;;  %v9842_v3 = vld [vmem:[%s15178_s1 + $0x5b0] sm:$0xf0]  ;;  %v2054_v6 = vpack.c.bf16 %v905_v1, %v877_v58  ;;  %v7534_v58 = vld [vmem:[%s15178_s1 + $0x618] sm:$0xf]  ;;  %v9845_v1 = vld [vmem:[%s15178_s1 + $0x5cc] sm:$0xf] }
  0xc9   :  { %1959 = vmatpush.bf16.msra.mxu1 %v7258_v61  ;;  %1972 = vmatpush.bf16.msra.mxu2 %v7122_v62  ;;  %v7495_v61 = vor.u32 %v9847_v47, %v7494_v46  ;;  %v9764_v62 = vld [vmem:[%s15178_s1 + $0x340] sm:$0xf0]  ;;  %v7245_v47 = vld [vmem:[%s15178_s1 + $0x3d0] sm:$0xf] }
  0xca   :  { %1945 = vmatpush.bf16.msra.mxu3 %v7098_v2  ;;  %v7474_v2 = vld [vmem:[%s15178_s1 + $0x5a0] sm:$0xf]  ;;  %v7166_v9 = vor.u32 %v9764_v62, %v7165_v50  ;;  %2061 = vst [vmem:[#allocation2 + $0x58] sm:$0xff] %v2054_v6  ;;  %v878_v22 = vpop.f32.mrf.mxu3  ;;  %v9827_v50 = vld [vmem:[%s15178_s1 + $0x538] sm:$0xf0] }
  0xcb   :  { %v7475_v14 = vor.u32 %v9842_v3, %v7474_v2  ;;  %v879_v29 = vadd.f32 %v878_v22, %v864_v17  ;;  %v9779_v62 = vld [vmem:[%s15178_s1 + $0x3b8] sm:$0xf0]  ;;  %v7496_v2 = vld [vmem:[%s15178_s1 + $0x5dc] sm:$0xf0]  ;;  %v7535_v3 = vor.u32 %v9857_v59, %v7534_v58  ;;  %v9840_v17 = vld [vmem:[%s15178_s1 + $0x5a4] sm:$0xf] }
  0xcc   :  { %1987 = vmatpush.bf16.msra.mxu0 %v7262_v16  ;;  %v9794_v16 = vld [vmem:[%s15178_s1 + $0x430] sm:$0xf0]  ;;  %v7499_v12 = vor.u32 %v9845_v1, %v7496_v2  ;;  %v9825_v1 = vld [vmem:[%s15178_s1 + $0x52c] sm:$0xf]  ;;  %v7416_v2 = vld [vmem:[%s15178_s1 + $0x53c] sm:$0xf0] }
  0xcd   :  { %1960 = vmatpush.bf16.msra.mxu1 %v7238_v10  ;;  %1973 = vmatpush.bf16.msra.mxu2 %v7102_v11  ;;  %v7306_v10 = vor.u32 %v9799_v0, %v7305_v63  ;;  %v9759_v11 = vld [vmem:[%s15178_s1 + $0x318] sm:$0xf0]  ;;  %v892_v20 = vpop.f32.mrf.mxu0  ;;  %v7394_v63 = vld [vmem:[%s15178_s1 + $0x500] sm:$0xf]  ;;  %v9822_v0 = vld [vmem:[%s15178_s1 + $0x510] sm:$0xf0] }
  0xce   :  { %1946 = vmatpush.bf16.msra.mxu3 %v7078_v15  ;;  %v7285_v15 = vld [vmem:[%s15178_s1 + $0x420] sm:$0xf]  ;;  %v7146_v23 = vor.u32 %v9759_v11, %v7145_v7  ;;  %v7395_v11 = vor.u32 %v9822_v0, %v7394_v63 }
  0xcf   :  { %v7286_v24 = vor.u32 %v9794_v16, %v7285_v15  ;;  %v9848_v15 = vld [vmem:[%s15178_s1 + $0x5e0] sm:$0xf0]  ;;  %v9817_v16 = vld [vmem:[%s15178_s1 + $0x4e8] sm:$0xf0] }
  0xd0   :  { %1988 = vmatpush.bf16.msra.mxu0 %v7242_v31  ;;  %v7455_v31 = vor.u32 %v9837_v19, %v7454_v18  ;;  %v7476_v18 = vld [vmem:[%s15178_s1 + $0x5b4] sm:$0xf0] }
  0xd1   :  { %1961 = vmatpush.bf16.msra.mxu1 %v7218_v27  ;;  %1974 = vmatpush.bf16.msra.mxu2 %v7082_v28  ;;  %v7574_v27 = vld [vmem:[%s15178_s1 + $0x668] sm:$0xf]  ;;  %v9867_v28 = vld [vmem:[%s15178_s1 + $0x678] sm:$0xf0] }
  0xd2   :  { %1947 = vmatpush.bf16.msra.mxu3 %v7058_v30  ;;  %v906_v30 = vpop.f32.mrf.mxu2  ;;  %v7575_v38 = vor.u32 %v9867_v28, %v7574_v27  ;;  %v7375_v28 = vor.u32 %v9817_v16, %v7374_v13  ;;  %v7422_v13 = vld [vmem:[%s15178_s1 + $0x530] sm:$0xf] }
  0xd4   :  { %7349 = vmatmul.msk.bf16.vlgmr.msra.gmra.mxu1 %vm793_vm0, %v10706_v57  ;;  %1989 = vmatpush.bf16.msra.mxu0 %v7222_v48  ;;  %v9784_v48 = vld [vmem:[%s15178_s1 + $0x3e0] sm:$0xf0] }
  0xd5   :  { %1996 = vmatpush.bf16.msrb.mxu1 %v7206_v35  ;;  %1948 = vmatmul.bf16.vlgmr.msra.gmra.mxu3 %v10704_v56  ;;  %v907_v35 = vadd.f32 %v906_v30, %v892_v20  ;;  %v7246_v54 = vor.u32 %v9784_v48, %v7245_v47  ;;  %v9880_v20 = vld [vmem:[%s15178_s1 + $0x6e4] sm:$0xf]  ;;  %v9835_v30 = vld [vmem:[%s15178_s1 + $0x57c] sm:$0xf] }
  0xd6   :  { %2011 = vmatpush.bf16.msrb.mxu3 %v7346_v36  ;;  %1975 = vmatpush.bf16.msra.mxu2 %v7062_v45  ;;  %v7434_v36 = vld [vmem:[%s15178_s1 + $0x550] sm:$0xf]  ;;  %v9862_v45 = vld [vmem:[%s15178_s1 + $0x650] sm:$0xf0] }
  0xd7   :  { %7350 = vmatmul.msk.bf16.vlgmr.msra.gmra.mxu0 %vm793_vm0, %v10706_v57  ;;  %v2057_v39 = vpack.c.bf16 %v907_v35, %v879_v29  ;;  %v7435_v46 = vor.u32 %v9832_v37, %v7434_v36  ;;  %v7555_v51 = vor.u32 %v9862_v45, %v7554_v44  ;;  %v7479_v29 = vor.u32 %v9840_v17, %v7476_v18  ;;  %v9875_v35 = vld [vmem:[%s15178_s1 + $0x6bc] sm:$0xf]  ;;  %v2097_v36 = vld [vmem:[#allocation2 + $0x74] sm:$0x4]  ;;  %v7616_v37 = vld [vmem:[%s15178_s1 + $0x6cc] sm:$0xf0] }
  0xd8   :  { %2542 = vmatpush.bf16.msrb.mxu0 %v7495_v61  ;;  %v7225_v61 = vld [vmem:[%s15178_s1 + $0x3a8] sm:$0xf]  ;;  %v7462_v44 = vld [vmem:[%s15178_s1 + $0x580] sm:$0xf]  ;;  %v9838_v45 = vld [vmem:[%s15178_s1 + $0x590] sm:$0xf0]  ;;  %v7619_v48 = vor.u32 %v9875_v35, %v7616_v37 }
  0xd9   :  { %1997 = vmatpush.bf16.msrb.mxu1 %v7186_v52  ;;  %1976 = vmatmul.bf16.vlgmr.msra.gmra.mxu2 %v10704_v56  ;;  %2064 = vst [vmem:[#allocation2 + $0x6c] sm:$0x33] %v2057_v39  ;;  %v7085_v52 = vld [vmem:[%s15178_s1 + $0x290] sm:$0xf]  ;;  %v7226_v7 = vor.u32 %v9779_v62, %v7225_v61  ;;  %v932_v27 = vpop.f32.mrf.mxu1  ;;  %v9883_v39 = vld [vmem:[%s15178_s1 + $0x6f8] sm:$0xf0]  ;;  %v7463_v59 = vor.u32 %v9838_v45, %v7462_v44 }
  0xda   :  { %2557 = vmatpush.bf16.msrb.mxu2 %v7635_v49  ;;  %2012 = vmatpush.bf16.msrb.mxu3 %v7326_v53  ;;  %v7414_v49 = vld [vmem:[%s15178_s1 + $0x528] sm:$0xf]  ;;  %v7106_v53 = vor.u32 %v9749_v43, %v7105_v40  ;;  %v7086_v6 = vor.u32 %v9744_v55, %v7085_v52  ;;  %v7459_v43 = vor.u32 %v9835_v30, %v7456_v34  ;;  %v2098_v47 = vsel %vm11628_vm5, 0, %v2097_v36  ;;  %v9870_v52 = vld [vmem:[%s15178_s1 + $0x694] sm:$0xf] }
  0xdb   :  { %v7415_v60 = vor.u32 %v9827_v50, %v7414_v49  ;;  %v9830_v50 = vld [vmem:[%s15178_s1 + $0x554] sm:$0xf]  ;;  %2099 = vst [vmem:[#allocation2 + $0x74] sm:$0x4] %v2098_v47  ;;  %v7442_v61 = vld [vmem:[%s15178_s1 + $0x558] sm:$0xf] }
  0xdc   :  { %2543 = vmatpush.bf16.msrb.mxu0 %v7475_v14  ;;  %v7502_v14 = vld [vmem:[%s15178_s1 + $0x5d0] sm:$0xf]  ;;  %v9878_v55 = vld [vmem:[%s15178_s1 + $0x6d0] sm:$0xf0]  ;;  %v9833_v62 = vld [vmem:[%s15178_s1 + $0x568] sm:$0xf0] }
  0xdd   :  { %1998 = vmatpush.bf16.msrb.mxu1 %v7166_v9  ;;  %v7514_v9 = vld [vmem:[%s15178_s1 + $0x5f0] sm:$0xf]  ;;  %v7396_v18 = vld [vmem:[%s15178_s1 + $0x514] sm:$0xf0]  ;;  %v9823_v30 = vld [vmem:[%s15178_s1 + $0x518] sm:$0xf0] }
  0xde   :  { %2558 = vmatpush.bf16.msrb.mxu2 %v7615_v4  ;;  %2013 = vmatpush.bf16.msrb.mxu3 %v7306_v10  ;;  %v7065_v4 = vld [vmem:[%s15178_s1 + $0x268] sm:$0xf]  ;;  %v9852_v10 = vld [vmem:[%s15178_s1 + $0x600] sm:$0xf0]  ;;  %v7376_v34 = vld [vmem:[%s15178_s1 + $0x4ec] sm:$0xf0] }
  0xdf   :  { %v7515_v19 = vor.u32 %v9852_v10, %v7514_v9  ;;  %v7066_v22 = vor.u32 %v9739_v8, %v7065_v4  ;;  %v9873_v8 = vld [vmem:[%s15178_s1 + $0x6a8] sm:$0xf0]  ;;  %v7443_v9 = vor.u32 %v9833_v62, %v7442_v61  ;;  %v9855_v35 = vld [vmem:[%s15178_s1 + $0x61c] sm:$0xf]  ;;  %v7536_v37 = vld [vmem:[%s15178_s1 + $0x62c] sm:$0xf0] }
  0xe0   :  { %2544 = vmatpush.bf16.msrb.mxu0 %v7455_v31  ;;  %v7482_v31 = vld [vmem:[%s15178_s1 + $0x5a8] sm:$0xf]  ;;  %v9850_v44 = vld [vmem:[%s15178_s1 + $0x5f4] sm:$0xf]  ;;  %v9881_v62 = vld [vmem:[%s15178_s1 + $0x6ec] sm:$0xf] }
  0xe1   :  { %1999 = vmatpush.bf16.msrb.mxu1 %v7146_v23  ;;  %v7503_v23 = vor.u32 %v9848_v15, %v7502_v14  ;;  %v7483_v40 = vor.u32 %v9843_v32, %v7482_v31  ;;  %v934_v4 = vpop.f32.mrf.mxu1  ;;  %v9828_v14 = vld [vmem:[%s15178_s1 + $0x540] sm:$0xf0]  ;;  %v2073_v45 = vld [vmem:[#allocation2 + $0x14] sm:$0x44]  ;;  %v7516_v47 = vld [vmem:[%s15178_s1 + $0x604] sm:$0xf0] }
  0xe2   :  { %2559 = vmatpush.bf16.msrb.mxu2 %v7595_v21  ;;  %2014 = vmatpush.bf16.msrb.mxu3 %v7286_v24  ;;  %v7636_v21 = vld [vmem:[%s15178_s1 + $0x6f4] sm:$0xf0]  ;;  %v7354_v24 = vld [vmem:[%s15178_s1 + $0x4b0] sm:$0xf] }
  0xe3   :  { %v7639_v33 = vor.u32 %v9880_v20, %v7636_v21  ;;  %v7556_v20 = vld [vmem:[%s15178_s1 + $0x654] sm:$0xf0]  ;;  %v7582_v21 = vld [vmem:[%s15178_s1 + $0x670] sm:$0xf]  ;;  %v1347_v31 = vpop.f32.mrf.mxu2 }
  0xe4   :  { %2545 = vmatpush.bf16.msrb.mxu0 %v7435_v46 }
  0xe5   :  { %2000 = vmatpush.bf16.msrb.mxu1 %v7126_v41  ;;  %v918_v41 = vpop.f32.mrf.mxu3 }
  0xe6   :  { %2560 = vmatpush.bf16.msrb.mxu2 %v7575_v38  ;;  %2015 = vmatpush.bf16.msrb.mxu3 %v7266_v42  ;;  %v7642_v38 = vld [vmem:[%s15178_s1 + $0x6e8] sm:$0xf]  ;;  %v7355_v42 = vor.u32 %v9812_v26, %v7354_v24  ;;  %v933_v46 = vadd.f32 %v932_v27, %v918_v41  ;;  %v12104_v24 = vld [vmem:[%s15179_s2] sm:$0x1f]  ;;  %v7423_v26 = vor.u32 %v9828_v14, %v7422_v13  ;;  %v9815_v27 = vld [vmem:[%s15178_s1 + $0x4dc] sm:$0xf] }
  0xe7   :  { %v7643_v49 = vor.u32 %v9883_v39, %v7642_v38  ;;  %v12122_v36 = vperm.slane %v12104_v24, 0  ;;  %v7562_v38 = vld [vmem:[%s15178_s1 + $0x648] sm:$0xf]  ;;  %v9863_v39 = vld [vmem:[%s15178_s1 + $0x658] sm:$0xf0] }
  0xe8   :  { %2546 = vmatpush.bf16.msrb.mxu0 %v7415_v60  ;;  %v2055_v58 = vpack.c.bf16 %v933_v46, %v933_v46  ;;  %v7379_v46 = vor.u32 %v9815_v27, %v7376_v34  ;;  %v7522_v13 = vld [vmem:[%s15178_s1 + $0x5f8] sm:$0xf]  ;;  %v9853_v14 = vld [vmem:[%s15178_s1 + $0x608] sm:$0xf0] }
  0xe9   :  { %2001 = vmatpush.bf16.msrb.mxu1 %v7106_v53  ;;  %v7596_v53 = vld [vmem:[%s15178_s1 + $0x6a4] sm:$0xf0] }
  0xea   :  { %2561 = vmatpush.bf16.msrb.mxu2 %v7555_v51  ;;  %2016 = vmatpush.bf16.msrb.mxu3 %v7246_v54  ;;  %v7436_v51 = vld [vmem:[%s15178_s1 + $0x564] sm:$0xf0]  ;;  %v7622_v54 = vld [vmem:[%s15178_s1 + $0x6c0] sm:$0xf]  ;;  %2062 = vst [vmem:[#allocation2 + $0x60] sm:$0xf] %v2055_v58  ;;  %v7599_v63 = vor.u32 %v9870_v52, %v7596_v53 }
  0xeb   :  { %v7439_v60 = vor.u32 %v9830_v50, %v7436_v51  ;;  %v7623_v0 = vor.u32 %v9878_v55, %v7622_v54  ;;  %v7539_v50 = vor.u32 %v9855_v35, %v7536_v37  ;;  %v7563_v51 = vor.u32 %v9863_v39, %v7562_v38  ;;  %v7542_v52 = vld [vmem:[%s15178_s1 + $0x620] sm:$0xf]  ;;  %v9858_v53 = vld [vmem:[%s15178_s1 + $0x630] sm:$0xf0]  ;;  %v9836_v37 = vld [vmem:[%s15178_s1 + $0x584] sm:$0xf] }
  0xec   :  { %2547 = vmatpush.bf16.msrb.mxu0 %v7395_v11  ;;  %v7419_v11 = vor.u32 %v9825_v1, %v7416_v2  ;;  %v1348_v54 = vadd.f32 %v1347_v31, %v12122_v36  ;;  %v12159_v55 = vperm.slane %v12104_v24, 1  ;;  %v9846_v58 = vld [vmem:[%s15178_s1 + $0x5d4] sm:$0xf]  ;;  %v7519_v2 = vor.u32 %v9850_v44, %v7516_v47  ;;  %v7630_v31 = vld [vmem:[%s15178_s1 + $0x6c8] sm:$0xf] }
  0xed   :  { %2002 = vmatpush.bf16.msrb.mxu1 %v7086_v6  ;;  %v7576_v6 = vld [vmem:[%s15178_s1 + $0x67c] sm:$0xf0]  ;;  %v920_v10 = vpop.f32.mrf.mxu3  ;;  %v7464_v38 = vld [vmem:[%s15178_s1 + $0x594] sm:$0xf0]  ;;  %v7490_v44 = vld [vmem:[%s15178_s1 + $0x5b0] sm:$0xf] }
  0xee   :  { %2562 = vmatpush.bf16.msrb.mxu2 %v7535_v3  ;;  %2017 = vmatpush.bf16.msrb.mxu3 %v7226_v7  ;;  %v9865_v3 = vld [vmem:[%s15178_s1 + $0x66c] sm:$0xf]  ;;  %v7602_v7 = vld [vmem:[%s15178_s1 + $0x698] sm:$0xf]  ;;  %v935_v15 = vadd.f32 %v934_v4, %v920_v10  ;;  %v9884_v10 = vld [vmem:[%s15178_s1 + $0x700] sm:$0xf0] }
  0xef   :  { %v7579_v16 = vor.u32 %v9865_v3, %v7576_v6  ;;  %v7603_v17 = vor.u32 %v9873_v8, %v7602_v7  ;;  %v7362_v3 = vld [vmem:[%s15178_s1 + $0x4b8] sm:$0xf]  ;;  %v9813_v4 = vld [vmem:[%s15178_s1 + $0x4c8] sm:$0xf0]  ;;  %v7543_v6 = vor.u32 %v9858_v53, %v7542_v52  ;;  %v7467_v52 = vor.u32 %v9836_v37, %v7464_v38 }
  0xf0   :  { %2548 = vmatpush.bf16.msrb.mxu0 %v7375_v28  ;;  %v7430_v37 = vld [vmem:[%s15178_s1 + $0x538] sm:$0xf]  ;;  %v9829_v38 = vld [vmem:[%s15178_s1 + $0x548] sm:$0xf0] }
  0xf1   :  { %7351 = vmatmul.msk.bf16.vlgmr.msrb.gmra.mxu3 %vm793_vm0, %v10706_v57  ;;  %2003 = vmatpush.bf16.msrb.mxu1 %v7066_v22  ;;  %v9868_v22 = vld [vmem:[%s15178_s1 + $0x680] sm:$0xf0] }
  0xf2   :  { %2570 = vmatpush.bf16.msra.mxu3 %v7499_v12  ;;  %2563 = vmatpush.bf16.msrb.mxu2 %v7515_v19  ;;  %v9820_v12 = vld [vmem:[%s15178_s1 + $0x504] sm:$0xf] }
  0xf3   :  { %v9860_v19 = vld [vmem:[%s15178_s1 + $0x644] sm:$0xf]  ;;  %v7399_v28 = vor.u32 %v9820_v12, %v7396_v18  ;;  %v7484_v18 = vld [vmem:[%s15178_s1 + $0x5bc] sm:$0xf0] }
  0xf4   :  { %2004 = vmatmul.bf16.vlgmr.msrb.gmra.mxu1 %v10704_v56  ;;  %2549 = vmatpush.bf16.msrb.mxu0 %v7355_v42  ;;  %v7559_v32 = vor.u32 %v9860_v19, %v7556_v20  ;;  %v9810_v42 = vld [vmem:[%s15178_s1 + $0x4b4] sm:$0xf]  ;;  %v9876_v19 = vld [vmem:[%s15178_s1 + $0x6c4] sm:$0xf]  ;;  %v7624_v20 = vld [vmem:[%s15178_s1 + $0x6d4] sm:$0xf0] }
  0xf5   :  { %2585 = vmatpush.bf16.msra.mxu1 %v7639_v33  ;;  %7652 = vmatmul.msk.bf16.vlgmr.msrb.gmra.mxu2 %vm793_vm0, %v10706_v57  ;;  %v7583_v33 = vor.u32 %v9868_v22, %v7582_v21  ;;  %v7510_v21 = vld [vmem:[%s15178_s1 + $0x5d8] sm:$0xf]  ;;  %v9849_v22 = vld [vmem:[%s15178_s1 + $0x5e8] sm:$0xf0]  ;;  %v7627_v35 = vor.u32 %v9876_v19, %v7624_v20 }
  0xf6   :  { %2598 = vmatpush.bf16.msra.mxu2 %v7503_v23  ;;  %2571 = vmatpush.bf16.msra.mxu3 %v7479_v29  ;;  %v2058_v23 = vpack.c.bf16 %v935_v15, %v935_v15  ;;  %v7402_v29 = vld [vmem:[%s15178_s1 + $0x508] sm:$0xf]  ;;  %v9841_v15 = vld [vmem:[%s15178_s1 + $0x5ac] sm:$0xf]  ;;  %v7511_v39 = vor.u32 %v9849_v22, %v7510_v21 }
  0xf7   :  { %2550 = vmatmul.bf16.vlgmr.msrb.gmra.mxu0 %v10704_v56  ;;  %v7403_v41 = vor.u32 %v9823_v30, %v7402_v29  ;;  %v7487_v34 = vor.u32 %v9841_v15, %v7484_v18  ;;  %v9861_v15 = vld [vmem:[%s15178_s1 + $0x64c] sm:$0xf]  ;;  %v9834_v18 = vld [vmem:[%s15178_s1 + $0x570] sm:$0xf0] }
  0xf8   :  { %2613 = vmatpush.bf16.msra.mxu0 %v7643_v49  ;;  %2065 = vst [vmem:[#allocation2 + $0x74] sm:$0x3] %v2058_v23  ;;  %v9818_v49 = vld [vmem:[%s15178_s1 + $0x4f0] sm:$0xf0] }
  0xf9   :  { %2586 = vmatpush.bf16.msra.mxu1 %v7619_v48  ;;  %v7382_v48 = vld [vmem:[%s15178_s1 + $0x4e0] sm:$0xf] }
  0xfa   :  { %2599 = vmatpush.bf16.msra.mxu2 %v7483_v40  ;;  %2572 = vmatpush.bf16.msra.mxu3 %v7459_v43  ;;  %v1361_v40 = vpop.f32.mrf.mxu0  ;;  %v7356_v43 = vld [vmem:[%s15178_s1 + $0x4c4] sm:$0xf0]  ;;  %v7383_v61 = vor.u32 %v9818_v49, %v7382_v48 }
  0xfb   :  { %v7359_v1 = vor.u32 %v9810_v42, %v7356_v43  ;;  %v1362_v8 = vadd.f32 %v1361_v40, %v1348_v54  ;;  %v7604_v42 = vld [vmem:[%s15178_s1 + $0x6ac] sm:$0xf0]  ;;  %v9831_v54 = vld [vmem:[%s15178_s1 + $0x55c] sm:$0xf] }
  0xfc   :  { %2614 = vmatpush.bf16.msra.mxu0 %v7623_v0  ;;  %v1375_v0 = vpop.f32.mrf.mxu1 }
  0xfd   :  { %2587 = vmatpush.bf16.msra.mxu1 %v7599_v63  ;;  %v7644_v63 = vld [vmem:[%s15178_s1 + $0x6fc] sm:$0xf0]  ;;  %v1376_v7 = vadd.f32 %v1375_v0, %v12159_v55  ;;  %v1478_v29 = vmax.f32 %v1362_v8, 0.0 }
  0xfe   :  { %2600 = vmatpush.bf16.msra.mxu2 %v7463_v59  ;;  %2573 = vmatpush.bf16.msra.mxu3 %v7439_v60  ;;  %v7504_v59 = vld [vmem:[%s15178_s1 + $0x5e4] sm:$0xf0]  ;;  %v2074_v60 = vsel %vm11669_vm7, 0, %v2073_v45  ;;  %v7647_v12 = vor.u32 %v9881_v62, %v7644_v63  ;;  %v9844_v45 = vld [vmem:[%s15178_s1 + $0x5c0] sm:$0xf0] }
  0xff   :  { %2075 = vst [vmem:[#allocation2 + $0x14] sm:$0x44] %v2074_v60  ;;  %v9866_v60 = vld [vmem:[%s15178_s1 + $0x674] sm:$0xf]  ;;  %v7470_v62 = vld [vmem:[%s15178_s1 + $0x588] sm:$0xf] }
 0x100   :  { %2615 = vmatpush.bf16.msra.mxu0 %v7603_v17  ;;  %v7363_v17 = vor.u32 %v9813_v4, %v7362_v3  ;;  %v9839_v63 = vld [vmem:[%s15178_s1 + $0x598] sm:$0xf0]  ;;  %v7590_v4 = vld [vmem:[%s15178_s1 + $0x678] sm:$0xf] }
 0x101   :  { %2588 = vmatpush.bf16.msra.mxu1 %v7579_v16  ;;  %v1349_v16 = vpop.f32.mrf.mxu2 }
 0x102   :  { %2601 = vmatpush.bf16.msra.mxu2 %v7443_v9  ;;  %2574 = vmatpush.bf16.msra.mxu3 %v7419_v11  ;;  %v7650_v9 = vld [vmem:[%s15178_s1 + $0x6f0] sm:$0xf]  ;;  %v7507_v11 = vor.u32 %v9846_v58, %v7504_v59  ;;  %v1363_v27 = vpop.f32.mrf.mxu0  ;;  %v7491_v59 = vor.u32 %v9844_v45, %v7490_v44  ;;  %v9859_v44 = vld [vmem:[%s15178_s1 + $0x638] sm:$0xf0] }
 0x103   :  { %v7651_v23 = vor.u32 %v9884_v10, %v7650_v9  ;;  %v7444_v58 = vld [vmem:[%s15178_s1 + $0x56c] sm:$0xf0]  ;;  %v9826_v10 = vld [vmem:[%s15178_s1 + $0x534] sm:$0xf] }
 0x104   :  { %2616 = vmatpush.bf16.msra.mxu0 %v7583_v33  ;;  %v1350_v33 = vadd.f32 %v1349_v16, %v12122_v36  ;;  %v1377_v43 = vpop.f32.mrf.mxu1  ;;  %v7447_v8 = vor.u32 %v9831_v54, %v7444_v58  ;;  %v7564_v16 = vld [vmem:[%s15178_s1 + $0x65c] sm:$0xf0]  ;;  %v12356_v58 = vperm.slane %v12104_v24, 2 }
 0x105   :  { %2589 = vmatpush.bf16.msra.mxu1 %v7559_v32  ;;  %v9879_v32 = vld [vmem:[%s15178_s1 + $0x6d8] sm:$0xf0]  ;;  %v1378_v48 = vadd.f32 %v1377_v43, %v12159_v55  ;;  %v7550_v43 = vld [vmem:[%s15178_s1 + $0x628] sm:$0xf] }
 0x106   :  { %2602 = vmatpush.bf16.msra.mxu2 %v7423_v26  ;;  %2575 = vmatpush.bf16.msra.mxu3 %v7399_v28  ;;  %v1389_v26 = vpop.f32.mrf.mxu3  ;;  %v7523_v28 = vor.u32 %v9853_v14, %v7522_v13  ;;  %v1364_v49 = vadd.f32 %v1363_v27, %v1350_v33  ;;  %v7471_v13 = vor.u32 %v9839_v63, %v7470_v62  ;;  %v2076_v54 = vld [vmem:[#allocation2 + $0x1c] sm:$0x44]  ;;  %v10055_v62 = vld [vmem:[%s15180_s3 + $0x2f4] sm:$0xf0] }
 0x107   :  { %v1390_v30 = vadd.f32 %v1389_v26, %v1376_v7  ;;  %v9864_v26 = vld [vmem:[%s15178_s1 + $0x660] sm:$0xf0]  ;;  %v2077_v63 = vsel %vm11669_vm7, 0, %v2076_v54  ;;  %v7843_v54 = vld [vmem:[%s15180_s3 + $0x350] sm:$0xf] }
 0x108   :  { %2617 = vmatpush.bf16.msra.mxu0 %v7563_v51  ;;  %v9874_v51 = vld [vmem:[%s15178_s1 + $0x6b0] sm:$0xf0]  ;;  %2078 = vst [vmem:[#allocation2 + $0x1c] sm:$0x44] %v2077_v63 }
 0x109   :  { %2590 = vmatpush.bf16.msra.mxu1 %v7539_v50  ;;  %v1479_v40 = vmax.f32 %v1390_v30, 0.0  ;;  %v7610_v50 = vld [vmem:[%s15178_s1 + $0x6a0] sm:$0xf]  ;;  %v12277_v7 = vpop.f32.mrf.mxu2 }
 0x10a   :  { %2603 = vmatpush.bf16.msra.mxu2 %v7403_v41  ;;  %2576 = vmatpush.bf16.msra.mxu3 %v7379_v46  ;;  %v9871_v41 = vld [vmem:[%s15178_s1 + $0x69c] sm:$0xf]  ;;  %v7631_v46 = vor.u32 %v9879_v32, %v7630_v31  ;;  %v7611_v0 = vor.u32 %v9874_v51, %v7610_v50  ;;  %v7404_v30 = vld [vmem:[%s15178_s1 + $0x51c] sm:$0xf0]  ;;  %v7431_v50 = vor.u32 %v9829_v38, %v7430_v37  ;;  %v7410_v51 = vld [vmem:[%s15178_s1 + $0x510] sm:$0xf] }
 0x10b   :  { %v12240_v47 = vpack.c.bf16 %v1479_v40, %v1478_v29  ;;  %v7607_v53 = vor.u32 %v9871_v41, %v7604_v42  ;;  %v9821_v29 = vld [vmem:[%s15178_s1 + $0x50c] sm:$0xf]  ;;  %v9816_v42 = vld [vmem:[%s15178_s1 + $0x4e4] sm:$0xf]  ;;  %v7779_v37 = vld [vmem:[%s15180_s3 + $0x2d0] sm:$0xf] }
 0x10c   :  { %2618 = vmatpush.bf16.msra.mxu0 %v7543_v6  ;;  %v9869_v6 = vld [vmem:[%s15178_s1 + $0x688] sm:$0xf0]  ;;  %v7407_v45 = vor.u32 %v9821_v29, %v7404_v30  ;;  %v10051_v38 = vld [vmem:[%s15180_s3 + $0x2d4] sm:$0xf0] }
 0x10d   :  { %2591 = vmatpush.bf16.msra.mxu1 %v7519_v2  ;;  %2040 = vst [vmem:[#allocation2] sm:$0xff] %v12240_v47  ;;  %v1483_v2 = vmax.f32 %v1364_v49, 0.0  ;;  %v7591_v19 = vor.u32 %v9869_v6, %v7590_v4  ;;  %v3440_v20 = vunpack.c.l.b16 %v12240_v47  ;;  %v3441_v21 = vunpack.c.h.b16 %v12240_v47  ;;  %v7384_v47 = vld [vmem:[%s15178_s1 + $0x4f4] sm:$0xf0]  ;;  %v7524_v49 = vld [vmem:[%s15178_s1 + $0x60c] sm:$0xf0] }
 0x10e   :  { %2604 = vmatpush.bf16.msra.mxu2 %v7383_v61  ;;  %2577 = vmatpush.bf16.msra.mxu3 %v7359_v1  ;;  %v7584_v61 = vld [vmem:[%s15178_s1 + $0x684] sm:$0xf0]  ;;  %v1391_v1 = vpop.f32.mrf.mxu3  ;;  %v7923_v4 = vld [vmem:[%s15180_s3 + $0x3f0] sm:$0xf]  ;;  %v10087_v6 = vld [vmem:[%s15180_s3 + $0x3f4] sm:$0xf0] }
 0x10f   :  { %v1392_v3 = vadd.f32 %v1391_v1, %v1378_v48  ;;  %v7587_v9 = vor.u32 %v9866_v60, %v7584_v61  ;;  %v9851_v48 = vld [vmem:[%s15178_s1 + $0x5fc] sm:$0xf]  ;;  %v7795_v61 = vld [vmem:[%s15180_s3 + $0x2f0] sm:$0xf]  ;;  %v9854_v1 = vld [vmem:[%s15178_s1 + $0x610] sm:$0xf0] }
 0x110   :  { %7653 = vmatmul.msk.bf16.vlgmr.msra.gmra.mxu1 %vm793_vm0, %v10706_v57  ;;  %2619 = vmatpush.bf16.msra.mxu0 %v7523_v28  ;;  %v7567_v28 = vor.u32 %v9861_v15, %v7564_v16  ;;  %v9819_v15 = vld [vmem:[%s15178_s1 + $0x4f8] sm:$0xf0] }
 0x111   :  { %2626 = vmatpush.bf16.msrb.mxu1 %v7507_v11  ;;  %2578 = vmatmul.bf16.vlgmr.msra.gmra.mxu3 %v10704_v56  ;;  %v7424_v11 = vld [vmem:[%s15178_s1 + $0x544] sm:$0xf0]  ;;  %v1484_v14 = vmax.f32 %v1392_v3, 0.0  ;;  %v7527_v3 = vor.u32 %v9851_v48, %v7524_v49  ;;  %v7907_v49 = vld [vmem:[%s15180_s3 + $0x3d0] sm:$0xf] }
 0x112   :  { %2641 = vmatpush.bf16.msrb.mxu3 %v7647_v12  ;;  %2605 = vmatpush.bf16.msra.mxu2 %v7363_v17  ;;  %v12285_v12 = vpop.f32.mrf.mxu0  ;;  %v7450_v17 = vld [vmem:[%s15178_s1 + $0x560] sm:$0xf]  ;;  %v7427_v27 = vor.u32 %v9826_v10, %v7424_v11  ;;  %v7364_v10 = vld [vmem:[%s15178_s1 + $0x4cc] sm:$0xf0]  ;;  %v7390_v11 = vld [vmem:[%s15178_s1 + $0x4e8] sm:$0xf] }
 0x113   :  { %7654 = vmatmul.msk.bf16.vlgmr.msra.gmra.mxu0 %vm793_vm0, %v10706_v57  ;;  %v1491_v22 = vpack.c.bf16 %v1484_v14, %v1483_v2  ;;  %v7451_v33 = vor.u32 %v9834_v18, %v7450_v17  ;;  %v7387_v2 = vor.u32 %v9816_v42, %v7384_v47  ;;  %v1404_v14 = vadd.f32 %v12285_v12, %v12356_v58  ;;  %v7859_v17 = vld [vmem:[%s15180_s3 + $0x370] sm:$0xf]  ;;  %v10071_v18 = vld [vmem:[%s15180_s3 + $0x374] sm:$0xf0]  ;;  %v10053_v12 = vld [vmem:[%s15180_s3 + $0x2e4] sm:$0xf0] }
 0x114   :  { %2654 = vmatpush.bf16.msrb.mxu0 %v7511_v39  ;;  %v7860_v29 = vor.u32 %v10071_v18, %v7859_v17  ;;  %v7835_v17 = vld [vmem:[%s15180_s3 + $0x340] sm:$0xf]  ;;  %v10065_v18 = vld [vmem:[%s15180_s3 + $0x344] sm:$0xf0] }
 0x115   :  { %2627 = vmatpush.bf16.msrb.mxu1 %v7487_v34  ;;  %2606 = vmatmul.bf16.vlgmr.msra.gmra.mxu2 %v10704_v56  ;;  %2043 = vst [vmem:[#allocation2 + $0x14] sm:$0x33] %v1491_v22  ;;  %v3445_v31 = vunpack.c.l.b16 %v1491_v22  ;;  %v3446_v32 = vunpack.c.h.b16 %v1491_v22  ;;  %v9856_v34 = vld [vmem:[%s15178_s1 + $0x624] sm:$0xf]  ;;  %v12407_v22 = vperm.slane %v12104_v24, 3  ;;  %v1445_v30 = vpop.f32.mrf.mxu1 }
 0x116   :  { %2669 = vmatpush.bf16.msrb.mxu2 %v7651_v23  ;;  %2642 = vmatpush.bf16.msrb.mxu3 %v7627_v35  ;;  %v7570_v23 = vld [vmem:[%s15178_s1 + $0x650] sm:$0xf]  ;;  %v7544_v35 = vld [vmem:[%s15178_s1 + $0x634] sm:$0xf0] }
 0x117   :  { %v7571_v39 = vor.u32 %v9864_v26, %v7570_v23  ;;  %v12325_v40 = vpack.c.b16 %v3445_v31, %v3440_v20  ;;  %v12327_v41 = vpack.c.b16 %v3446_v32, %v3441_v21  ;;  %v7924_v20 = vor.u32 %v10087_v6, %v7923_v4  ;;  %v7915_v26 = vld [vmem:[%s15180_s3 + $0x3e0] sm:$0xf] }
 0x118   :  { %2655 = vmatpush.bf16.msrb.mxu0 %v7491_v59  ;;  %v7551_v59 = vor.u32 %v9859_v44, %v7550_v43  ;;  %v12410_v23 = vperm.slane %v12104_v24, 4  ;;  %v7370_v31 = vld [vmem:[%s15178_s1 + $0x4c0] sm:$0xf]  ;;  %v9814_v24 = vld [vmem:[%s15178_s1 + $0x4d0] sm:$0xf0] }
 0x119   :  { %2628 = vmatpush.bf16.msrb.mxu1 %v7467_v52  ;;  %v9824_v52 = vld [vmem:[%s15178_s1 + $0x520] sm:$0xf0]  ;;  %v7851_v32 = vld [vmem:[%s15180_s3 + $0x360] sm:$0xf]  ;;  %v10103_v43 = vld [vmem:[%s15180_s3 + $0x474] sm:$0xf0] }
 0x11a   :  { %2670 = vmatpush.bf16.msrb.mxu2 %v7631_v46  ;;  %2643 = vmatpush.bf16.msrb.mxu3 %v7607_v53  ;;  %v7547_v46 = vor.u32 %v9856_v34, %v7544_v35  ;;  %v12353_v53 = vpop.f32.mrf.mxu2  ;;  %v12358_v60 = vpop.f32.mrf.mxu0  ;;  %v10069_v34 = vld [vmem:[%s15180_s3 + $0x364] sm:$0xf0] }
 0x11c   :  { %2656 = vmatpush.bf16.msrb.mxu0 %v7471_v13  ;;  %v7796_v13 = vor.u32 %v10055_v62, %v7795_v61  ;;  %v7780_v61 = vor.u32 %v10051_v38, %v7779_v37 }
 0x11d   :  { %2629 = vmatpush.bf16.msrb.mxu1 %v7447_v8  ;;  %v7411_v8 = vor.u32 %v9824_v52, %v7410_v51  ;;  %v1406_v51 = vadd.f32 %v12358_v60, %v12356_v58  ;;  %v7852_v52 = vor.u32 %v10069_v34, %v7851_v32  ;;  %v7836_v32 = vor.u32 %v10065_v18, %v7835_v17  ;;  %v7811_v17 = vld [vmem:[%s15180_s3 + $0x310] sm:$0xf]  ;;  %v10059_v18 = vld [vmem:[%s15180_s3 + $0x314] sm:$0xf0] }
 0x11e   :  { %2671 = vmatpush.bf16.msrb.mxu2 %v7611_v0  ;;  %2644 = vmatpush.bf16.msrb.mxu3 %v7587_v9  ;;  %v7530_v0 = vld [vmem:[%s15178_s1 + $0x600] sm:$0xf]  ;;  %v9811_v9 = vld [vmem:[%s15178_s1 + $0x4bc] sm:$0xf] }
 0x11f   :  { %v7531_v16 = vor.u32 %v9854_v1, %v7530_v0  ;;  %v7367_v21 = vor.u32 %v9811_v9, %v7364_v10  ;;  %v7771_v1 = vld [vmem:[%s15180_s3 + $0x2c0] sm:$0xf]  ;;  %v10081_v10 = vld [vmem:[%s15180_s3 + $0x3c4] sm:$0xf0] }
 0x120   :  { %2657 = vmatpush.bf16.msrb.mxu0 %v7451_v33  ;;  %v1418_v33 = vadd.f32 %v12277_v7, %v1404_v14  ;;  %v7987_v7 = vld [vmem:[%s15180_s3 + $0x470] sm:$0xf]  ;;  %v7899_v9 = vld [vmem:[%s15180_s3 + $0x3c0] sm:$0xf] }
 0x121   :  { %2630 = vmatpush.bf16.msrb.mxu1 %v7427_v27  ;;  %v10085_v27 = vld [vmem:[%s15180_s3 + $0x3e4] sm:$0xf0]  ;;  %v7988_v60 = vor.u32 %v10103_v43, %v7987_v7  ;;  %v7755_v7 = vld [vmem:[%s15180_s3 + $0x2a0] sm:$0xf] }
 0x122   :  { %2672 = vmatpush.bf16.msrb.mxu2 %v7591_v19  ;;  %2645 = vmatpush.bf16.msrb.mxu3 %v7567_v28  ;;  %v7787_v19 = vld [vmem:[%s15180_s3 + $0x2e0] sm:$0xf]  ;;  %v7391_v28 = vor.u32 %v9819_v15, %v7390_v11  ;;  %v1459_v42 = vpop.f32.mrf.mxu2  ;;  %v7916_v44 = vor.u32 %v10085_v27, %v7915_v26  ;;  %v1473_v47 = vpop.f32.mrf.mxu0  ;;  %v1480_v62 = vmax.f32 %v1418_v33, 0.0  ;;  %v1420_v11 = vadd.f32 %v12353_v53, %v1406_v51  ;;  %v7763_v53 = vld [vmem:[%s15180_s3 + $0x2b0] sm:$0xf] }
 0x123   :  { %v7788_v35 = vor.u32 %v10053_v12, %v7787_v19  ;;  %v1460_v48 = vadd.f32 %v1459_v42, %v12410_v23  ;;  %v7971_v26 = vld [vmem:[%s15180_s3 + $0x450] sm:$0xf]  ;;  %v10099_v27 = vld [vmem:[%s15180_s3 + $0x454] sm:$0xf0]  ;;  %v10045_v43 = vld [vmem:[%s15180_s3 + $0x2a4] sm:$0xf0] }
 0x124   :  { %2658 = vmatpush.bf16.msrb.mxu0 %v7431_v50  ;;  %v10083_v50 = vld [vmem:[%s15180_s3 + $0x3d4] sm:$0xf0]  ;;  %v7827_v33 = vld [vmem:[%s15180_s3 + $0x330] sm:$0xf]  ;;  %v7972_v42 = vor.u32 %v10099_v27, %v7971_v26  ;;  %v10041_v26 = vld [vmem:[%s15180_s3 + $0x284] sm:$0xf0] }
 0x125   :  { %2631 = vmatpush.bf16.msrb.mxu1 %v7407_v45  ;;  %v1474_v0 = vadd.f32 %v1473_v47, %v1460_v48  ;;  %v7908_v4 = vor.u32 %v10083_v50, %v7907_v49  ;;  %v7883_v49 = vld [vmem:[%s15180_s3 + $0x3a0] sm:$0xf]  ;;  %v10077_v50 = vld [vmem:[%s15180_s3 + $0x3a4] sm:$0xf0]  ;;  %v8051_v27 = vld [vmem:[%s15180_s3 + $0x4f0] sm:$0xf] }
 0x126   :  { %2673 = vmatpush.bf16.msrb.mxu2 %v7571_v39  ;;  %2646 = vmatpush.bf16.msrb.mxu3 %v7547_v46  ;;  %v1431_v39 = vpop.f32.mrf.mxu3  ;;  %v7371_v46 = vor.u32 %v9814_v24, %v7370_v31  ;;  %v7891_v31 = vld [vmem:[%s15180_s3 + $0x3b0] sm:$0xf]  ;;  %v10079_v24 = vld [vmem:[%s15180_s3 + $0x3b4] sm:$0xf0] }
 0x127   :  { %v1432_v45 = vadd.f32 %v1431_v39, %v12407_v22  ;;  %v7892_v47 = vor.u32 %v10079_v24, %v7891_v31  ;;  %v10093_v31 = vld [vmem:[%s15180_s3 + $0x424] sm:$0xf0] }
 0x128   :  { %2659 = vmatpush.bf16.msrb.mxu0 %v7411_v8  ;;  %v1482_v8 = vmax.f32 %v1474_v0, 0.0  ;;  %v10061_v0 = vld [vmem:[%s15180_s3 + $0x324] sm:$0xf0] }
 0x129   :  { %2632 = vmatpush.bf16.msrb.mxu1 %v7387_v2  ;;  %v1446_v63 = vadd.f32 %v1445_v30, %v1432_v45  ;;  %v10049_v2 = vld [vmem:[%s15180_s3 + $0x2c4] sm:$0xf0]  ;;  %v7963_v45 = vld [vmem:[%s15180_s3 + $0x440] sm:$0xf] }
 0x12a   :  { %2674 = vmatpush.bf16.msrb.mxu2 %v7551_v59  ;;  %2647 = vmatpush.bf16.msrb.mxu3 %v7527_v3  ;;  %v10067_v59 = vld [vmem:[%s15180_s3 + $0x354] sm:$0xf0]  ;;  %v7979_v3 = vld [vmem:[%s15180_s3 + $0x460] sm:$0xf]  ;;  %v7772_v14 = vor.u32 %v10049_v2, %v7771_v1  ;;  %v1461_v30 = vpop.f32.mrf.mxu2  ;;  %v1475_v38 = vpop.f32.mrf.mxu0  ;;  %v7747_v1 = vld [vmem:[%s15180_s3 + $0x290] sm:$0xf] }
 0x12b   :  { %v1481_v6 = vmax.f32 %v1446_v63, 0.0  ;;  %v1462_v34 = vadd.f32 %v1461_v30, %v12410_v23  ;;  %v10043_v2 = vld [vmem:[%s15180_s3 + $0x294] sm:$0xf0]  ;;  %v7947_v30 = vld [vmem:[%s15180_s3 + $0x420] sm:$0xf] }
 0x12c   :  { %2660 = vmatpush.bf16.msrb.mxu0 %v7391_v28  ;;  %v7900_v28 = vor.u32 %v10081_v10, %v7899_v9  ;;  %v7875_v9 = vld [vmem:[%s15180_s3 + $0x390] sm:$0xf] }
 0x12d   :  { %7655 = vmatmul.msk.bf16.vlgmr.msrb.gmra.mxu3 %vm793_vm0, %v10706_v57  ;;  %2633 = vmatpush.bf16.msrb.mxu1 %v7367_v21  ;;  %v12483_v15 = vpack.c.bf16 %v1481_v6, %v1480_v62  ;;  %v10047_v21 = vld [vmem:[%s15180_s3 + $0x2b4] sm:$0xf0] }
 0x12e   :  { %3294 = vmatpush.bf16.msra.mxu3 %v7796_v13  ;;  %2675 = vmatpush.bf16.msrb.mxu2 %v7531_v16  ;;  %v7844_v13 = vor.u32 %v10067_v59, %v7843_v54  ;;  %v12485_v16 = vpack.c.bf16 %v1482_v8, %v1482_v8  ;;  %v1433_v12 = vpop.f32.mrf.mxu3  ;;  %v7764_v39 = vor.u32 %v10047_v21, %v7763_v53  ;;  %v7819_v54 = vld [vmem:[%s15180_s3 + $0x320] sm:$0xf]  ;;  %v10095_v6 = vld [vmem:[%s15180_s3 + $0x434] sm:$0xf0] }
 0x12f   :  { %2041 = vst [vmem:[#allocation2 + $0x8] sm:$0xff] %v12483_v15  ;;  %v7756_v59 = vor.u32 %v10045_v43, %v7755_v7  ;;  %v3443_v62 = vunpack.c.h.b16 %v12483_v15  ;;  %v7884_v8 = vor.u32 %v10077_v50, %v7883_v49  ;;  %v7739_v21 = vld [vmem:[%s15180_s3 + $0x280] sm:$0xf]  ;;  %v10057_v43 = vld [vmem:[%s15180_s3 + $0x304] sm:$0xf0] }
 0x130   :  { %2634 = vmatmul.bf16.vlgmr.msrb.gmra.mxu1 %v10704_v56  ;;  %2661 = vmatpush.bf16.msrb.mxu0 %v7371_v46  ;;  %2042 = vst [vmem:[#allocation2 + $0x10] sm:$0xf] %v12485_v16  ;;  %v10097_v46 = vld [vmem:[%s15180_s3 + $0x444] sm:$0xf0]  ;;  %v7939_v50 = vld [vmem:[%s15180_s3 + $0x410] sm:$0xf] }
 0x131   :  { %3308 = vmatpush.bf16.msra.mxu1 %v7860_v29  ;;  %7656 = vmatmul.msk.bf16.vlgmr.msrb.gmra.mxu2 %vm793_vm0, %v10706_v57  ;;  %v10101_v57 = vld [vmem:[%s15180_s3 + $0x464] sm:$0xf0]  ;;  %v1434_v29 = vadd.f32 %v1433_v12, %v12407_v22 }
 0x132   :  { %3322 = vmatpush.bf16.msra.mxu2 %v7924_v20  ;;  %3295 = vmatpush.bf16.msra.mxu3 %v7788_v35  ;;  %v7980_v19 = vor.u32 %v10101_v57, %v7979_v3  ;;  %v1447_v20 = vpop.f32.mrf.mxu1  ;;  %v1485_v35 = vmax.f32 %v1420_v11, 0.0  ;;  %v3444_v3 = vunpack.c.l.b16 %v12485_v16  ;;  %v7820_v16 = vor.u32 %v10061_v0, %v7819_v54 }
 0x133   :  { %2662 = vmatmul.bf16.vlgmr.msrb.gmra.mxu0 %v10704_v56  ;;  %v10063_v56 = vld [vmem:[%s15180_s3 + $0x334] sm:$0xf0]  ;;  %v1448_v37 = vadd.f32 %v1447_v20, %v1434_v29 }
 0x134   :  { %3336 = vmatpush.bf16.msra.mxu0 %v7988_v60  ;;  %v7828_v51 = vor.u32 %v10063_v56, %v7827_v33  ;;  %v7964_v60 = vor.u32 %v10097_v46, %v7963_v45  ;;  %v10119_v33 = vld [vmem:[%s15180_s3 + $0x4f4] sm:$0xf0]  ;;  %v7867_v56 = vld [vmem:[%s15180_s3 + $0x380] sm:$0xf]  ;;  %v7740_v45 = vor.u32 %v10041_v26, %v7739_v21  ;;  %v7948_v46 = vor.u32 %v10093_v31, %v7947_v30 }
 0x135   :  { %3309 = vmatpush.bf16.msra.mxu1 %v7852_v52  ;;  %v1486_v48 = vmax.f32 %v1448_v37, 0.0  ;;  %v7812_v37 = vor.u32 %v10059_v18, %v7811_v17  ;;  %v8052_v49 = vor.u32 %v10119_v33, %v8051_v27  ;;  %v10115_v17 = vld [vmem:[%s15180_s3 + $0x4d4] sm:$0xf0]  ;;  %v10086_v18 = vld [vmem:[%s15180_s3 + $0x3f4] sm:$0xf] }
 0x136   :  { %3323 = vmatpush.bf16.msra.mxu2 %v7916_v44  ;;  %3296 = vmatpush.bf16.msra.mxu3 %v7780_v61  ;;  %v1476_v44 = vadd.f32 %v1475_v38, %v1462_v34  ;;  %v3442_v61 = vunpack.c.l.b16 %v12483_v15  ;;  %v10073_v34 = vld [vmem:[%s15180_s3 + $0x384] sm:$0xf0]  ;;  %v7803_v38 = vld [vmem:[%s15180_s3 + $0x300] sm:$0xf]  ;;  %v10066_v27 = vld [vmem:[%s15180_s3 + $0x354] sm:$0xf] }
 0x137   :  { %v1492_v63 = vpack.c.bf16 %v1486_v48, %v1485_v35  ;;  %v7797_v48 = vld [vmem:[%s15180_s3 + $0x2f8] sm:$0xf0] }
 0x138   :  { %3337 = vmatpush.bf16.msra.mxu0 %v7980_v19  ;;  %v1487_v52 = vmax.f32 %v1476_v44, 0.0  ;;  %v7748_v19 = vor.u32 %v10043_v2, %v7747_v1  ;;  %v1921_v7 = vpop.f32.mrf.mxu0  ;;  %v10054_v44 = vld [vmem:[%s15180_s3 + $0x2f4] sm:$0xf]  ;;  %v7804_v1 = vor.u32 %v10057_v43, %v7803_v38  ;;  %v10068_v2 = vld [vmem:[%s15180_s3 + $0x364] sm:$0xf] }
 0x139   :  { %3310 = vmatpush.bf16.msra.mxu1 %v7844_v13  ;;  %2044 = vst [vmem:[#allocation2 + $0x1c] sm:$0x33] %v1492_v63  ;;  %v3447_v10 = vunpack.c.l.b16 %v1492_v63  ;;  %v3448_v11 = vunpack.c.h.b16 %v1492_v63  ;;  %v10075_v13 = vld [vmem:[%s15180_s3 + $0x394] sm:$0xf0]  ;;  %v7917_v43 = vld [vmem:[%s15180_s3 + $0x3e8] sm:$0xf0] }
 0x13a   :  { %3324 = vmatpush.bf16.msra.mxu2 %v7908_v4  ;;  %3297 = vmatpush.bf16.msra.mxu3 %v7772_v14  ;;  %v1493_v57 = vpack.c.bf16 %v1487_v52, %v1487_v52  ;;  %v7955_v4 = vld [vmem:[%s15180_s3 + $0x430] sm:$0xf]  ;;  %v2079_v14 = vld [vmem:[#allocation2 + $0x24] sm:$0x4]  ;;  %v1893_v29 = vpop.f32.mrf.mxu1  ;;  %v7876_v24 = vor.u32 %v10075_v13, %v7875_v9  ;;  %v7868_v52 = vor.u32 %v10073_v34, %v7867_v56  ;;  %v1907_v54 = vpop.f32.mrf.mxu3  ;;  %v7781_v56 = vld [vmem:[%s15180_s3 + $0x2d8] sm:$0xf0] }
 0x13b   :  { %v12573_v53 = vpack.c.b16 %v3447_v10, %v3442_v61  ;;  %v12575_v12 = vpack.c.b16 %v3448_v11, %v3443_v62  ;;  %v7956_v20 = vor.u32 %v10095_v6, %v7955_v4  ;;  %v1894_v35 = vadd.f32 %v1893_v29, %v12122_v36  ;;  %v8043_v61 = vld [vmem:[%s15180_s3 + $0x4e0] sm:$0xf]  ;;  %v10117_v62 = vld [vmem:[%s15180_s3 + $0x4e4] sm:$0xf0]  ;;  %v10052_v4 = vld [vmem:[%s15180_s3 + $0x2e4] sm:$0xf] }
 0x13c   :  { %3338 = vmatpush.bf16.msra.mxu0 %v7972_v42  ;;  %2045 = vst [vmem:[#allocation2 + $0x24] sm:$0x3] %v1493_v57  ;;  %v3449_v15 = vunpack.c.l.b16 %v1493_v57  ;;  %v7861_v42 = vld [vmem:[%s15180_s3 + $0x378] sm:$0xf0]  ;;  %v7800_v57 = vor.u32 %v10054_v44, %v7797_v48  ;;  %v7789_v6 = vld [vmem:[%s15180_s3 + $0x2e8] sm:$0xf0] }
 0x13d   :  { %3311 = vmatpush.bf16.msra.mxu1 %v7836_v32  ;;  %v2080_v32 = vsel %vm11628_vm5, 0, %v2079_v14  ;;  %v1908_v0 = vadd.f32 %v1907_v54, %v1894_v35  ;;  %v8035_v9 = vld [vmem:[%s15180_s3 + $0x4d0] sm:$0xf]  ;;  %v8044_v14 = vor.u32 %v10117_v62, %v8043_v61  ;;  %v7845_v29 = vld [vmem:[%s15180_s3 + $0x358] sm:$0xf0]  ;;  %v7792_v31 = vor.u32 %v10052_v4, %v7789_v6 }
 0x13e   :  { %3325 = vmatpush.bf16.msra.mxu2 %v7900_v28  ;;  %3298 = vmatpush.bf16.msra.mxu3 %v7764_v39  ;;  %v12586_v28 = vpack.c.b16 %v3449_v15, %v3444_v3  ;;  %v10070_v39 = vld [vmem:[%s15180_s3 + $0x374] sm:$0xf]  ;;  %2081 = vst [vmem:[#allocation2 + $0x24] sm:$0x4] %v2080_v32  ;;  %v7853_v3 = vld [vmem:[%s15180_s3 + $0x368] sm:$0xf0]  ;;  %v8036_v34 = vor.u32 %v10115_v17, %v8035_v9 }
 0x13f   :  { %v7864_v63 = vor.u32 %v10070_v39, %v7861_v42  ;;  %v2024_v10 = vmax.f32 %v1908_v0, 0.0  ;;  %v7931_v15 = vld [vmem:[%s15180_s3 + $0x400] sm:$0xf]  ;;  %v10113_v42 = vld [vmem:[%s15180_s3 + $0x4c4] sm:$0xf0]  ;;  %v7848_v44 = vor.u32 %v10066_v27, %v7845_v29 }
 0x140   :  { %3339 = vmatpush.bf16.msra.mxu0 %v7964_v60  ;;  %v1923_v30 = vpop.f32.mrf.mxu0  ;;  %v7837_v48 = vld [vmem:[%s15180_s3 + $0x348] sm:$0xf0]  ;;  %v8019_v62 = vld [vmem:[%s15180_s3 + $0x4b0] sm:$0xf]  ;;  %v10062_v6 = vld [vmem:[%s15180_s3 + $0x334] sm:$0xf] }
 0x141   :  { %3312 = vmatpush.bf16.msra.mxu1 %v7828_v51  ;;  %v10091_v51 = vld [vmem:[%s15180_s3 + $0x414] sm:$0xf0]  ;;  %v1924_v33 = vadd.f32 %v1923_v30, %v12159_v55  ;;  %v7773_v54 = vld [vmem:[%s15180_s3 + $0x2c8] sm:$0xf0]  ;;  %v10109_v17 = vld [vmem:[%s15180_s3 + $0x4a4] sm:$0xf0] }
 0x142   :  { %3326 = vmatpush.bf16.msra.mxu2 %v7892_v47  ;;  %3299 = vmatpush.bf16.msra.mxu3 %v7756_v59  ;;  %v1922_v47 = vadd.f32 %v1921_v7, %v12159_v55  ;;  %v1935_v59 = vpop.f32.mrf.mxu2  ;;  %v1895_v13 = vpop.f32.mrf.mxu1  ;;  %v10084_v7 = vld [vmem:[%s15180_s3 + $0x3e4] sm:$0xf]  ;;  %v2082_v27 = vld [vmem:[#allocation2 + $0x3c] sm:$0x44] }
 0x143   :  { %v1896_v26 = vadd.f32 %v1895_v13, %v12122_v36  ;;  %v1909_v38 = vpop.f32.mrf.mxu3  ;;  %v7920_v61 = vor.u32 %v10084_v7, %v7917_v43  ;;  %v7765_v13 = vld [vmem:[%s15180_s3 + $0x2b8] sm:$0xf0]  ;;  %v10060_v30 = vld [vmem:[%s15180_s3 + $0x324] sm:$0xf]  ;;  %v10042_v43 = vld [vmem:[%s15180_s3 + $0x294] sm:$0xf] }
 0x144   :  { %3340 = vmatpush.bf16.msra.mxu0 %v7956_v20  ;;  %v1936_v60 = vadd.f32 %v1935_v59, %v1922_v47  ;;  %v7856_v20 = vor.u32 %v10068_v2, %v7853_v3  ;;  %v10064_v47 = vld [vmem:[%s15180_s3 + $0x344] sm:$0xf]  ;;  %v10111_v2 = vld [vmem:[%s15180_s3 + $0x4b4] sm:$0xf0]  ;;  %v10082_v3 = vld [vmem:[%s15180_s3 + $0x3d4] sm:$0xf] }
 0x145   :  { %3313 = vmatpush.bf16.msra.mxu1 %v7820_v16  ;;  %v10089_v16 = vld [vmem:[%s15180_s3 + $0x404] sm:$0xf0] }
 0x146   :  { %3327 = vmatpush.bf16.msra.mxu2 %v7884_v8  ;;  %3300 = vmatpush.bf16.msra.mxu3 %v7748_v19  ;;  %v7940_v8 = vor.u32 %v10091_v51, %v7939_v50  ;;  %v2025_v11 = vmax.f32 %v1936_v60, 0.0  ;;  %v7925_v19 = vld [vmem:[%s15180_s3 + $0x3f8] sm:$0xf0]  ;;  %v7932_v32 = vor.u32 %v10089_v16, %v7931_v15  ;;  %v8011_v16 = vld [vmem:[%s15180_s3 + $0x4a0] sm:$0xf] }
 0x147   :  { %v7928_v35 = vor.u32 %v10086_v18, %v7925_v19 }
 0x148   :  { %3341 = vmatpush.bf16.msra.mxu0 %v7948_v46  ;;  %v12667_v21 = vpack.c.bf16 %v2025_v11, %v2024_v10  ;;  %v10046_v11 = vld [vmem:[%s15180_s3 + $0x2b4] sm:$0xf] }
 0x149   :  { %3314 = vmatpush.bf16.msra.mxu1 %v7812_v37  ;;  %v8027_v37 = vld [vmem:[%s15180_s3 + $0x4c0] sm:$0xf]  ;;  %v7768_v29 = vor.u32 %v10046_v11, %v7765_v13 }
 0x14a   :  { %3328 = vmatpush.bf16.msra.mxu2 %v7876_v24  ;;  %3301 = vmatpush.bf16.msra.mxu3 %v7740_v45  ;;  %v10050_v24 = vld [vmem:[%s15180_s3 + $0x2d4] sm:$0xf]  ;;  %2047 = vst [vmem:[#allocation2 + $0x28] sm:$0xff] %v12667_v21  ;;  %v1937_v39 = vpop.f32.mrf.mxu2  ;;  %v1910_v45 = vadd.f32 %v1909_v38, %v1896_v26  ;;  %v8028_v59 = vor.u32 %v10113_v42, %v8027_v37  ;;  %v2874_v0 = vunpack.c.l.b16 %v12667_v21  ;;  %v2875_v60 = vunpack.c.h.b16 %v12667_v21  ;;  %v7901_v21 = vld [vmem:[%s15180_s3 + $0x3c8] sm:$0xf0] }
 0x14b   :  { %v1938_v46 = vadd.f32 %v1937_v39, %v1924_v33  ;;  %v8012_v33 = vor.u32 %v10109_v17, %v8011_v16  ;;  %v10107_v37 = vld [vmem:[%s15180_s3 + $0x494] sm:$0xf0]  ;;  %v10078_v38 = vld [vmem:[%s15180_s3 + $0x3b4] sm:$0xf]  ;;  %v7893_v39 = vld [vmem:[%s15180_s3 + $0x3b8] sm:$0xf0] }
 0x14c   :  { %3342 = vmatpush.bf16.msra.mxu0 %v7940_v8  ;;  %v2029_v50 = vmax.f32 %v1910_v45, 0.0  ;;  %v7829_v8 = vld [vmem:[%s15180_s3 + $0x338] sm:$0xf0]  ;;  %v10074_v16 = vld [vmem:[%s15180_s3 + $0x394] sm:$0xf] }
 0x14d   :  { %3315 = vmatpush.bf16.msra.mxu1 %v7804_v1  ;;  %v2030_v51 = vmax.f32 %v1938_v46, 0.0  ;;  %v7832_v26 = vor.u32 %v10062_v6, %v7829_v8  ;;  %v7813_v45 = vld [vmem:[%s15180_s3 + $0x318] sm:$0xf0]  ;;  %v7741_v6 = vld [vmem:[%s15180_s3 + $0x288] sm:$0xf0] }
 0x14e   :  { %3350 = vmatpush.bf16.msrb.mxu3 %v8052_v49  ;;  %3329 = vmatpush.bf16.msra.mxu2 %v7868_v52  ;;  %v7784_v49 = vor.u32 %v10050_v24, %v7781_v56  ;;  %v10048_v52 = vld [vmem:[%s15180_s3 + $0x2c4] sm:$0xf]  ;;  %v7749_v46 = vld [vmem:[%s15180_s3 + $0x298] sm:$0xf0]  ;;  %v10118_v8 = vld [vmem:[%s15180_s3 + $0x4f4] sm:$0xf] }
 0x14f   :  { %v2037_v1 = vpack.c.bf16 %v2030_v51, %v2029_v50  ;;  %v7776_v4 = vor.u32 %v10048_v52, %v7773_v54  ;;  %v10044_v24 = vld [vmem:[%s15180_s3 + $0x2a4] sm:$0xf]  ;;  %v10105_v50 = vld [vmem:[%s15180_s3 + $0x484] sm:$0xf0]  ;;  %v10102_v51 = vld [vmem:[%s15180_s3 + $0x474] sm:$0xf] }
 0x150   :  { %3343 = vmatpush.bf16.msra.mxu0 %v7932_v32  ;;  %v7757_v32 = vld [vmem:[%s15180_s3 + $0x2a8] sm:$0xf0]  ;;  %v2085_v52 = vld [vmem:[#allocation2 + $0x44] sm:$0x44]  ;;  %v7877_v17 = vld [vmem:[%s15180_s3 + $0x398] sm:$0xf0] }
 0x151   :  { %3364 = vmatpush.bf16.msrb.mxu1 %v7800_v57  ;;  %v7909_v57 = vld [vmem:[%s15180_s3 + $0x3d8] sm:$0xf0]  ;;  %2050 = vst [vmem:[#allocation2 + $0x3c] sm:$0x33] %v2037_v1  ;;  %v2879_v9 = vunpack.c.l.b16 %v2037_v1  ;;  %v2880_v10 = vunpack.c.h.b16 %v2037_v1  ;;  %v7760_v7 = vor.u32 %v10044_v24, %v7757_v32  ;;  %v10076_v54 = vld [vmem:[%s15180_s3 + $0x3a4] sm:$0xf] }
 0x152   :  { %3378 = vmatpush.bf16.msrb.mxu2 %v7864_v63  ;;  %3351 = vmatpush.bf16.msrb.mxu3 %v8044_v14  ;;  %v7840_v63 = vor.u32 %v10064_v47, %v7837_v48  ;;  %v8020_v14 = vor.u32 %v10111_v2, %v8019_v62  ;;  %v7912_v15 = vor.u32 %v10082_v3, %v7909_v57  ;;  %v7995_v47 = vld [vmem:[%s15180_s3 + $0x480] sm:$0xf]  ;;  %v2086_v62 = vsel %vm11669_vm7, 0, %v2085_v52  ;;  %v7989_v1 = vld [vmem:[%s15180_s3 + $0x478] sm:$0xf0] }
 0x153   :  { %v12740_v18 = vpack.c.b16 %v2879_v9, %v2874_v0  ;;  %v12742_v19 = vpack.c.b16 %v2880_v10, %v2875_v60  ;;  %v7752_v60 = vor.u32 %v10042_v43, %v7749_v46  ;;  %v10056_v2 = vld [vmem:[%s15180_s3 + $0x304] sm:$0xf]  ;;  %v7805_v3 = vld [vmem:[%s15180_s3 + $0x308] sm:$0xf0]  ;;  %2087 = vst [vmem:[#allocation2 + $0x44] sm:$0x44] %v2086_v62  ;;  %v7996_v10 = vor.u32 %v10105_v50, %v7995_v47 }
 0x154   :  { %3392 = vmatpush.bf16.msrb.mxu0 %v7928_v35  ;;  %v2083_v35 = vsel %vm11669_vm7, 0, %v2082_v27  ;;  %v1991_v25 = vpop.f32.mrf.mxu0  ;;  %v8053_v9 = vld [vmem:[%s15180_s3 + $0x4f8] sm:$0xf0]  ;;  %v10100_v27 = vld [vmem:[%s15180_s3 + $0x464] sm:$0xf] }
 0x155   :  { %3365 = vmatpush.bf16.msrb.mxu1 %v7792_v31  ;;  %v7821_v31 = vld [vmem:[%s15180_s3 + $0x328] sm:$0xf0]  ;;  %3302 = vmatmul.bf16.vlgmr.msra.gmra.mxu3 %v12740_v18  ;;  %2084 = vst [vmem:[#allocation2 + $0x3c] sm:$0x44] %v2083_v35  ;;  %v10116_v32 = vld [vmem:[%s15180_s3 + $0x4e4] sm:$0xf] }
 0x156   :  { %3379 = vmatpush.bf16.msrb.mxu2 %v7856_v20  ;;  %3352 = vmatpush.bf16.msrb.mxu3 %v8036_v34  ;;  %v10080_v20 = vld [vmem:[%s15180_s3 + $0x3c4] sm:$0xf]  ;;  %v8003_v34 = vld [vmem:[%s15180_s3 + $0x490] sm:$0xf]  ;;  %v7824_v42 = vor.u32 %v10060_v30, %v7821_v31  ;;  %v8056_v30 = vor.u32 %v10118_v8, %v8053_v9  ;;  %v10114_v47 = vld [vmem:[%s15180_s3 + $0x4d4] sm:$0xf] }
 0x157   :  { %3316 = vmatmul.bf16.vlgmr.msra.gmra.mxu1 %v12742_v19  ;;  %v7904_v56 = vor.u32 %v10080_v20, %v7901_v21  ;;  %v8004_v48 = vor.u32 %v10107_v37, %v8003_v34  ;;  %v7808_v20 = vor.u32 %v10056_v2, %v7805_v3  ;;  %v10072_v35 = vld [vmem:[%s15180_s3 + $0x384] sm:$0xf]  ;;  %v7869_v37 = vld [vmem:[%s15180_s3 + $0x388] sm:$0xf0]  ;;  %v8021_v9 = vld [vmem:[%s15180_s3 + $0x4b8] sm:$0xf0] }
 0x158   :  { %3393 = vmatpush.bf16.msrb.mxu0 %v7920_v61  ;;  %v1949_v0 = vpop.f32.mrf.mxu3  ;;  %v7965_v62 = vld [vmem:[%s15180_s3 + $0x448] sm:$0xf0] }
 0x159   :  { %3366 = vmatpush.bf16.msrb.mxu1 %v7784_v49  ;;  %v7896_v49 = vor.u32 %v10078_v38, %v7893_v39  ;;  %v1950_v57 = vadd.f32 %v1949_v0, %v12356_v58 }
 0x15a   :  { %3380 = vmatpush.bf16.msrb.mxu2 %v7848_v44  ;;  %3353 = vmatpush.bf16.msrb.mxu3 %v8028_v59  ;;  %v10058_v44 = vld [vmem:[%s15180_s3 + $0x314] sm:$0xf]  ;;  %v7885_v59 = vld [vmem:[%s15180_s3 + $0x3a8] sm:$0xf0] }
 0x15b   :  { %v7816_v61 = vor.u32 %v10058_v44, %v7813_v45  ;;  %v7888_v11 = vor.u32 %v10076_v54, %v7885_v59 }
 0x15c   :  { %3394 = vmatpush.bf16.msrb.mxu0 %v7912_v15  ;;  %v7992_v15 = vor.u32 %v10102_v51, %v7989_v1  ;;  %v1993_v51 = vpop.f32.mrf.mxu0 }
 0x15d   :  { %3367 = vmatpush.bf16.msrb.mxu1 %v7776_v4  ;;  %v10040_v4 = vld [vmem:[%s15180_s3 + $0x284] sm:$0xf] }
 0x15e   :  { %3381 = vmatpush.bf16.msrb.mxu2 %v7840_v63  ;;  %3354 = vmatpush.bf16.msrb.mxu3 %v8020_v14  ;;  %v1963_v63 = vpop.f32.mrf.mxu1  ;;  %v1977_v14 = vpop.f32.mrf.mxu2 }
 0x15f   :  { %v1964_v13 = vadd.f32 %v1963_v63, %v1950_v57  ;;  %v1978_v21 = vadd.f32 %v1977_v14, %v12407_v22  ;;  %v10094_v57 = vld [vmem:[%s15180_s3 + $0x434] sm:$0xf]  ;;  %v9991_v14 = vld [vmem:[%s15180_s3 + $0xf4] sm:$0xf0] }
 0x160   :  { %3395 = vmatpush.bf16.msrb.mxu0 %v7904_v56  ;;  %v7880_v56 = vor.u32 %v10074_v16, %v7877_v17  ;;  %v1951_v39 = vpop.f32.mrf.mxu3 }
 0x161   :  { %3368 = vmatpush.bf16.msrb.mxu1 %v7768_v29  ;;  %v7981_v29 = vld [vmem:[%s15180_s3 + $0x468] sm:$0xf0]  ;;  %v2026_v31 = vmax.f32 %v1964_v13, 0.0  ;;  %v1992_v24 = vadd.f32 %v1991_v25, %v1978_v21  ;;  %v1952_v43 = vadd.f32 %v1951_v39, %v12356_v58  ;;  %v7957_v25 = vld [vmem:[%s15180_s3 + $0x438] sm:$0xf0] }
 0x162   :  { %3382 = vmatpush.bf16.msrb.mxu2 %v7832_v26  ;;  %3355 = vmatpush.bf16.msrb.mxu3 %v8012_v33  ;;  %v7744_v26 = vor.u32 %v10040_v4, %v7741_v6  ;;  %v8045_v33 = vld [vmem:[%s15180_s3 + $0x4e8] sm:$0xf0]  ;;  %v7984_v34 = vor.u32 %v10100_v27, %v7981_v29  ;;  %v10110_v6 = vld [vmem:[%s15180_s3 + $0x4b4] sm:$0xf]  ;;  %v8179_v13 = vld [vmem:[%s15180_s3 + $0xf0] sm:$0xf] }
 0x163   :  { %v2027_v38 = vmax.f32 %v1992_v24, 0.0  ;;  %v8048_v44 = vor.u32 %v10116_v32, %v8045_v33  ;;  %v7949_v27 = vld [vmem:[%s15180_s3 + $0x428] sm:$0xf0]  ;;  %v8024_v29 = vor.u32 %v10110_v6, %v8021_v9  ;;  %v8180_v33 = vor.u32 %v9991_v14, %v8179_v13  ;;  %v9989_v39 = vld [vmem:[%s15180_s3 + $0xe4] sm:$0xf0] }
 0x164   :  { %3396 = vmatpush.bf16.msrb.mxu0 %v7896_v49  ;;  %v7872_v49 = vor.u32 %v10072_v35, %v7869_v37  ;;  %v9973_v35 = vld [vmem:[%s15180_s3 + $0x64] sm:$0xf0]  ;;  %v8155_v9 = vld [vmem:[%s15180_s3 + $0xc0] sm:$0xf]  ;;  %v8307_v13 = vld [vmem:[%s15180_s3 + $0x1f0] sm:$0xf] }
 0x165   :  { %3369 = vmatpush.bf16.msrb.mxu1 %v7760_v7  ;;  %v7973_v7 = vld [vmem:[%s15180_s3 + $0x458] sm:$0xf0]  ;;  %v2035_v45 = vpack.c.bf16 %v2027_v38, %v2026_v31  ;;  %v10108_v31 = vld [vmem:[%s15180_s3 + $0x4a4] sm:$0xf]  ;;  %v8171_v38 = vld [vmem:[%s15180_s3 + $0xe0] sm:$0xf] }
 0x166   :  { %3383 = vmatpush.bf16.msrb.mxu2 %v7824_v42  ;;  %3356 = vmatpush.bf16.msrb.mxu3 %v8004_v48  ;;  %v10098_v42 = vld [vmem:[%s15180_s3 + $0x454] sm:$0xf]  ;;  %v1965_v46 = vpop.f32.mrf.mxu1  ;;  %v8037_v48 = vld [vmem:[%s15180_s3 + $0x4d8] sm:$0xf0]  ;;  %v1979_v50 = vpop.f32.mrf.mxu2  ;;  %v10023_v14 = vld [vmem:[%s15180_s3 + $0x1f4] sm:$0xf0] }
 0x167   :  { %v7976_v52 = vor.u32 %v10098_v42, %v7973_v7  ;;  %2048 = vst [vmem:[#allocation2 + $0x30] sm:$0xff] %v2035_v45  ;;  %v1966_v54 = vadd.f32 %v1965_v46, %v1952_v43  ;;  %v1980_v59 = vadd.f32 %v1979_v50, %v12407_v22  ;;  %v8040_v63 = vor.u32 %v10114_v47, %v8037_v48  ;;  %v10090_v43 = vld [vmem:[%s15180_s3 + $0x414] sm:$0xf] }
 0x168   :  { %3397 = vmatpush.bf16.msrb.mxu0 %v7888_v11  ;;  %v9975_v11 = vld [vmem:[%s15180_s3 + $0x74] sm:$0xf0]  ;;  %v2876_v16 = vunpack.c.l.b16 %v2035_v45  ;;  %v2877_v17 = vunpack.c.h.b16 %v2035_v45  ;;  %v10106_v48 = vld [vmem:[%s15180_s3 + $0x494] sm:$0xf] }
 0x169   :  { %3370 = vmatpush.bf16.msrb.mxu1 %v7752_v60  ;;  %v1994_v0 = vadd.f32 %v1993_v51, %v1980_v59  ;;  %v8029_v60 = vld [vmem:[%s15180_s3 + $0x4c8] sm:$0xf0]  ;;  %v2031_v2 = vmax.f32 %v1966_v54, 0.0  ;;  %v8172_v51 = vor.u32 %v9989_v39, %v8171_v38  ;;  %v9971_v54 = vld [vmem:[%s15180_s3 + $0x54] sm:$0xf0] }
 0x16a   :  { %3384 = vmatpush.bf16.msrb.mxu2 %v7816_v61  ;;  %3357 = vmatpush.bf16.msrb.mxu3 %v7996_v10  ;;  %v10096_v61 = vld [vmem:[%s15180_s3 + $0x444] sm:$0xf]  ;;  %v8115_v10 = vld [vmem:[%s15180_s3 + $0x70] sm:$0xf]  ;;  %v2088_v59 = vld [vmem:[#allocation2 + $0x4c] sm:$0x4] }
 0x16b   :  { %v7968_v1 = vor.u32 %v10096_v61, %v7965_v62  ;;  %v2032_v3 = vmax.f32 %v1994_v0, 0.0  ;;  %v8163_v61 = vld [vmem:[%s15180_s3 + $0xd0] sm:$0xf]  ;;  %v9987_v62 = vld [vmem:[%s15180_s3 + $0xd4] sm:$0xf0] }
 0x16c   :  { %3398 = vmatpush.bf16.msrb.mxu0 %v7880_v56  ;;  %v8013_v56 = vld [vmem:[%s15180_s3 + $0x4a8] sm:$0xf0]  ;;  %v8164_v5 = vor.u32 %v9987_v62, %v8163_v61  ;;  %v8243_v39 = vld [vmem:[%s15180_s3 + $0x170] sm:$0xf]  ;;  %v8235_v61 = vld [vmem:[%s15180_s3 + $0x160] sm:$0xf] }
 0x16d   :  { %3371 = vmatpush.bf16.msrb.mxu1 %v7744_v26  ;;  %v2038_v8 = vpack.c.bf16 %v2032_v3, %v2031_v2  ;;  %v10092_v26 = vld [vmem:[%s15180_s3 + $0x424] sm:$0xf]  ;;  %v8016_v46 = vor.u32 %v10108_v31, %v8013_v56  ;;  %v9967_v31 = vld [vmem:[%s15180_s3 + $0x34] sm:$0xf0]  ;;  %v10005_v62 = vld [vmem:[%s15180_s3 + $0x164] sm:$0xf0] }
 0x16e   :  { %3406 = vmatpush.bf16.msra.mxu3 %v7992_v15  ;;  %3385 = vmatpush.bf16.msrb.mxu2 %v7808_v20  ;;  %v7960_v15 = vor.u32 %v10094_v57, %v7957_v25  ;;  %v7952_v42 = vor.u32 %v10092_v26, %v7949_v27  ;;  %v10104_v57 = vld [vmem:[%s15180_s3 + $0x484] sm:$0xf]  ;;  %v7997_v25 = vld [vmem:[%s15180_s3 + $0x488] sm:$0xf0]  ;;  %v9983_v56 = vld [vmem:[%s15180_s3 + $0xb4] sm:$0xf0] }
 0x16f   :  { %2051 = vst [vmem:[#allocation2 + $0x44] sm:$0x33] %v2038_v8  ;;  %v2881_v20 = vunpack.c.l.b16 %v2038_v8  ;;  %v2882_v21 = vunpack.c.h.b16 %v2038_v8  ;;  %v9969_v8 = vld [vmem:[%s15180_s3 + $0x44] sm:$0xf0] }
 0x170   :  { %3372 = vmatmul.bf16.vlgmr.msrb.gmra.mxu1 %v12740_v18  ;;  %v10112_v18 = vld [vmem:[%s15180_s3 + $0x4c4] sm:$0xf]  ;;  %3399 = vmatpush.bf16.msrb.mxu0 %v7872_v49  ;;  %v8005_v49 = vld [vmem:[%s15180_s3 + $0x498] sm:$0xf0] }
 0x171   :  { %3420 = vmatpush.bf16.msra.mxu1 %v8056_v30  ;;  %v8032_v4 = vor.u32 %v10112_v18, %v8029_v60  ;;  %v8116_v30 = vor.u32 %v9975_v11, %v8115_v10  ;;  %v12914_v24 = vpack.c.b16 %v2881_v20, %v2876_v16  ;;  %v12916_v32 = vpack.c.b16 %v2882_v21, %v2877_v17  ;;  %v2005_v37 = vpop.f32.mrf.mxu1  ;;  %v10088_v18 = vld [vmem:[%s15180_s3 + $0x404] sm:$0xf]  ;;  %v7933_v60 = vld [vmem:[%s15180_s3 + $0x408] sm:$0xf0]  ;;  %v9985_v10 = vld [vmem:[%s15180_s3 + $0xc4] sm:$0xf0] }
 0x172   :  { %3407 = vmatpush.bf16.msra.mxu3 %v7984_v34  ;;  %v8107_v34 = vld [vmem:[%s15180_s3 + $0x60] sm:$0xf]  ;;  %v2006_v7 = vadd.f32 %v2005_v37, %v12410_v23  ;;  %v8008_v2 = vor.u32 %v10106_v48, %v8005_v49  ;;  %v8000_v20 = vor.u32 %v10104_v57, %v7997_v25  ;;  %v8156_v27 = vor.u32 %v9985_v10, %v8155_v9  ;;  %v9981_v48 = vld [vmem:[%s15180_s3 + $0xa4] sm:$0xf0]  ;;  %v8291_v49 = vld [vmem:[%s15180_s3 + $0x1d0] sm:$0xf] }
 0x173   :  { %3330 = vmatmul.bf16.vlgmr.msra.gmra.mxu2 %v12914_v24  ;;  %3344 = vmatmul.bf16.vlgmr.msra.gmra.mxu0 %v12916_v32  ;;  %v8108_v47 = vor.u32 %v9973_v35, %v8107_v34  ;;  %v8299_v34 = vld [vmem:[%s15180_s3 + $0x1e0] sm:$0xf]  ;;  %v10021_v35 = vld [vmem:[%s15180_s3 + $0x1e4] sm:$0xf0]  ;;  %v8236_v57 = vor.u32 %v10005_v62, %v8235_v61 }
 0x174   :  { %v2019_v45 = vpop.f32.mrf.mxu3  ;;  %3860 = vmatpush.bf16.msra.mxu2 %v8116_v30  ;;  %3874 = vmatpush.bf16.msra.mxu0 %v8180_v33  ;;  %v8083_v30 = vld [vmem:[%s15180_s3 + $0x30] sm:$0xf]  ;;  %v9961_v10 = vld [vmem:[%s15180_s3 + $0x4] sm:$0xf0] }
 0x175   :  { %3421 = vmatpush.bf16.msra.mxu1 %v8048_v44  ;;  %v7941_v44 = vld [vmem:[%s15180_s3 + $0x418] sm:$0xf0]  ;;  %v2020_v50 = vadd.f32 %v2019_v45, %v2006_v7  ;;  %v8147_v33 = vld [vmem:[%s15180_s3 + $0xb0] sm:$0xf]  ;;  %v8084_v38 = vor.u32 %v9967_v31, %v8083_v30  ;;  %v8075_v45 = vld [vmem:[%s15180_s3 + $0x20] sm:$0xf] }
 0x176   :  { %3408 = vmatpush.bf16.msra.mxu3 %v7976_v52  ;;  %v8099_v52 = vld [vmem:[%s15180_s3 + $0x50] sm:$0xf]  ;;  %v8219_v31 = vld [vmem:[%s15180_s3 + $0x140] sm:$0xf] }
 0x177   :  { %v2028_v0 = vmax.f32 %v2020_v50, 0.0  ;;  %v8100_v3 = vor.u32 %v9971_v54, %v8099_v52  ;;  %v10019_v50 = vld [vmem:[%s15180_s3 + $0x1d4] sm:$0xf0] }
 0x178   :  { %3861 = vmatpush.bf16.msra.mxu2 %v8108_v47  ;;  %3875 = vmatpush.bf16.msra.mxu0 %v8172_v51  ;;  %v8139_v47 = vld [vmem:[%s15180_s3 + $0xa0] sm:$0xf] }
 0x179   :  { %3422 = vmatpush.bf16.msra.mxu1 %v8040_v63  ;;  %v7944_v63 = vor.u32 %v10090_v43, %v7941_v44  ;;  %v2036_v6 = vpack.c.bf16 %v2028_v0, %v2028_v0  ;;  %v2007_v11 = vpop.f32.mrf.mxu1  ;;  %v8148_v43 = vor.u32 %v9983_v56, %v8147_v33  ;;  %v8300_v44 = vor.u32 %v10021_v35, %v8299_v34  ;;  %v10001_v33 = vld [vmem:[%s15180_s3 + $0x144] sm:$0xf0]  ;;  %v8267_v35 = vld [vmem:[%s15180_s3 + $0x1a0] sm:$0xf] }
 0x17a   :  { %3409 = vmatpush.bf16.msra.mxu3 %v7968_v1  ;;  %v2089_v1 = vsel %vm11628_vm5, 0, %v2088_v59  ;;  %v2008_v16 = vadd.f32 %v2007_v11, %v12410_v23  ;;  %v8140_v0 = vor.u32 %v9981_v48, %v8139_v47  ;;  %v8123_v11 = vld [vmem:[%s15180_s3 + $0x80] sm:$0xf] }
 0x17b   :  { %2090 = vst [vmem:[#allocation2 + $0x4c] sm:$0x4] %v2089_v1  ;;  %v2878_v51 = vunpack.c.l.b16 %v2036_v6  ;;  %v9979_v1 = vld [vmem:[%s15180_s3 + $0x94] sm:$0xf0] }
 0x17c   :  { %2049 = vst [vmem:[#allocation2 + $0x38] sm:$0xf] %v2036_v6  ;;  %v2021_v17 = vpop.f32.mrf.mxu3  ;;  %3862 = vmatpush.bf16.msra.mxu2 %v8100_v3  ;;  %3876 = vmatpush.bf16.msra.mxu0 %v8164_v5  ;;  %v10017_v3 = vld [vmem:[%s15180_s3 + $0x1c4] sm:$0xf0]  ;;  %v10003_v6 = vld [vmem:[%s15180_s3 + $0x154] sm:$0xf0] }
 0x17d   :  { %3423 = vmatpush.bf16.msra.mxu1 %v8032_v4  ;;  %v8091_v4 = vld [vmem:[%s15180_s3 + $0x40] sm:$0xf]  ;;  %v2022_v26 = vadd.f32 %v2021_v17, %v2008_v16  ;;  %v8371_v16 = vld [vmem:[%s15180_s3 + $0x270] sm:$0xf]  ;;  %v10039_v17 = vld [vmem:[%s15180_s3 + $0x274] sm:$0xf0] }
 0x17e   :  { %3410 = vmatpush.bf16.msra.mxu3 %v7960_v15  ;;  %v7936_v15 = vor.u32 %v10088_v18, %v7933_v60  ;;  %v8092_v21 = vor.u32 %v9969_v8, %v8091_v4  ;;  %v8292_v18 = vor.u32 %v10019_v50, %v8291_v49  ;;  %v8131_v60 = vld [vmem:[%s15180_s3 + $0x90] sm:$0xf]  ;;  %v8059_v5 = vld [vmem:[%s15180_s3] sm:$0xf]  ;;  %v8372_v56 = vor.u32 %v10039_v17, %v8371_v16  ;;  %v10011_v50 = vld [vmem:[%s15180_s3 + $0x194] sm:$0xf0] }
 0x17f   :  { %v2033_v37 = vmax.f32 %v2022_v26, 0.0  ;;  %v8227_v4 = vld [vmem:[%s15180_s3 + $0x150] sm:$0xf]  ;;  %v8132_v8 = vor.u32 %v9979_v1, %v8131_v60  ;;  %v10009_v60 = vld [vmem:[%s15180_s3 + $0x184] sm:$0xf0] }
 0x180   :  { %3863 = vmatpush.bf16.msra.mxu2 %v8092_v21  ;;  %3877 = vmatpush.bf16.msra.mxu0 %v8156_v27  ;;  %v8117_v21 = vld [vmem:[%s15180_s3 + $0x78] sm:$0xf0]  ;;  %v8228_v26 = vor.u32 %v10003_v6, %v8227_v4  ;;  %v8060_v27 = vor.u32 %v9961_v10, %v8059_v5  ;;  %v8259_v49 = vld [vmem:[%s15180_s3 + $0x190] sm:$0xf]  ;;  %v8347_v1 = vld [vmem:[%s15180_s3 + $0x240] sm:$0xf] }
 0x181   :  { %3424 = vmatpush.bf16.msra.mxu1 %v8024_v29  ;;  %v8308_v29 = vor.u32 %v10023_v14, %v8307_v13  ;;  %v2039_v7 = vpack.c.bf16 %v2033_v37, %v2033_v37  ;;  %v9977_v13 = vld [vmem:[%s15180_s3 + $0x84] sm:$0xf0]  ;;  %v8275_v14 = vld [vmem:[%s15180_s3 + $0x1b0] sm:$0xf]  ;;  %v8260_v62 = vor.u32 %v10011_v50, %v8259_v49  ;;  %v10006_v4 = vld [vmem:[%s15180_s3 + $0x174] sm:$0xf] }
 0x182   :  { %3411 = vmatpush.bf16.msra.mxu3 %v7952_v42  ;;  %v10007_v42 = vld [vmem:[%s15180_s3 + $0x174] sm:$0xf0]  ;;  %v10013_v37 = vld [vmem:[%s15180_s3 + $0x1a4] sm:$0xf0]  ;;  %v8195_v5 = vld [vmem:[%s15180_s3 + $0x110] sm:$0xf] }
 0x183   :  { %2052 = vst [vmem:[#allocation2 + $0x4c] sm:$0x3] %v2039_v7  ;;  %v2883_v52 = vunpack.c.l.b16 %v2039_v7  ;;  %3386 = vmatmul.bf16.vlgmr.msrb.gmra.mxu2 %v12742_v19  ;;  %3400 = vmatmul.bf16.vlgmr.msrb.gmra.mxu0 %v12914_v24  ;;  %v8244_v54 = vor.u32 %v10007_v42, %v8243_v39  ;;  %v8067_v19 = vld [vmem:[%s15180_s3 + $0x10] sm:$0xf]  ;;  %v9963_v24 = vld [vmem:[%s15180_s3 + $0x14] sm:$0xf0] }
 0x184   :  { %3864 = vmatpush.bf16.msra.mxu2 %v8084_v38  ;;  %3878 = vmatpush.bf16.msra.mxu0 %v8148_v43  ;;  %v8068_v25 = vor.u32 %v9963_v24, %v8067_v19  ;;  %v8363_v38 = vld [vmem:[%s15180_s3 + $0x260] sm:$0xf]  ;;  %v10037_v39 = vld [vmem:[%s15180_s3 + $0x264] sm:$0xf0]  ;;  %v9972_v42 = vld [vmem:[%s15180_s3 + $0x64] sm:$0xf]  ;;  %v8220_v43 = vor.u32 %v10001_v33, %v8219_v31 }
 0x185   :  { %3425 = vmatpush.bf16.msra.mxu1 %v8016_v46  ;;  %v9965_v46 = vld [vmem:[%s15180_s3 + $0x24] sm:$0xf0]  ;;  %v8109_v7 = vld [vmem:[%s15180_s3 + $0x68] sm:$0xf0]  ;;  %v8364_v47 = vor.u32 %v10037_v39, %v8363_v38  ;;  %v8251_v24 = vld [vmem:[%s15180_s3 + $0x180] sm:$0xf] }
 0x186   :  { %3412 = vmatpush.bf16.msra.mxu3 %v7944_v63  ;;  %v8076_v59 = vor.u32 %v9965_v46, %v8075_v45  ;;  %v2888_v63 = vpack.c.b16 %v2883_v52, %v2878_v51  ;;  %v8211_v45 = vld [vmem:[%s15180_s3 + $0x130] sm:$0xf]  ;;  %v9999_v46 = vld [vmem:[%s15180_s3 + $0x134] sm:$0xf0]  ;;  %v8112_v48 = vor.u32 %v9972_v42, %v8109_v7  ;;  %v8252_v6 = vor.u32 %v10009_v60, %v8251_v24  ;;  %v8085_v16 = vld [vmem:[%s15180_s3 + $0x38] sm:$0xf0] }
 0x187   :  { %v8355_v51 = vld [vmem:[%s15180_s3 + $0x250] sm:$0xf]  ;;  %v10035_v52 = vld [vmem:[%s15180_s3 + $0x254] sm:$0xf0]  ;;  %v8212_v61 = vor.u32 %v9999_v46, %v8211_v45  ;;  %v9990_v31 = vld [vmem:[%s15180_s3 + $0xf4] sm:$0xf] }
 0x188   :  { %3358 = vmatmul.bf16.vlgmr.msrb.gmra.mxu3 %v2888_v63  ;;  %3865 = vmatpush.bf16.msra.mxu2 %v8076_v59  ;;  %v8101_v59 = vld [vmem:[%s15180_s3 + $0x58] sm:$0xf0]  ;;  %v8077_v38 = vld [vmem:[%s15180_s3 + $0x28] sm:$0xf0]  ;;  %v10002_v42 = vld [vmem:[%s15180_s3 + $0x154] sm:$0xf] }
 0x189   :  { %3426 = vmatpush.bf16.msra.mxu1 %v8008_v2  ;;  %v8283_v2 = vld [vmem:[%s15180_s3 + $0x1c0] sm:$0xf]  ;;  %3879 = vmatpush.bf16.msra.mxu0 %v8140_v0  ;;  %v9997_v0 = vld [vmem:[%s15180_s3 + $0x124] sm:$0xf0]  ;;  %v8181_v33 = vld [vmem:[%s15180_s3 + $0xf8] sm:$0xf0] }
 0x18a   :  { %3413 = vmatpush.bf16.msra.mxu3 %v7936_v15  ;;  %v8284_v9 = vor.u32 %v10017_v3, %v8283_v2  ;;  %v10015_v15 = vld [vmem:[%s15180_s3 + $0x1b4] sm:$0xf0]  ;;  %v10033_v2 = vld [vmem:[%s15180_s3 + $0x244] sm:$0xf0]  ;;  %v9968_v3 = vld [vmem:[%s15180_s3 + $0x44] sm:$0xf] }
 0x18b   :  { %v8276_v30 = vor.u32 %v10015_v15, %v8275_v14  ;;  %v10031_v14 = vld [vmem:[%s15180_s3 + $0x234] sm:$0xf0]  ;;  %v9966_v15 = vld [vmem:[%s15180_s3 + $0x34] sm:$0xf]  ;;  %v8229_v7 = vld [vmem:[%s15180_s3 + $0x158] sm:$0xf0] }
 0x18c   :  { %3866 = vmatpush.bf16.msra.mxu2 %v8068_v25  ;;  %v9988_v46 = vld [vmem:[%s15180_s3 + $0xe4] sm:$0xf]  ;;  %v8232_v49 = vor.u32 %v10002_v42, %v8229_v7  ;;  %v10027_v50 = vld [vmem:[%s15180_s3 + $0x214] sm:$0xf0]  ;;  %v10025_v24 = vld [vmem:[%s15180_s3 + $0x204] sm:$0xf0] }
 0x18d   :  { %3427 = vmatpush.bf16.msra.mxu1 %v8000_v20  ;;  %v9974_v20 = vld [vmem:[%s15180_s3 + $0x74] sm:$0xf]  ;;  %3880 = vmatpush.bf16.msra.mxu0 %v8132_v8  ;;  %v9995_v8 = vld [vmem:[%s15180_s3 + $0x114] sm:$0xf0]  ;;  %v8357_v7 = vld [vmem:[%s15180_s3 + $0x258] sm:$0xf0] }
 0x18e   :  { %3888 = vmatpush.bf16.msrb.mxu3 %v8244_v54  ;;  %v8120_v34 = vor.u32 %v9974_v20, %v8117_v21  ;;  %v9970_v54 = vld [vmem:[%s15180_s3 + $0x54] sm:$0xf]  ;;  %v8196_v17 = vor.u32 %v9995_v8, %v8195_v5  ;;  %v10004_v20 = vld [vmem:[%s15180_s3 + $0x164] sm:$0xf]  ;;  %v8237_v21 = vld [vmem:[%s15180_s3 + $0x168] sm:$0xf0] }
 0x18f   :  { %v8104_v19 = vor.u32 %v9970_v54, %v8101_v59  ;;  %v10000_v54 = vld [vmem:[%s15180_s3 + $0x144] sm:$0xf]  ;;  %v8221_v59 = vld [vmem:[%s15180_s3 + $0x148] sm:$0xf0]  ;;  %v8373_v5 = vld [vmem:[%s15180_s3 + $0x278] sm:$0xf0] }
 0x190   :  { %3428 = vmatmul.bf16.vlgmr.msra.gmra.mxu1 %v2888_v63  ;;  %3867 = vmatpush.bf16.msra.mxu2 %v8060_v27  ;;  %v8203_v63 = vld [vmem:[%s15180_s3 + $0x120] sm:$0xf]  ;;  %v9993_v27 = vld [vmem:[%s15180_s3 + $0x104] sm:$0xf0]  ;;  %v8224_v60 = vor.u32 %v10000_v54, %v8221_v59  ;;  %v10034_v42 = vld [vmem:[%s15180_s3 + $0x254] sm:$0xf] }
 0x191   :  { %3902 = vmatpush.bf16.msrb.mxu1 %v8308_v29  ;;  %v8124_v29 = vor.u32 %v9977_v13, %v8123_v11  ;;  %v8204_v25 = vor.u32 %v9997_v0, %v8203_v63  ;;  %v8339_v11 = vld [vmem:[%s15180_s3 + $0x230] sm:$0xf]  ;;  %v8285_v54 = vld [vmem:[%s15180_s3 + $0x1c8] sm:$0xf0]  ;;  %v10032_v59 = vld [vmem:[%s15180_s3 + $0x244] sm:$0xf] }
 0x192   :  { %3889 = vmatpush.bf16.msrb.mxu3 %v8236_v57  ;;  %v8093_v57 = vld [vmem:[%s15180_s3 + $0x48] sm:$0xf0] }
 0x193   :  { %3881 = vmatpush.bf16.msra.mxu0 %v8124_v29  ;;  %3868 = vmatmul.bf16.vlgmr.msra.gmra.mxu2 %v12325_v40  ;;  %v8096_v10 = vor.u32 %v9968_v3, %v8093_v57  ;;  %v8340_v29 = vor.u32 %v10031_v14, %v8339_v11  ;;  %v9998_v3 = vld [vmem:[%s15180_s3 + $0x134] sm:$0xf]  ;;  %v8213_v57 = vld [vmem:[%s15180_s3 + $0x138] sm:$0xf0]  ;;  %v8157_v14 = vld [vmem:[%s15180_s3 + $0xc8] sm:$0xf0] }
 0x194   :  { %3916 = vmatpush.bf16.msrb.mxu2 %v8372_v56  ;;  %v8331_v56 = vld [vmem:[%s15180_s3 + $0x220] sm:$0xf] }
 0x195   :  { %3903 = vmatpush.bf16.msrb.mxu1 %v8300_v44  ;;  %v8268_v44 = vor.u32 %v10013_v37, %v8267_v35  ;;  %v10029_v35 = vld [vmem:[%s15180_s3 + $0x224] sm:$0xf0]  ;;  %v9964_v37 = vld [vmem:[%s15180_s3 + $0x24] sm:$0xf] }
 0x196   :  { %3890 = vmatpush.bf16.msrb.mxu3 %v8228_v26  ;;  %3882 = vmatmul.bf16.vlgmr.msra.gmra.mxu0 %v12327_v41  ;;  %v8187_v26 = vld [vmem:[%s15180_s3 + $0x100] sm:$0xf]  ;;  %v8080_v45 = vor.u32 %v9964_v37, %v8077_v38  ;;  %v8197_v37 = vld [vmem:[%s15180_s3 + $0x118] sm:$0xf0]  ;;  %v10018_v38 = vld [vmem:[%s15180_s3 + $0x1d4] sm:$0xf] }
 0x197   :  { %3930 = vmatpush.bf16.msrb.mxu0 %v8120_v34  ;;  %v8240_v34 = vor.u32 %v10004_v20, %v8237_v21  ;;  %v8188_v39 = vor.u32 %v9993_v27, %v8187_v26  ;;  %v10020_v20 = vld [vmem:[%s15180_s3 + $0x1e4] sm:$0xf]  ;;  %v8301_v21 = vld [vmem:[%s15180_s3 + $0x1e8] sm:$0xf0] }
 0x198   :  { %3917 = vmatpush.bf16.msrb.mxu2 %v8364_v47  ;;  %3414 = vmatmul.bf16.vlgmr.msra.gmra.mxu3 %v12916_v32  ;;  %v8245_v32 = vld [vmem:[%s15180_s3 + $0x178] sm:$0xf0]  ;;  %v8173_v47 = vld [vmem:[%s15180_s3 + $0xe8] sm:$0xf0]  ;;  %v10036_v26 = vld [vmem:[%s15180_s3 + $0x264] sm:$0xf] }
 0x199   :  { %3904 = vmatpush.bf16.msrb.mxu1 %v8292_v18  ;;  %v8356_v18 = vor.u32 %v10035_v52, %v8355_v51  ;;  %v8248_v13 = vor.u32 %v10006_v4, %v8245_v32  ;;  %v9962_v51 = vld [vmem:[%s15180_s3 + $0x14] sm:$0xf]  ;;  %v8069_v52 = vld [vmem:[%s15180_s3 + $0x18] sm:$0xf0]  ;;  %v8365_v27 = vld [vmem:[%s15180_s3 + $0x268] sm:$0xf0] }
 0x19a   :  { %3891 = vmatpush.bf16.msrb.mxu3 %v8220_v43  ;;  %v8184_v43 = vor.u32 %v9990_v31, %v8181_v33  ;;  %v8072_v0 = vor.u32 %v9962_v51, %v8069_v52  ;;  %v8309_v4 = vld [vmem:[%s15180_s3 + $0x1f8] sm:$0xf0]  ;;  %v8304_v31 = vor.u32 %v10020_v20, %v8301_v21  ;;  %v9982_v33 = vld [vmem:[%s15180_s3 + $0xb4] sm:$0xf]  ;;  %v8360_v51 = vor.u32 %v10034_v42, %v8357_v7  ;;  %v10016_v52 = vld [vmem:[%s15180_s3 + $0x1c4] sm:$0xf] }
 0x19b   :  { %3931 = vmatpush.bf16.msrb.mxu0 %v8112_v48  ;;  %v8323_v48 = vld [vmem:[%s15180_s3 + $0x210] sm:$0xf]  ;;  %v8507_v7 = vld [vmem:[%s15180_s3 + $0x560] sm:$0xf] }
 0x19c   :  { %3918 = vmatpush.bf16.msrb.mxu2 %v8356_v18  ;;  %v8324_v63 = vor.u32 %v10027_v50, %v8323_v48  ;;  %v8165_v18 = vld [vmem:[%s15180_s3 + $0xd8] sm:$0xf0]  ;;  %v8141_v48 = vld [vmem:[%s15180_s3 + $0xa8] sm:$0xf0] }
 0x19d   :  { %3905 = vmatpush.bf16.msrb.mxu1 %v8284_v9  ;;  %v8348_v9 = vor.u32 %v10033_v2, %v8347_v1  ;;  %v9960_v1 = vld [vmem:[%s15180_s3 + $0x4] sm:$0xf]  ;;  %v8061_v2 = vld [vmem:[%s15180_s3 + $0x8] sm:$0xf0] }
 0x19e   :  { %3892 = vmatpush.bf16.msrb.mxu3 %v8212_v61  ;;  %v8176_v61 = vor.u32 %v9988_v46, %v8173_v47  ;;  %v13349_v46 = vpop.f32.mrf.mxu1  ;;  %v8189_v50 = vld [vmem:[%s15180_s3 + $0x108] sm:$0xf0] }
 0x19f   :  { %3932 = vmatpush.bf16.msrb.mxu0 %v8104_v19  ;;  %v8315_v19 = vld [vmem:[%s15180_s3 + $0x200] sm:$0xf] }
 0x1a0   :  { %3919 = vmatpush.bf16.msrb.mxu2 %v8348_v9  ;;  %v8316_v8 = vor.u32 %v10025_v24, %v8315_v19  ;;  %v8064_v9 = vor.u32 %v9960_v1, %v8061_v2  ;;  %v8288_v19 = vor.u32 %v10016_v52, %v8285_v54  ;;  %v9978_v24 = vld [vmem:[%s15180_s3 + $0x94] sm:$0xf] }
 0x1a1   :  { %3906 = vmatpush.bf16.msrb.mxu1 %v8276_v30  ;;  %v8088_v30 = vor.u32 %v9966_v15, %v8085_v16  ;;  %v9996_v15 = vld [vmem:[%s15180_s3 + $0x124] sm:$0xf] }
 0x1a2   :  { %3893 = vmatpush.bf16.msrb.mxu3 %v8204_v25  ;;  %v10022_v25 = vld [vmem:[%s15180_s3 + $0x1f4] sm:$0xf] }
 0x1a3   :  { %3933 = vmatpush.bf16.msrb.mxu0 %v8096_v10  ;;  %v8216_v10 = vor.u32 %v9998_v3, %v8213_v57  ;;  %v8312_v11 = vor.u32 %v10022_v25, %v8309_v4  ;;  %v10014_v3 = vld [vmem:[%s15180_s3 + $0x1b4] sm:$0xf]  ;;  %v8277_v57 = vld [vmem:[%s15180_s3 + $0x1b8] sm:$0xf0]  ;;  %v13393_v4 = vpop.f32.mrf.mxu2 }
 0x1a4   :  { %3920 = vmatpush.bf16.msrb.mxu2 %v8340_v29  ;;  %v10030_v25 = vld [vmem:[%s15180_s3 + $0x234] sm:$0xf] }
 0x1a5   :  { %3907 = vmatpush.bf16.msrb.mxu1 %v8268_v44  ;;  %v8332_v44 = vor.u32 %v10029_v35, %v8331_v56  ;;  %v8149_v56 = vld [vmem:[%s15180_s3 + $0xb8] sm:$0xf0]  ;;  %v8368_v35 = vor.u32 %v10036_v26, %v8365_v27  ;;  %v10012_v26 = vld [vmem:[%s15180_s3 + $0x1a4] sm:$0xf]  ;;  %v8269_v27 = vld [vmem:[%s15180_s3 + $0x1a8] sm:$0xf0] }
 0x1a6   :  { %3894 = vmatpush.bf16.msrb.mxu3 %v8196_v17  ;;  %v8205_v17 = vld [vmem:[%s15180_s3 + $0x128] sm:$0xf0]  ;;  %v8272_v42 = vor.u32 %v10012_v26, %v8269_v27 }
 0x1a7   :  { %3934 = vmatpush.bf16.msrb.mxu0 %v8088_v30  ;;  %v8208_v30 = vor.u32 %v9996_v15, %v8205_v17  ;;  %v8125_v15 = vld [vmem:[%s15180_s3 + $0x88] sm:$0xf0]  ;;  %v10135_v17 = vld [vmem:[%s15180_s3 + $0x574] sm:$0xf0] }
 0x1a8   :  { %3921 = vmatpush.bf16.msrb.mxu2 %v8332_v44  ;;  %v9980_v44 = vld [vmem:[%s15180_s3 + $0xa4] sm:$0xf] }
 0x1a9   :  { %3908 = vmatpush.bf16.msrb.mxu1 %v8260_v62  ;;  %v9986_v62 = vld [vmem:[%s15180_s3 + $0xd4] sm:$0xf] }
 0x1aa   :  { %3895 = vmatpush.bf16.msrb.mxu3 %v8188_v39  ;;  %v8168_v32 = vor.u32 %v9986_v62, %v8165_v18  ;;  %v8293_v39 = vld [vmem:[%s15180_s3 + $0x1d8] sm:$0xf0]  ;;  %v8579_v62 = vld [vmem:[%s15180_s3 + $0x5f0] sm:$0xf] }
 0x1ab   :  { %3935 = vmatpush.bf16.msrb.mxu0 %v8080_v45  ;;  %v13347_v45 = vpop.f32.mrf.mxu3  ;;  %v8296_v47 = vor.u32 %v10018_v38, %v8293_v39 }
 0x1ac   :  { %3922 = vmatpush.bf16.msrb.mxu2 %v8324_v63  ;;  %v10151_v63 = vld [vmem:[%s15180_s3 + $0x5f4] sm:$0xf0] }
 0x1ad   :  { %3909 = vmatpush.bf16.msrb.mxu1 %v8252_v6  ;;  %3896 = vmatmul.bf16.vlgmr.msrb.gmra.mxu3 %v12573_v53  ;;  %v10038_v6 = vld [vmem:[%s15180_s3 + $0x274] sm:$0xf]  ;;  %v8580_v2 = vor.u32 %v10151_v63, %v8579_v62 }
 0x1ae   :  { %3944 = vmatpush.bf16.msra.mxu3 %v8184_v43  ;;  %v8376_v16 = vor.u32 %v10038_v6, %v8373_v5  ;;  %v8152_v43 = vor.u32 %v9982_v33, %v8149_v56  ;;  %v8571_v6 = vld [vmem:[%s15180_s3 + $0x5e0] sm:$0xf]  ;;  %v10149_v5 = vld [vmem:[%s15180_s3 + $0x5e4] sm:$0xf0]  ;;  %v8333_v33 = vld [vmem:[%s15180_s3 + $0x228] sm:$0xf0] }
 0x1af   :  { %3936 = vmatpush.bf16.msrb.mxu0 %v8072_v0  ;;  %v8144_v0 = vor.u32 %v9980_v44, %v8141_v48  ;;  %v8572_v21 = vor.u32 %v10149_v5, %v8571_v6  ;;  %v8563_v56 = vld [vmem:[%s15180_s3 + $0x5d0] sm:$0xf]  ;;  %v10026_v48 = vld [vmem:[%s15180_s3 + $0x214] sm:$0xf] }
 0x1b0   :  { %3910 = vmatmul.bf16.vlgmr.msrb.gmra.mxu1 %v12575_v12  ;;  %3923 = vmatpush.bf16.msrb.mxu2 %v8316_v8  ;;  %v13404_v8 = vld [vmem:[#allocation2 + $0x50] sm:$0xff] }
 0x1b1   :  { %3958 = vmatpush.bf16.msra.mxu1 %v8248_v13  ;;  %v9984_v13 = vld [vmem:[%s15180_s3 + $0xc4] sm:$0xf]  ;;  %v8547_v5 = vld [vmem:[%s15180_s3 + $0x5b0] sm:$0xf] }
 0x1b2   :  { %3945 = vmatpush.bf16.msra.mxu3 %v8176_v61  ;;  %v8160_v29 = vor.u32 %v9984_v13, %v8157_v14  ;;  %v8349_v61 = vld [vmem:[%s15180_s3 + $0x248] sm:$0xf0]  ;;  %v9976_v13 = vld [vmem:[%s15180_s3 + $0x84] sm:$0xf]  ;;  %v8280_v14 = vor.u32 %v10014_v3, %v8277_v57 }
 0x1b3   :  { %3937 = vmatpush.bf16.msrb.mxu0 %v8064_v9  ;;  %3924 = vmatmul.bf16.vlgmr.msrb.gmra.mxu2 %v12586_v28  ;;  %v8352_v1 = vor.u32 %v10032_v59, %v8349_v61  ;;  %v13406_v9 = vld [vmem:[#allocation2 + $0x64] sm:$0x77]  ;;  %v8128_v38 = vor.u32 %v9976_v13, %v8125_v15  ;;  %v2106_v59 = vunpack.c.l.bf16 %v13404_v8  ;;  %v13472_v61 = vpop.f32.mrf.mxu2  ;;  %v8253_v3 = vld [vmem:[%s15180_s3 + $0x188] sm:$0xf0]  ;;  %v10183_v13 = vld [vmem:[%s15180_s3 + $0x6f4] sm:$0xf0] }
 0x1b4   :  { %3972 = vmatpush.bf16.msra.mxu2 %v8312_v11  ;;  %v10024_v57 = vld [vmem:[%s15180_s3 + $0x204] sm:$0xf] }
 0x1b5   :  { %3959 = vmatpush.bf16.msra.mxu1 %v8240_v34  ;;  %v9994_v34 = vld [vmem:[%s15180_s3 + $0x114] sm:$0xf] }
 0x1b6   :  { %3946 = vmatpush.bf16.msra.mxu3 %v8168_v32  ;;  %3938 = vmatmul.bf16.vlgmr.msrb.gmra.mxu0 %v12325_v40  ;;  %v8200_v40 = vor.u32 %v9994_v34, %v8197_v37  ;;  %v8341_v32 = vld [vmem:[%s15180_s3 + $0x238] sm:$0xf0]  ;;  %v10147_v34 = vld [vmem:[%s15180_s3 + $0x5d4] sm:$0xf0]  ;;  %v2112_v37 = vunpack.c.h.bf16 %v13406_v9 }
 0x1b7   :  { %3986 = vmatpush.bf16.msra.mxu0 %v8376_v16  ;;  %v8515_v16 = vld [vmem:[%s15180_s3 + $0x570] sm:$0xf]  ;;  %v8344_v20 = vor.u32 %v10030_v25, %v8341_v32  ;;  %v8317_v25 = vld [vmem:[%s15180_s3 + $0x208] sm:$0xf0] }
 0x1b8   :  { %3973 = vmatpush.bf16.msra.mxu2 %v8304_v31  ;;  %v13433_v31 = vpop.f32.mrf.mxu1  ;;  %v8516_v39 = vor.u32 %v10135_v17, %v8515_v16  ;;  %v2521_v54 = vrot.slane %v2112_v37, 1  ;;  %v8320_v27 = vor.u32 %v10024_v57, %v8317_v25 }
 0x1b9   :  { %3960 = vmatpush.bf16.msra.mxu1 %v8232_v49  ;;  %v9992_v49 = vld [vmem:[%s15180_s3 + $0x104] sm:$0xf] }
 0x1ba   :  { %3947 = vmatpush.bf16.msra.mxu3 %v8160_v29  ;;  %v8192_v18 = vor.u32 %v9992_v49, %v8189_v50  ;;  %v10028_v29 = vld [vmem:[%s15180_s3 + $0x224] sm:$0xf]  ;;  %v8325_v49 = vld [vmem:[%s15180_s3 + $0x218] sm:$0xf0]  ;;  %v8555_v50 = vld [vmem:[%s15180_s3 + $0x5c0] sm:$0xf] }
 0x1bb   :  { %3987 = vmatpush.bf16.msra.mxu0 %v8368_v35  ;;  %v2107_v35 = vunpack.c.h.bf16 %v13404_v8  ;;  %v8336_v44 = vor.u32 %v10028_v29, %v8333_v33  ;;  %v10143_v8 = vld [vmem:[%s15180_s3 + $0x5b4] sm:$0xf0]  ;;  %v8491_v33 = vld [vmem:[%s15180_s3 + $0x540] sm:$0xf] }
 0x1bc   :  { %3974 = vmatpush.bf16.msra.mxu2 %v8296_v47  ;;  %v8261_v47 = vld [vmem:[%s15180_s3 + $0x198] sm:$0xf0]  ;;  %v8548_v29 = vor.u32 %v10143_v8, %v8547_v5 }
 0x1bd   :  { %3961 = vmatpush.bf16.msra.mxu1 %v8224_v60  ;;  %v8133_v60 = vld [vmem:[%s15180_s3 + $0x98] sm:$0xf0]  ;;  %v2520_v52 = vrot.slane %v2107_v35, 1 }
 0x1be   :  { %3948 = vmatpush.bf16.msra.mxu3 %v8152_v43  ;;  %v8136_v11 = vor.u32 %v9978_v24, %v8133_v60  ;;  %v10133_v43 = vld [vmem:[%s15180_s3 + $0x564] sm:$0xf0]  ;;  %v2111_v24 = vunpack.c.l.bf16 %v13406_v9  ;;  %v8643_v9 = vld [vmem:[%s15180_s3 + $0x670] sm:$0xf] }
 0x1bf   :  { %3988 = vmatpush.bf16.msra.mxu0 %v8360_v51  ;;  %v10145_v51 = vld [vmem:[%s15180_s3 + $0x5c4] sm:$0xf0]  ;;  %v8508_v62 = vor.u32 %v10133_v43, %v8507_v7  ;;  %v2522_v15 = vsel %vm2516_vm8, %v2520_v52, %v2521_v54  ;;  %v13547_v43 = vpop.f32.mrf.mxu2 }
 0x1c0   :  { %3975 = vmatpush.bf16.msra.mxu2 %v8288_v19  ;;  %v10008_v19 = vld [vmem:[%s15180_s3 + $0x184] sm:$0xf]  ;;  %v13495_v32 = vpop.f32.mrf.mxu1  ;;  %v10181_v7 = vld [vmem:[%s15180_s3 + $0x6e4] sm:$0xf0] }
 0x1c1   :  { %3962 = vmatpush.bf16.msra.mxu1 %v8216_v10  ;;  %v13408_v10 = vpop.f32.mrf.mxu0  ;;  %v8256_v17 = vor.u32 %v10008_v19, %v8253_v3  ;;  %v10179_v19 = vld [vmem:[%s15180_s3 + $0x6d4] sm:$0xf0] }
 0x1c2   :  { %3949 = vmatpush.bf16.msra.mxu3 %v8144_v0  ;;  %v8499_v0 = vld [vmem:[%s15180_s3 + $0x550] sm:$0xf] }
 0x1c3   :  { %3989 = vmatpush.bf16.msra.mxu0 %v8352_v1  ;;  %v8328_v1 = vor.u32 %v10026_v48, %v8325_v49 }
 0x1c4   :  { %3976 = vmatpush.bf16.msra.mxu2 %v8280_v14  ;;  %v2517_v14 = vrot.slane %v2106_v59, 1 }
 0x1c5   :  { %3963 = vmatpush.bf16.msra.mxu1 %v8208_v30  ;;  %v13431_v30 = vpop.f32.mrf.mxu3 }
 0x1c6   :  { %3950 = vmatpush.bf16.msra.mxu3 %v8136_v11  ;;  %v10167_v11 = vld [vmem:[%s15180_s3 + $0x674] sm:$0xf0]  ;;  %v2582_v26 = vadd.f32 %v13431_v30, %v2521_v54  ;;  %v8539_v30 = vld [vmem:[%s15180_s3 + $0x5a0] sm:$0xf] }
 0x1c7   :  { %3990 = vmatpush.bf16.msra.mxu0 %v8344_v20  ;;  %v2518_v20 = vrot.slane %v2111_v24, 1  ;;  %v8644_v35 = vor.u32 %v10167_v11, %v8643_v9 }
 0x1c8   :  { %3977 = vmatpush.bf16.msra.mxu2 %v8272_v42  ;;  %v10165_v42 = vld [vmem:[%s15180_s3 + $0x664] sm:$0xf0]  ;;  %v2596_v48 = vadd.f32 %v13433_v31, %v2582_v26  ;;  %v8531_v31 = vld [vmem:[%s15180_s3 + $0x590] sm:$0xf]  ;;  %v13585_v3 = vpop.f32.mrf.mxu1 }
 0x1c9   :  { %3964 = vmatpush.bf16.msra.mxu1 %v8200_v40  ;;  %v8564_v40 = vor.u32 %v10147_v34, %v8563_v56  ;;  %v13484_v60 = vpop.f32.mrf.mxu0  ;;  %v10129_v56 = vld [vmem:[%s15180_s3 + $0x544] sm:$0xf0]  ;;  %v2580_v34 = vadd.f32 %v13347_v45, %v2522_v15  ;;  %v8699_v45 = vld [vmem:[%s15180_s3 + $0x6e0] sm:$0xf] }
 0x1ca   :  { %3951 = vmatpush.bf16.msra.mxu3 %v8128_v38  ;;  %v10141_v38 = vld [vmem:[%s15180_s3 + $0x5a4] sm:$0xf0]  ;;  %v8700_v59 = vor.u32 %v10181_v7, %v8699_v45  ;;  %v2688_v5 = vadd.f32 %v2596_v48, %v12159_v55  ;;  %v8611_v7 = vld [vmem:[%s15180_s3 + $0x630] sm:$0xf] }
 0x1cb   :  { %3991 = vmatpush.bf16.msra.mxu0 %v8336_v44  ;;  %v8492_v44 = vor.u32 %v10129_v56, %v8491_v33  ;;  %v8540_v49 = vor.u32 %v10141_v38, %v8539_v30  ;;  %v2594_v52 = vadd.f32 %v13349_v46, %v2580_v34  ;;  %v10163_v46 = vld [vmem:[%s15180_s3 + $0x654] sm:$0xf0]  ;;  %v10137_v15 = vld [vmem:[%s15180_s3 + $0x584] sm:$0xf0]  ;;  %v10134_v33 = vld [vmem:[%s15180_s3 + $0x574] sm:$0xf]  ;;  %v2609_v38 = vpop.f32.mrf.mxu2 }
 0x1cc   :  { %v8517_v56 = vld [vmem:[%s15180_s3 + $0x578] sm:$0xf0]  ;;  %v2698_v34 = vmax.f32 %v2688_v5, 0.0  ;;  %v8675_v48 = vld [vmem:[%s15180_s3 + $0x6b0] sm:$0xf] }
 0x1cd   :  { %3965 = vmatpush.bf16.msra.mxu1 %v8192_v18  ;;  %v10131_v18 = vld [vmem:[%s15180_s3 + $0x554] sm:$0xf0]  ;;  %v13497_v6 = vpop.f32.mrf.mxu3  ;;  %3952 = vmatmul.bf16.vlgmr.msra.gmra.mxu3 %v12327_v41  ;;  %v8707_v41 = vld [vmem:[%s15180_s3 + $0x6f0] sm:$0xf]  ;;  %v2683_v11 = vadd.f32 %v2594_v52, %v12159_v55  ;;  %v10161_v55 = vld [vmem:[%s15180_s3 + $0x644] sm:$0xf0] }
 0x1ce   :  { %4481 = vmatpush.bf16.msrb.mxu3 %v8516_v39  ;;  %v8500_v16 = vor.u32 %v10131_v18, %v8499_v0  ;;  %v8708_v37 = vor.u32 %v10183_v13, %v8707_v41  ;;  %v8635_v39 = vld [vmem:[%s15180_s3 + $0x660] sm:$0xf]  ;;  %v2519_v0 = vsel %vm2516_vm8, %v2517_v14, %v2518_v20  ;;  %v8691_v18 = vld [vmem:[%s15180_s3 + $0x6d0] sm:$0xf]  ;;  %v10199_v5 = vld [vmem:[%s15180_s3 + $0x774] sm:$0xf0] }
 0x1cf   :  { %3992 = vmatpush.bf16.msra.mxu0 %v8328_v1  ;;  %v8636_v54 = vor.u32 %v10165_v42, %v8635_v39  ;;  %v2552_v24 = vadd.f32 %v13408_v10, %v2519_v0  ;;  %v2554_v1 = vadd.f32 %v13484_v60, %v2518_v20  ;;  %v8475_v10 = vld [vmem:[%s15180_s3 + $0x520] sm:$0xf]  ;;  %v10125_v60 = vld [vmem:[%s15180_s3 + $0x524] sm:$0xf0]  ;;  %v8692_v13 = vor.u32 %v10179_v19, %v8691_v18 }
 0x1d0   :  { %3966 = vmatmul.bf16.vlgmr.msra.gmra.mxu1 %v12573_v53  ;;  %v10010_v53 = vld [vmem:[%s15180_s3 + $0x194] sm:$0xf]  ;;  %v8523_v14 = vld [vmem:[%s15180_s3 + $0x580] sm:$0xf]  ;;  %v10177_v20 = vld [vmem:[%s15180_s3 + $0x6c4] sm:$0xf0] }
 0x1d1   :  { %4495 = vmatpush.bf16.msrb.mxu1 %v8580_v2  ;;  %v8264_v63 = vor.u32 %v10010_v53, %v8261_v47  ;;  %v8556_v2 = vor.u32 %v10145_v51, %v8555_v50  ;;  %v13552_v47 = vpop.f32.mrf.mxu0  ;;  %v8483_v50 = vld [vmem:[%s15180_s3 + $0x530] sm:$0xf]  ;;  %v10127_v51 = vld [vmem:[%s15180_s3 + $0x534] sm:$0xf0]  ;;  %v2568_v26 = vadd.f32 %v13472_v61, %v2554_v1  ;;  %v2693_v30 = vmax.f32 %v2683_v11, 0.0 }
 0x1d2   :  { %4482 = vmatpush.bf16.msrb.mxu3 %v8508_v62  ;;  %v10139_v62 = vld [vmem:[%s15180_s3 + $0x594] sm:$0xf0]  ;;  %v8484_v57 = vor.u32 %v10127_v51, %v8483_v50  ;;  %v10121_v1 = vld [vmem:[%s15180_s3 + $0x504] sm:$0xf0] }
 0x1d3   :  { %3978 = vmatpush.bf16.msra.mxu2 %v8264_v63  ;;  %3993 = vmatpush.bf16.msra.mxu0 %v8320_v27  ;;  %v8627_v63 = vld [vmem:[%s15180_s3 + $0x650] sm:$0xf]  ;;  %v8532_v9 = vor.u32 %v10139_v62, %v8531_v31  ;;  %v10123_v61 = vld [vmem:[%s15180_s3 + $0x514] sm:$0xf0]  ;;  %v2687_v51 = vadd.f32 %v2568_v26, %v12122_v36  ;;  %v10132_v62 = vld [vmem:[%s15180_s3 + $0x564] sm:$0xf] }
 0x1d4   :  { %v8628_v41 = vor.u32 %v10163_v46, %v8627_v63  ;;  %v8509_v63 = vld [vmem:[%s15180_s3 + $0x568] sm:$0xf0]  ;;  %v13654_v46 = vpack.c.bf16 %v2698_v34, %v2693_v30  ;;  %v10173_v11 = vld [vmem:[%s15180_s3 + $0x6a4] sm:$0xf0]  ;;  %v10155_v34 = vld [vmem:[%s15180_s3 + $0x614] sm:$0xf0] }
 0x1d5   :  { %4496 = vmatpush.bf16.msrb.mxu1 %v8572_v21  ;;  %v13519_v21 = vld [vmem:[#allocation2 + $0x58] sm:$0xff]  ;;  %v10128_v30 = vld [vmem:[%s15180_s3 + $0x544] sm:$0xf] }
 0x1d6   :  { %4483 = vmatpush.bf16.msrb.mxu3 %v8500_v16  ;;  %v2108_v53 = vunpack.c.l.bf16 %v13519_v21  ;;  %3994 = vmatmul.bf16.vlgmr.msra.gmra.mxu0 %v12586_v28  ;;  %v2109_v8 = vunpack.c.h.bf16 %v13519_v21  ;;  %v8619_v16 = vld [vmem:[%s15180_s3 + $0x640] sm:$0xf]  ;;  %v2566_v21 = vadd.f32 %v13393_v4, %v2552_v24  ;;  %v8467_v4 = vld [vmem:[%s15180_s3 + $0x510] sm:$0xf] }
 0x1d7   :  { %3979 = vmatpush.bf16.msra.mxu2 %v8256_v17  ;;  %4523 = vmatpush.bf16.msrb.mxu0 %v8708_v37  ;;  %v8683_v17 = vld [vmem:[%s15180_s3 + $0x6c0] sm:$0xf]  ;;  %v8524_v37 = vor.u32 %v10137_v15, %v8523_v14  ;;  %v8620_v42 = vor.u32 %v10161_v55, %v8619_v16  ;;  %v8468_v31 = vor.u32 %v10123_v61, %v8467_v4  ;;  %v10130_v15 = vld [vmem:[%s15180_s3 + $0x554] sm:$0xf]  ;;  %v8501_v16 = vld [vmem:[%s15180_s3 + $0x558] sm:$0xf0] }
 0x1d8   :  { %v2523_v25 = vrot.slane %v2108_v53, 1  ;;  %v8684_v45 = vor.u32 %v10177_v20, %v8683_v17  ;;  %v10159_v53 = vld [vmem:[%s15180_s3 + $0x634] sm:$0xf0]  ;;  %v2682_v50 = vadd.f32 %v2566_v21, %v12122_v36  ;;  %v2102_v36 = vld [vmem:[#allocation2 + $0x60] sm:$0xf] }
 0x1d9   :  { %4497 = vmatpush.bf16.msrb.mxu1 %v8564_v40  ;;  %v13549_v40 = vld [vmem:[#allocation2 + $0x6c] sm:$0x77]  ;;  %v8459_v24 = vld [vmem:[%s15180_s3 + $0x500] sm:$0xf] }
 0x1da   :  { %3980 = vmatmul.bf16.vlgmr.msra.gmra.mxu2 %v12575_v12  ;;  %v13587_v12 = vpop.f32.mrf.mxu3  ;;  %4484 = vmatpush.bf16.msrb.mxu3 %v8492_v44  ;;  %v2114_v28 = vunpack.c.h.bf16 %v13549_v40  ;;  %v2623_v44 = vpop.f32.mrf.mxu0  ;;  %v8460_v14 = vor.u32 %v10121_v1, %v8459_v24 }
 0x1db   :  { %4509 = vmatpush.bf16.msrb.mxu2 %v8644_v35  ;;  %4524 = vmatpush.bf16.msrb.mxu0 %v8700_v59  ;;  %v2526_v35 = vrot.slane %v2109_v8, 1  ;;  %v8603_v8 = vld [vmem:[%s15180_s3 + $0x620] sm:$0xf]  ;;  %v13760_v24 = vpop.f32.mrf.mxu2 }
 0x1dc   :  { %v2527_v39 = vrot.slane %v2114_v28, 1  ;;  %v2692_v28 = vmax.f32 %v2682_v50, 0.0  ;;  %v10195_v50 = vld [vmem:[%s15180_s3 + $0x754] sm:$0xf0] }
 0x1dd   :  { %4498 = vmatpush.bf16.msrb.mxu1 %v8556_v2  ;;  %v2113_v2 = vunpack.c.l.bf16 %v13549_v40  ;;  %v8520_v40 = vor.u32 %v10134_v33, %v8517_v56  ;;  %v8763_v33 = vld [vmem:[%s15180_s3 + $0x760] sm:$0xf]  ;;  %v10197_v56 = vld [vmem:[%s15180_s3 + $0x764] sm:$0xf0] }
 0x1de   :  { %4485 = vmatpush.bf16.msrb.mxu3 %v8484_v57 }
 0x1df   :  { %4510 = vmatpush.bf16.msrb.mxu2 %v8636_v54  ;;  %v2524_v27 = vrot.slane %v2113_v2, 1  ;;  %4525 = vmatpush.bf16.msrb.mxu0 %v8692_v13  ;;  %v3317_v54 = vpop.f32.mrf.mxu1  ;;  %v2638_v2 = vadd.f32 %v13585_v3, %v2527_v39  ;;  %v8512_v3 = vor.u32 %v10132_v62, %v8509_v63  ;;  %v2110_v13 = vunpack.c.l.bf16 %v2102_v36  ;;  %v10150_v62 = vld [vmem:[%s15180_s3 + $0x5f4] sm:$0xf]  ;;  %v8581_v63 = vld [vmem:[%s15180_s3 + $0x5f8] sm:$0xf0] }
 0x1e1   :  { %4499 = vmatpush.bf16.msrb.mxu1 %v8548_v29  ;;  %v8476_v29 = vor.u32 %v10125_v60, %v8475_v10  ;;  %v2525_v52 = vsel %vm2516_vm8, %v2523_v25, %v2524_v27  ;;  %v2610_v18 = vadd.f32 %v2609_v38, %v2524_v27  ;;  %v8771_v25 = vld [vmem:[%s15180_s3 + $0x770] sm:$0xf]  ;;  %v10157_v10 = vld [vmem:[%s15180_s3 + $0x624] sm:$0xf0]  ;;  %v8667_v60 = vld [vmem:[%s15180_s3 + $0x6a0] sm:$0xf]  ;;  %v2652_v26 = vadd.f32 %v13587_v12, %v2638_v2 }
 0x1e2   :  { %v3303_v59 = vpop.f32.mrf.mxu3  ;;  %v2608_v0 = vadd.f32 %v13547_v43, %v2525_v52  ;;  %v8612_v43 = vor.u32 %v10159_v53, %v8611_v7  ;;  %v8772_v21 = vor.u32 %v10199_v5, %v8771_v25  ;;  %v8604_v27 = vor.u32 %v10157_v10, %v8603_v8  ;;  %v8493_v38 = vld [vmem:[%s15180_s3 + $0x548] sm:$0xf0]  ;;  %v2105_v7 = vld [vmem:[#allocation2 + $0x74] sm:$0x7]  ;;  %v8651_v52 = vld [vmem:[%s15180_s3 + $0x680] sm:$0xf] }
 0x1e3   :  { %4511 = vmatpush.bf16.msrb.mxu2 %v8628_v41  ;;  %4486 = vmatpush.bf16.msrb.mxu3 %v8476_v29  ;;  %v13656_v19 = vadd.f32 %v3317_v54, %v3303_v59  ;;  %v2697_v41 = vmax.f32 %v2687_v51, 0.0  ;;  %v2624_v17 = vadd.f32 %v2623_v44, %v2610_v18  ;;  %v8668_v29 = vor.u32 %v10173_v11, %v8667_v60  ;;  %v10169_v54 = vld [vmem:[%s15180_s3 + $0x684] sm:$0xf0]  ;;  %v10126_v59 = vld [vmem:[%s15180_s3 + $0x534] sm:$0xf] }
 0x1e4   :  { %4526 = vmatpush.bf16.msrb.mxu0 %v8684_v45  ;;  %v2622_v55 = vadd.f32 %v13552_v47, %v2608_v0  ;;  %v8595_v47 = vld [vmem:[%s15180_s3 + $0x610] sm:$0xf]  ;;  %v8504_v12 = vor.u32 %v10130_v15, %v8501_v16  ;;  %v13716_v61 = vrot.slane %v2110_v13, 1  ;;  %v8764_v44 = vor.u32 %v10197_v56, %v8763_v33  ;;  %v10166_v2 = vld [vmem:[%s15180_s3 + $0x674] sm:$0xf] }
 0x1e5   :  { %4500 = vmatpush.bf16.msrb.mxu1 %v8540_v49  ;;  %v10175_v49 = vld [vmem:[%s15180_s3 + $0x6b4] sm:$0xf0]  ;;  %v13714_v4 = vpack.c.bf16 %v2697_v41, %v2692_v28  ;;  %v2690_v53 = vadd.f32 %v2652_v26, %v12407_v22  ;;  %v8496_v51 = vor.u32 %v10128_v30, %v8493_v38  ;;  %v2115_v36 = vunpack.c.l.bf16 %v2105_v7  ;;  %v10193_v10 = vld [vmem:[%s15180_s3 + $0x744] sm:$0xf0]  ;;  %v10124_v60 = vld [vmem:[%s15180_s3 + $0x524] sm:$0xf] }
 0x1e6   :  { %v8676_v57 = vor.u32 %v10175_v49, %v8675_v48  ;;  %v8596_v48 = vor.u32 %v10155_v34, %v8595_v47  ;;  %v8652_v8 = vor.u32 %v10169_v54, %v8651_v52  ;;  %v8477_v28 = vld [vmem:[%s15180_s3 + $0x528] sm:$0xf0]  ;;  %v10148_v41 = vld [vmem:[%s15180_s3 + $0x5e4] sm:$0xf]  ;;  %v8739_v33 = vld [vmem:[%s15180_s3 + $0x730] sm:$0xf] }
 0x1e7   :  { %4512 = vmatpush.bf16.msrb.mxu2 %v8620_v42  ;;  %4487 = vmatpush.bf16.msrb.mxu3 %v8468_v31  ;;  %v2689_v42 = vadd.f32 %v2624_v17, %v12356_v58  ;;  %v8485_v31 = vld [vmem:[%s15180_s3 + $0x538] sm:$0xf0]  ;;  %v2700_v25 = vmax.f32 %v2690_v53, 0.0  ;;  %v8573_v13 = vld [vmem:[%s15180_s3 + $0x5e8] sm:$0xf0]  ;;  %v2530_v15 = vrot.slane %v2115_v36, 1 }
 0x1e8   :  { %4527 = vmatpush.bf16.msrb.mxu0 %v8676_v57  ;;  %v8637_v17 = vld [vmem:[%s15180_s3 + $0x668] sm:$0xf0]  ;;  %v10191_v56 = vld [vmem:[%s15180_s3 + $0x734] sm:$0xf0]  ;;  %v10122_v47 = vld [vmem:[%s15180_s3 + $0x514] sm:$0xf] }
 0x1e9   :  { %4501 = vmatpush.bf16.msrb.mxu1 %v8532_v9  ;;  %v2528_v9 = vsel %vm2516_vm8, %v2526_v35, %v2527_v39  ;;  %v8659_v35 = vld [vmem:[%s15180_s3 + $0x690] sm:$0xf]  ;;  %v2684_v39 = vadd.f32 %v2622_v55, %v12356_v58  ;;  %v8587_v58 = vld [vmem:[%s15180_s3 + $0x600] sm:$0xf]  ;;  %v2699_v57 = vmax.f32 %v2689_v42, 0.0  ;;  %v2531_v30 = vsel %vm2516_vm8, %v13716_v61, %v2530_v15 }
 0x1ea   :  { %v2636_v20 = vadd.f32 %v13495_v32, %v2528_v9  ;;  %v13703_v32 = vpop.f32.mrf.mxu0  ;;  %v8584_v9 = vor.u32 %v10150_v62, %v8581_v63  ;;  %v10164_v55 = vld [vmem:[%s15180_s3 + $0x664] sm:$0xf]  ;;  %v8469_v34 = vld [vmem:[%s15180_s3 + $0x518] sm:$0xf0]  ;;  %v10162_v38 = vld [vmem:[%s15180_s3 + $0x654] sm:$0xf] }
 0x1eb   :  { %4513 = vmatpush.bf16.msrb.mxu2 %v8612_v43  ;;  %4488 = vmatpush.bf16.msrb.mxu3 %v8460_v14  ;;  %v2694_v0 = vmax.f32 %v2684_v39, 0.0  ;;  %v8645_v43 = vld [vmem:[%s15180_s3 + $0x678] sm:$0xf0]  ;;  %v2664_v42 = vadd.f32 %v13703_v32, %v2531_v30  ;;  %v8731_v61 = vld [vmem:[%s15180_s3 + $0x720] sm:$0xf] }
 0x1ec   :  { %v2650_v45 = vadd.f32 %v13497_v6, %v2636_v20  ;;  %4528 = vmatpush.bf16.msrb.mxu0 %v8668_v29  ;;  %v10153_v6 = vld [vmem:[%s15180_s3 + $0x604] sm:$0xf0]  ;;  %v8648_v11 = vor.u32 %v10166_v2, %v8645_v43  ;;  %v8576_v29 = vor.u32 %v10148_v41, %v8573_v13  ;;  %v8629_v39 = vld [vmem:[%s15180_s3 + $0x658] sm:$0xf0]  ;;  %v10120_v32 = vld [vmem:[%s15180_s3 + $0x504] sm:$0xf] }
 0x1ed   :  { %4502 = vmatpush.bf16.msrb.mxu1 %v8524_v37  ;;  %v10171_v37 = vld [vmem:[%s15180_s3 + $0x694] sm:$0xf0]  ;;  %v8588_v5 = vor.u32 %v10153_v6, %v8587_v58  ;;  %v13792_v20 = vpack.c.bf16 %v2699_v57, %v2694_v0  ;;  %v10144_v58 = vld [vmem:[%s15180_s3 + $0x5c4] sm:$0xf]  ;;  %v8557_v6 = vld [vmem:[%s15180_s3 + $0x5c8] sm:$0xf0]  ;;  %v2678_v62 = vadd.f32 %v13760_v24, %v2664_v42 }
 0x1ee   :  { %v8660_v49 = vor.u32 %v10171_v37, %v8659_v35  ;;  %4489 = vmatmul.bf16.vlgmr.msrb.gmra.mxu3 %v13714_v4  ;;  %v2685_v18 = vadd.f32 %v2650_v45, %v12407_v22  ;;  %v8488_v22 = vor.u32 %v10126_v59, %v8485_v31  ;;  %v10146_v35 = vld [vmem:[%s15180_s3 + $0x5d4] sm:$0xf]  ;;  %v8565_v37 = vld [vmem:[%s15180_s3 + $0x5d8] sm:$0xf0]  ;;  %v8740_v45 = vor.u32 %v10191_v56, %v8739_v33  ;;  %v8621_v54 = vld [vmem:[%s15180_s3 + $0x648] sm:$0xf0] }
 0x1ef   :  { %4537 = vmatpush.bf16.msra.mxu3 %v8772_v21  ;;  %4514 = vmatpush.bf16.msrb.mxu2 %v8604_v27  ;;  %v8480_v27 = vor.u32 %v10124_v60, %v8477_v28  ;;  %v8568_v53 = vor.u32 %v10146_v35, %v8565_v37  ;;  %v10198_v59 = vld [vmem:[%s15180_s3 + $0x774] sm:$0xf]  ;;  %v8773_v31 = vld [vmem:[%s15180_s3 + $0x778] sm:$0xf0]  ;;  %v8560_v36 = vor.u32 %v10144_v58, %v8557_v6  ;;  %v10187_v2 = vld [vmem:[%s15180_s3 + $0x714] sm:$0xf0]  ;;  %v13918_v37 = vpop.f32.mrf.mxu1 }
 0x1f0   :  { %4503 = vmatmul.bf16.vlgmr.msrb.gmra.mxu1 %v13654_v46  ;;  %4529 = vmatpush.bf16.msrb.mxu0 %v8660_v49  ;;  %v2695_v14 = vmax.f32 %v2685_v18, 0.0  ;;  %v8461_v49 = vld [vmem:[%s15180_s3 + $0x508] sm:$0xf0]  ;;  %v8776_v57 = vor.u32 %v10198_v59, %v8773_v31  ;;  %v10142_v24 = vld [vmem:[%s15180_s3 + $0x5b4] sm:$0xf]  ;;  %v2686_v60 = vadd.f32 %v2678_v62, %v12410_v23 }
 0x1f1   :  { %4551 = vmatpush.bf16.msra.mxu1 %v8520_v40  ;;  %v8755_v40 = vld [vmem:[%s15180_s3 + $0x750] sm:$0xf]  ;;  %v8464_v18 = vor.u32 %v10120_v32, %v8461_v49  ;;  %v10185_v13 = vld [vmem:[%s15180_s3 + $0x704] sm:$0xf0]  ;;  %v10194_v33 = vld [vmem:[%s15180_s3 + $0x754] sm:$0xf] }
 0x1f2   :  { %v8756_v1 = vor.u32 %v10195_v50, %v8755_v40  ;;  %v2665_v16 = vpop.f32.mrf.mxu0  ;;  %v13794_v26 = vpack.c.bf16 %v2700_v25, %v2695_v14  ;;  %v8472_v40 = vor.u32 %v10122_v47, %v8469_v34  ;;  %v8632_v50 = vor.u32 %v10162_v38, %v8629_v39  ;;  %v8549_v25 = vld [vmem:[%s15180_s3 + $0x5b8] sm:$0xf0]  ;;  %v10182_v14 = vld [vmem:[%s15180_s3 + $0x6f4] sm:$0xf]  ;;  %v10180_v39 = vld [vmem:[%s15180_s3 + $0x6e4] sm:$0xf] }
 0x1f3   :  { %4538 = vmatpush.bf16.msra.mxu3 %v8764_v44  ;;  %4515 = vmatpush.bf16.msrb.mxu2 %v8596_v48  ;;  %v2666_v7 = vadd.f32 %v2665_v16, %v2530_v15  ;;  %v2679_v44 = vpop.f32.mrf.mxu2  ;;  %v10189_v48 = vld [vmem:[%s15180_s3 + $0x724] sm:$0xf0]  ;;  %v8552_v41 = vor.u32 %v10142_v24, %v8549_v25  ;;  %v8709_v15 = vld [vmem:[%s15180_s3 + $0x6f8] sm:$0xf0]  ;;  %v2696_v34 = vmax.f32 %v2686_v60, 0.0 }
 0x1f4   :  { %4530 = vmatpush.bf16.msrb.mxu0 %v8652_v8  ;;  %v8732_v63 = vor.u32 %v10189_v48, %v8731_v61  ;;  %v8613_v8 = vld [vmem:[%s15180_s3 + $0x638] sm:$0xf0]  ;;  %v8712_v30 = vor.u32 %v10182_v14, %v8709_v15  ;;  %v8701_v42 = vld [vmem:[%s15180_s3 + $0x6e8] sm:$0xf0]  ;;  %v10138_v61 = vld [vmem:[%s15180_s3 + $0x594] sm:$0xf] }
 0x1f5   :  { %4552 = vmatpush.bf16.msra.mxu1 %v8512_v3  ;;  %v8747_v3 = vld [vmem:[%s15180_s3 + $0x740] sm:$0xf]  ;;  %v2680_v0 = vadd.f32 %v2679_v44, %v2666_v7  ;;  %v8757_v56 = vld [vmem:[%s15180_s3 + $0x758] sm:$0xf0]  ;;  %v10154_v44 = vld [vmem:[%s15180_s3 + $0x614] sm:$0xf] }
 0x1f6   :  { %v8748_v21 = vor.u32 %v10193_v10, %v8747_v3  ;;  %v8715_v10 = vld [vmem:[%s15180_s3 + $0x700] sm:$0xf]  ;;  %v8533_v7 = vld [vmem:[%s15180_s3 + $0x598] sm:$0xf0]  ;;  %v8749_v48 = vld [vmem:[%s15180_s3 + $0x748] sm:$0xf0] }
 0x1f7   :  { %4539 = vmatpush.bf16.msra.mxu3 %v8756_v1  ;;  %4516 = vmatpush.bf16.msrb.mxu2 %v8588_v5  ;;  %v8723_v1 = vld [vmem:[%s15180_s3 + $0x710] sm:$0xf]  ;;  %v10158_v5 = vld [vmem:[%s15180_s3 + $0x634] sm:$0xf]  ;;  %v8716_v47 = vor.u32 %v10185_v13, %v8715_v10  ;;  %v8536_v58 = vor.u32 %v10138_v61, %v8533_v7  ;;  %v8525_v31 = vld [vmem:[%s15180_s3 + $0x588] sm:$0xf0]  ;;  %v3373_v10 = vpop.f32.mrf.mxu1 }
 0x1f8   :  { %4579 = vmatpush.bf16.msra.mxu0 %v8648_v11  ;;  %v8724_v3 = vor.u32 %v10187_v2, %v8723_v1  ;;  %v2691_v11 = vadd.f32 %v2680_v0, %v12410_v23  ;;  %v8616_v16 = vor.u32 %v10158_v5, %v8613_v8  ;;  %v10178_v6 = vld [vmem:[%s15180_s3 + $0x6d4] sm:$0xf]  ;;  %v10152_v62 = vld [vmem:[%s15180_s3 + $0x604] sm:$0xf]  ;;  %v10220_v1 = vld [vmem:[%s15180_s3 + $0x7f4] sm:$0xf0] }
 0x1f9   :  { %4553 = vmatpush.bf16.msra.mxu1 %v8504_v12  ;;  %v8640_v12 = vor.u32 %v10164_v55, %v8637_v17  ;;  %4531 = vmatmul.bf16.vlgmr.msrb.gmra.mxu0 %v13794_v26  ;;  %v10140_v17 = vld [vmem:[%s15180_s3 + $0x5a4] sm:$0xf]  ;;  %v10190_v0 = vld [vmem:[%s15180_s3 + $0x734] sm:$0xf]  ;;  %v8999_v2 = vld [vmem:[%s15180_s3 + $0x870] sm:$0xf] }
 0x1fa   :  { %4517 = vmatmul.bf16.vlgmr.msrb.gmra.mxu2 %v13792_v20  ;;  %v3345_v52 = vpop.f32.mrf.mxu0  ;;  %v2701_v35 = vmax.f32 %v2691_v11, 0.0  ;;  %v8927_v13 = vld [vmem:[%s15180_s3 + $0x7e0] sm:$0xf]  ;;  %v10218_v14 = vld [vmem:[%s15180_s3 + $0x7e4] sm:$0xf0] }
 0x1fb   :  { %4565 = vmatpush.bf16.msra.mxu2 %v8584_v9  ;;  %4540 = vmatpush.bf16.msra.mxu3 %v8748_v21  ;;  %v8765_v9 = vld [vmem:[%s15180_s3 + $0x768] sm:$0xf0]  ;;  %v3331_v28 = vpop.f32.mrf.mxu2  ;;  %v8991_v15 = vld [vmem:[%s15180_s3 + $0x860] sm:$0xf]  ;;  %v10172_v7 = vld [vmem:[%s15180_s3 + $0x6a4] sm:$0xf] }
 0x1fc   :  { %4580 = vmatpush.bf16.msra.mxu0 %v8640_v12  ;;  %v3332_v23 = vadd.f32 %v3331_v28, %v13656_v19  ;;  %v8541_v21 = vld [vmem:[%s15180_s3 + $0x5a8] sm:$0xf0]  ;;  %v13944_v32 = vpack.c.bf16 %v2701_v35, %v2696_v34  ;;  %v10188_v28 = vld [vmem:[%s15180_s3 + $0x724] sm:$0xf]  ;;  %v8725_v34 = vld [vmem:[%s15180_s3 + $0x718] sm:$0xf0] }
 0x1fd   :  { %4554 = vmatpush.bf16.msra.mxu1 %v8496_v51  ;;  %v10160_v51 = vld [vmem:[%s15180_s3 + $0x644] sm:$0xf]  ;;  %v8605_v19 = vld [vmem:[%s15180_s3 + $0x628] sm:$0xf0]  ;;  %v8544_v38 = vor.u32 %v10140_v17, %v8541_v21  ;;  %v8919_v35 = vld [vmem:[%s15180_s3 + $0x7d0] sm:$0xf] }
 0x1fe   :  { %v8624_v43 = vor.u32 %v10160_v51, %v8621_v54  ;;  %v13916_v12 = vadd.f32 %v3345_v52, %v3332_v23  ;;  %v8693_v51 = vld [vmem:[%s15180_s3 + $0x6d8] sm:$0xf0]  ;;  %v10136_v52 = vld [vmem:[%s15180_s3 + $0x584] sm:$0xf]  ;;  %v10234_v23 = vld [vmem:[%s15180_s3 + $0x864] sm:$0xf0] }
 0x1ff   :  { %4566 = vmatpush.bf16.msra.mxu2 %v8576_v29  ;;  %4541 = vmatpush.bf16.msra.mxu3 %v8740_v45  ;;  %v8760_v45 = vor.u32 %v10194_v33, %v8757_v56  ;;  %v8696_v25 = vor.u32 %v10178_v6, %v8693_v51  ;;  %v8528_v5 = vor.u32 %v10136_v52, %v8525_v31  ;;  %v8975_v6 = vld [vmem:[%s15180_s3 + $0x840] sm:$0xf]  ;;  %v10230_v51 = vld [vmem:[%s15180_s3 + $0x844] sm:$0xf0]  ;;  %v3375_v52 = vpop.f32.mrf.mxu1  ;;  %v9127_v31 = vld [vmem:[%s15180_s3 + $0x970] sm:$0xf] }
 0x200   :  { %4581 = vmatpush.bf16.msra.mxu0 %v8632_v50  ;;  %v8704_v50 = vor.u32 %v10180_v39, %v8701_v42  ;;  %v8928_v33 = vor.u32 %v10218_v14, %v8927_v13  ;;  %v8992_v56 = vor.u32 %v10234_v23, %v8991_v15  ;;  %v10232_v39 = vld [vmem:[%s15180_s3 + $0x854] sm:$0xf0]  ;;  %v10168_v13 = vld [vmem:[%s15180_s3 + $0x684] sm:$0xf]  ;;  %v8653_v14 = vld [vmem:[%s15180_s3 + $0x688] sm:$0xf0] }
 0x201   :  { %4555 = vmatpush.bf16.msra.mxu1 %v8488_v22  ;;  %v10196_v22 = vld [vmem:[%s15180_s3 + $0x764] sm:$0xf]  ;;  %v8861_v15 = vld [vmem:[#allocation2 + $0x14] sm:$0x70] }
 0x202   :  { %v8768_v55 = vor.u32 %v10196_v22, %v8765_v9  ;;  %v13904_v29 = vpop.f32.mrf.mxu0  ;;  %v10176_v9 = vld [vmem:[%s15180_s3 + $0x6c4] sm:$0xf] }
 0x203   :  { %4567 = vmatpush.bf16.msra.mxu2 %v8568_v53  ;;  %4542 = vmatpush.bf16.msra.mxu3 %v8732_v63  ;;  %v10192_v53 = vld [vmem:[%s15180_s3 + $0x744] sm:$0xf]  ;;  %v13946_v49 = vpop.f32.mrf.mxu2  ;;  %v8589_v63 = vld [vmem:[%s15180_s3 + $0x608] sm:$0xf0] }
 0x204   :  { %4582 = vmatpush.bf16.msra.mxu0 %v8624_v43  ;;  %v8752_v59 = vor.u32 %v10192_v53, %v8749_v48  ;;  %v10236_v43 = vld [vmem:[%s15180_s3 + $0x874] sm:$0xf0]  ;;  %v8592_v8 = vor.u32 %v10152_v62, %v8589_v63  ;;  %v10184_v48 = vld [vmem:[%s15180_s3 + $0x704] sm:$0xf] }
 0x205   :  { %4556 = vmatpush.bf16.msra.mxu1 %v8480_v27  ;;  %v10156_v27 = vld [vmem:[%s15180_s3 + $0x624] sm:$0xf]  ;;  %v9000_v11 = vor.u32 %v10236_v43, %v8999_v2  ;;  %v10268_v62 = vld [vmem:[%s15180_s3 + $0x974] sm:$0xf0]  ;;  %v8976_v2 = vor.u32 %v10230_v51, %v8975_v6  ;;  %v8903_v43 = vld [vmem:[%s15180_s3 + $0x7b0] sm:$0xf] }
 0x206   :  { %v9103_v6 = vld [vmem:[%s15180_s3 + $0x940] sm:$0xf]  ;;  %v10262_v51 = vld [vmem:[%s15180_s3 + $0x944] sm:$0xf0] }
 0x207   :  { %4568 = vmatpush.bf16.msra.mxu2 %v8560_v36  ;;  %4543 = vmatpush.bf16.msra.mxu3 %v8724_v3  ;;  %v8935_v36 = vld [vmem:[%s15180_s3 + $0x7f0] sm:$0xf]  ;;  %v8685_v3 = vld [vmem:[%s15180_s3 + $0x6c8] sm:$0xf0] }
 0x208   :  { %4583 = vmatpush.bf16.msra.mxu0 %v8616_v16  ;;  %v8936_v60 = vor.u32 %v10220_v1, %v8935_v36  ;;  %v8661_v36 = vld [vmem:[%s15180_s3 + $0x698] sm:$0xf0] }
 0x209   :  { %4557 = vmatpush.bf16.msra.mxu1 %v8472_v40  ;;  %v8597_v40 = vld [vmem:[%s15180_s3 + $0x618] sm:$0xf0] }
 0x20a   :  { %v8600_v54 = vor.u32 %v10154_v44, %v8597_v40  ;;  %v3401_v24 = vpop.f32.mrf.mxu0  ;;  %v8669_v44 = vld [vmem:[%s15180_s3 + $0x6a8] sm:$0xf0] }
 0x20b   :  { %4569 = vmatpush.bf16.msra.mxu2 %v8552_v41  ;;  %4544 = vmatpush.bf16.msra.mxu3 %v8716_v47  ;;  %v8733_v41 = vld [vmem:[%s15180_s3 + $0x728] sm:$0xf0]  ;;  %v3387_v16 = vpop.f32.mrf.mxu2  ;;  %v10186_v47 = vld [vmem:[%s15180_s3 + $0x714] sm:$0xf] }
 0x20c   :  { %v3388_v17 = vadd.f32 %v3387_v16, %v3373_v10  ;;  %v8736_v21 = vor.u32 %v10188_v28, %v8733_v41  ;;  %v8728_v61 = vor.u32 %v10186_v47, %v8725_v34  ;;  %v10202_v28 = vld [vmem:[#allocation2 + $0x10] sm:$0x70]  ;;  %v10200_v41 = vld [vmem:[#allocation2 + $0x4] sm:$0xf]  ;;  %v10226_v47 = vld [vmem:[%s15180_s3 + $0x824] sm:$0xf0] }
 0x20d   :  { %4558 = vmatpush.bf16.msra.mxu1 %v8464_v18  ;;  %v8741_v18 = vld [vmem:[%s15180_s3 + $0x738] sm:$0xf0] }
 0x20e   :  { %4545 = vmatmul.bf16.vlgmr.msra.gmra.mxu3 %v13944_v32  ;;  %v8744_v22 = vor.u32 %v10190_v0, %v8741_v18  ;;  %v14036_v42 = vadd.f32 %v3401_v24, %v3388_v17  ;;  %v10170_v18 = vld [vmem:[%s15180_s3 + $0x694] sm:$0xf]  ;;  %v9128_v24 = vor.u32 %v10268_v62, %v9127_v31  ;;  %v10252_v17 = vld [vmem:[%s15180_s3 + $0x8f4] sm:$0xf0]  ;;  %v9047_v62 = vld [vmem:[%s15180_s3 + $0x8d0] sm:$0xf] }
 0x20f   :  { %4593 = vmatpush.bf16.msrb.mxu3 %v8712_v30  ;;  %4570 = vmatpush.bf16.msra.mxu2 %v8544_v38  ;;  %v10216_v30 = vld [vmem:[%s15180_s3 + $0x7d4] sm:$0xf0]  ;;  %v8983_v38 = vld [vmem:[%s15180_s3 + $0x850] sm:$0xf]  ;;  %v8664_v10 = vor.u32 %v10170_v18, %v8661_v36 }
 0x210   :  { %4559 = vmatmul.bf16.vlgmr.msra.gmra.mxu1 %v13714_v4  ;;  %v8608_v4 = vor.u32 %v10156_v27, %v8605_v19  ;;  %v10174_v27 = vld [vmem:[%s15180_s3 + $0x6b4] sm:$0xf]  ;;  %v8677_v19 = vld [vmem:[%s15180_s3 + $0x6b8] sm:$0xf0]  ;;  %v8984_v53 = vor.u32 %v10232_v39, %v8983_v38  ;;  %v10248_v36 = vld [vmem:[%s15180_s3 + $0x8d4] sm:$0xf0] }
 0x211   :  { %4607 = vmatpush.bf16.msrb.mxu1 %v8776_v57  ;;  %v13985_v57 = vpop.f32.mrf.mxu3 }
 0x212   :  { %4584 = vmatpush.bf16.msra.mxu0 %v8608_v4  ;;  %v3403_v40 = vpop.f32.mrf.mxu0 }
 0x213   :  { %4594 = vmatpush.bf16.msrb.mxu3 %v8704_v50  ;;  %4571 = vmatpush.bf16.msra.mxu2 %v8536_v58  ;;  %v8911_v50 = vld [vmem:[%s15180_s3 + $0x7c0] sm:$0xf]  ;;  %v10214_v58 = vld [vmem:[%s15180_s3 + $0x7c4] sm:$0xf0] }
 0x214   :  { %v8912_v1 = vor.u32 %v10214_v58, %v8911_v50 }
 0x215   :  { %4608 = vmatpush.bf16.msrb.mxu1 %v8768_v55  ;;  %v8688_v55 = vor.u32 %v10176_v9, %v8685_v3  ;;  %v8859_v9 = vld [vmem:[#allocation2] sm:$0xf] }
 0x216   :  { %4585 = vmatpush.bf16.msra.mxu0 %v8600_v54  ;;  %v3389_v54 = vpop.f32.mrf.mxu2  ;;  %v14133_v38 = vor.u32 %v10202_v28, %v8859_v9  ;;  %v9191_v9 = vld [vmem:[%s15180_s3 + $0x9f0] sm:$0xf]  ;;  %v8937_v28 = vld [vmem:[%s15180_s3 + $0x7f8] sm:$0xf0] }
 0x217   :  { %4595 = vmatpush.bf16.msrb.mxu3 %v8696_v25  ;;  %4572 = vmatpush.bf16.msra.mxu2 %v8528_v5  ;;  %v3390_v63 = vadd.f32 %v3389_v54, %v3375_v52  ;;  %v10212_v25 = vld [vmem:[%s15180_s3 + $0x7b4] sm:$0xf0]  ;;  %v8967_v5 = vld [vmem:[%s15180_s3 + $0x830] sm:$0xf] }
 0x218   :  { %v8904_v23 = vor.u32 %v10212_v25, %v8903_v43  ;;  %v4736_v52 = vshll.u32 %v14133_v38, 16  ;;  %v8943_v43 = vld [vmem:[%s15180_s3 + $0x800] sm:$0xf]  ;;  %v9095_v25 = vld [vmem:[%s15180_s3 + $0x930] sm:$0xf] }
 0x219   :  { %4609 = vmatpush.bf16.msrb.mxu1 %v8760_v45  ;;  %v3359_v4 = vpop.f32.mrf.mxu3  ;;  %v8680_v45 = vor.u32 %v10174_v27, %v8677_v19  ;;  %v3320_v27 = vadd.f32 %v13918_v37, %v13985_v57  ;;  %v8656_v37 = vor.u32 %v10168_v13, %v8653_v14  ;;  %v9111_v57 = vld [vmem:[%s15180_s3 + $0x950] sm:$0xf] }
 0x21a   :  { %4586 = vmatpush.bf16.msra.mxu0 %v8592_v8  ;;  %4573 = vmatmul.bf16.vlgmr.msra.gmra.mxu2 %v13654_v46  ;;  %v14040_v46 = vadd.f32 %v3359_v4, %v13916_v12  ;;  %v8717_v12 = vld [vmem:[%s15180_s3 + $0x708] sm:$0xf0]  ;;  %v10228_v8 = vld [vmem:[%s15180_s3 + $0x834] sm:$0xf0]  ;;  %v3883_v34 = vpop.f32.mrf.mxu0  ;;  %v4738_v13 = vrot.slane %v4736_v52, 1 }
 0x21b   :  { %5173 = vmatpush.bf16.msrb.mxu2 %v8936_v60  ;;  %4596 = vmatpush.bf16.msrb.mxu3 %v8688_v55  ;;  %v8720_v0 = vor.u32 %v10184_v48, %v8717_v12  ;;  %v9119_v60 = vld [vmem:[%s15180_s3 + $0x960] sm:$0xf]  ;;  %v8968_v16 = vor.u32 %v10228_v8, %v8967_v5  ;;  %v9063_v55 = vld [vmem:[%s15180_s3 + $0x8f0] sm:$0xf]  ;;  %v3334_v39 = vadd.f32 %v13946_v49, %v3320_v27  ;;  %v10224_v12 = vld [vmem:[%s15180_s3 + $0x814] sm:$0xf0] }
 0x21c   :  { %v8887_v49 = vld [vmem:[%s15180_s3 + $0x790] sm:$0xf]  ;;  %v10215_v52 = vld [vmem:[%s15180_s3 + $0x7d4] sm:$0xf] }
 0x21d   :  { %4610 = vmatpush.bf16.msrb.mxu1 %v8752_v59  ;;  %4587 = vmatmul.bf16.vlgmr.msra.gmra.mxu0 %v13792_v20  ;;  %v8920_v20 = vor.u32 %v10216_v30, %v8919_v35  ;;  %v8672_v59 = vor.u32 %v10172_v7, %v8669_v44  ;;  %v10264_v30 = vld [vmem:[%s15180_s3 + $0x954] sm:$0xf0]  ;;  %v8951_v48 = vld [vmem:[%s15180_s3 + $0x810] sm:$0xf]  ;;  %v3348_v54 = vadd.f32 %v13904_v29, %v3334_v39  ;;  %v8879_v29 = vld [vmem:[%s15180_s3 + $0x780] sm:$0xf] }
 0x21e   :  { %5187 = vmatpush.bf16.msrb.mxu0 %v9000_v11  ;;  %v10266_v11 = vld [vmem:[%s15180_s3 + $0x964] sm:$0xf0]  ;;  %v3869_v35 = vpop.f32.mrf.mxu2  ;;  %v8952_v18 = vor.u32 %v10224_v12, %v8951_v48 }
 0x21f   :  { %5174 = vmatpush.bf16.msrb.mxu2 %v8928_v33  ;;  %4597 = vmatpush.bf16.msrb.mxu3 %v8680_v45  ;;  %v9120_v19 = vor.u32 %v10266_v11, %v9119_v60  ;;  %v10210_v33 = vld [vmem:[%s15180_s3 + $0x7a4] sm:$0xf0]  ;;  %v3870_v4 = vadd.f32 %v3869_v35, %v14040_v46  ;;  %v9064_v45 = vor.u32 %v10252_v17, %v9063_v55  ;;  %v10219_v11 = vld [vmem:[%s15180_s3 + $0x7f4] sm:$0xf]  ;;  %v10201_v17 = vld [vmem:[#allocation2 + $0xc] sm:$0xf] }
 0x220   :  { %v9112_v46 = vor.u32 %v10264_v30, %v9111_v57  ;;  %v9048_v60 = vor.u32 %v10248_v36, %v9047_v62  ;;  %v8940_v57 = vor.u32 %v10219_v11, %v8937_v28  ;;  %v10258_v30 = vld [vmem:[%s15180_s3 + $0x924] sm:$0xf0]  ;;  %v9023_v62 = vld [vmem:[%s15180_s3 + $0x8a0] sm:$0xf] }
 0x221   :  { %4611 = vmatpush.bf16.msrb.mxu1 %v8744_v22  ;;  %v14090_v22 = vadd.f32 %v3403_v40, %v3390_v63  ;;  %v14092_v3 = vpop.f32.mrf.mxu3  ;;  %v9055_v40 = vld [vmem:[%s15180_s3 + $0x8e0] sm:$0xf]  ;;  %v14157_v50 = vadd.f32 %v3883_v34, %v3870_v4  ;;  %v10282_v39 = vld [vmem:[%s15180_s3 + $0x9e4] sm:$0xf0] }
 0x222   :  { %5188 = vmatpush.bf16.msrb.mxu0 %v8992_v56  ;;  %v8959_v56 = vld [vmem:[%s15180_s3 + $0x820] sm:$0xf]  ;;  %v3885_v14 = vpop.f32.mrf.mxu0 }
 0x223   :  { %5175 = vmatpush.bf16.msrb.mxu2 %v8920_v20  ;;  %4598 = vmatpush.bf16.msrb.mxu3 %v8672_v59  ;;  %v8960_v44 = vor.u32 %v10226_v47, %v8959_v56  ;;  %v10250_v20 = vld [vmem:[%s15180_s3 + $0x8e4] sm:$0xf0]  ;;  %v9087_v47 = vld [vmem:[%s15180_s3 + $0x920] sm:$0xf] }
 0x224   :  { %v9056_v31 = vor.u32 %v10250_v20, %v9055_v40  ;;  %v10246_v56 = vld [vmem:[%s15180_s3 + $0x8c4] sm:$0xf0] }
 0x225   :  { %4612 = vmatpush.bf16.msrb.mxu1 %v8736_v21  ;;  %v8895_v21 = vld [vmem:[%s15180_s3 + $0x7a0] sm:$0xf] }
 0x226   :  { %5189 = vmatpush.bf16.msrb.mxu0 %v8984_v53  ;;  %v8896_v7 = vor.u32 %v10210_v33, %v8895_v21  ;;  %v10208_v53 = vld [vmem:[%s15180_s3 + $0x794] sm:$0xf0]  ;;  %v3871_v8 = vpop.f32.mrf.mxu2  ;;  %v8869_v21 = vld [vmem:[#allocation2 + $0x1c] sm:$0x70] }
 0x227   :  { %5176 = vmatpush.bf16.msrb.mxu2 %v8912_v1  ;;  %4599 = vmatpush.bf16.msrb.mxu3 %v8664_v10  ;;  %v3362_v1 = vadd.f32 %v14092_v3, %v3348_v54  ;;  %v10284_v3 = vld [vmem:[%s15180_s3 + $0x9f4] sm:$0xf0]  ;;  %v9039_v33 = vld [vmem:[%s15180_s3 + $0x8c0] sm:$0xf]  ;;  %v14242_v40 = vor.u32 %v10201_v17, %v8869_v21  ;;  %v8921_v54 = vld [vmem:[%s15180_s3 + $0x7d8] sm:$0xf0] }
 0x229   :  { %4613 = vmatpush.bf16.msrb.mxu1 %v8728_v61  ;;  %v14137_v61 = vor.u32 %v10200_v41, %v8861_v15  ;;  %v3415_v58 = vpop.f32.mrf.mxu3  ;;  %v3872_v10 = vadd.f32 %v3871_v8, %v3362_v1  ;;  %v4734_v41 = vshrl.u32 %v14133_v38, 16  ;;  %v9183_v38 = vld [vmem:[%s15180_s3 + $0x9e0] sm:$0xf]  ;;  %v10254_v1 = vld [vmem:[%s15180_s3 + $0x904] sm:$0xf0]  ;;  %v4755_v28 = vshrl.u32 %v14242_v40, 16 }
 0x22a   :  { %5190 = vmatpush.bf16.msrb.mxu0 %v8976_v2  ;;  %v3416_v59 = vadd.f32 %v3415_v58, %v14036_v42  ;;  %v10206_v42 = vld [vmem:[%s15180_s3 + $0x784] sm:$0xf0]  ;;  %v9104_v2 = vor.u32 %v10262_v51, %v9103_v6  ;;  %v9184_v20 = vor.u32 %v10282_v39, %v9183_v38  ;;  %v10256_v58 = vld [vmem:[%s15180_s3 + $0x914] sm:$0xf0]  ;;  %v9175_v6 = vld [vmem:[%s15180_s3 + $0x9d0] sm:$0xf] }
 0x22b   :  { %5177 = vmatpush.bf16.msrb.mxu2 %v8904_v23  ;;  %4600 = vmatpush.bf16.msrb.mxu3 %v8656_v37  ;;  %v4743_v63 = vshll.u32 %v14137_v61, 16  ;;  %v8880_v15 = vor.u32 %v10206_v42, %v8879_v29  ;;  %v14220_v34 = vadd.f32 %v3885_v14, %v3872_v10  ;;  %v10280_v51 = vld [vmem:[%s15180_s3 + $0x9d4] sm:$0xf0]  ;;  %v10242_v29 = vld [vmem:[%s15180_s3 + $0x8a4] sm:$0xf0] }
 0x22c   :  { %v9176_v36 = vor.u32 %v10280_v51, %v9175_v6  ;;  %v9071_v42 = vld [vmem:[%s15180_s3 + $0x900] sm:$0xf]  ;;  %v10278_v8 = vld [vmem:[%s15180_s3 + $0x9c4] sm:$0xf0]  ;;  %v10251_v10 = vld [vmem:[%s15180_s3 + $0x8f4] sm:$0xf]  ;;  %v9024_v11 = vor.u32 %v10242_v29, %v9023_v62 }
 0x22d   :  { %4614 = vmatpush.bf16.msrb.mxu1 %v8720_v0  ;;  %v8888_v0 = vor.u32 %v10208_v53, %v8887_v49  ;;  %v4745_v55 = vrot.slane %v4743_v63, 1  ;;  %v9031_v49 = vld [vmem:[%s15180_s3 + $0x8b0] sm:$0xf]  ;;  %v4757_v63 = vshll.u32 %v14242_v40, 16  ;;  %v10204_v39 = vld [vmem:[#allocation2 + $0x20] sm:$0x70] }
 0x22e   :  { %5191 = vmatpush.bf16.msrb.mxu0 %v8968_v16  ;;  %4601 = vmatmul.bf16.vlgmr.msrb.gmra.mxu3 %v13794_v26  ;;  %v10260_v26 = vld [vmem:[%s15180_s3 + $0x934] sm:$0xf0]  ;;  %v4741_v16 = vshrl.u32 %v14137_v61, 16  ;;  %v10217_v61 = vld [vmem:[%s15180_s3 + $0x7e4] sm:$0xf] }
 0x22f   :  { %5201 = vmatpush.bf16.msra.mxu3 %v9064_v45  ;;  %5178 = vmatpush.bf16.msrb.mxu2 %v8896_v7  ;;  %v9096_v27 = vor.u32 %v10260_v26, %v9095_v25  ;;  %v14232_v45 = vor.u32 %v4738_v13, %v4734_v41  ;;  %v9079_v53 = vld [vmem:[%s15180_s3 + $0x910] sm:$0xf]  ;;  %v9167_v25 = vld [vmem:[%s15180_s3 + $0x9c0] sm:$0xf]  ;;  %v10213_v26 = vld [vmem:[%s15180_s3 + $0x7c4] sm:$0xf] }
 0x230   :  { %4615 = vmatmul.bf16.vlgmr.msrb.gmra.mxu1 %v13944_v32  ;;  %v3429_v32 = vpop.f32.mrf.mxu1  ;;  %v14240_v7 = vor.u32 %v4745_v55, %v4741_v16  ;;  %v9168_v13 = vor.u32 %v10278_v8, %v9167_v25  ;;  %v9015_v14 = vld [vmem:[%s15180_s3 + $0x890] sm:$0xf]  ;;  %v8897_v6 = vld [vmem:[%s15180_s3 + $0x7a8] sm:$0xf0]  ;;  %v10247_v51 = vld [vmem:[%s15180_s3 + $0x8d4] sm:$0xf] }
 0x231   :  { %5215 = vmatpush.bf16.msra.mxu1 %v9128_v24  ;;  %v10222_v24 = vld [vmem:[%s15180_s3 + $0x804] sm:$0xf0]  ;;  %v14192_v5 = vadd.f32 %v3429_v32, %v3416_v59  ;;  %v3417_v37 = vpop.f32.mrf.mxu3  ;;  %v8929_v32 = vld [vmem:[%s15180_s3 + $0x7e8] sm:$0xf0]  ;;  %v10233_v29 = vld [vmem:[%s15180_s3 + $0x864] sm:$0xf] }
 0x232   :  { %5192 = vmatpush.bf16.msrb.mxu0 %v8960_v44  ;;  %v8944_v23 = vor.u32 %v10222_v24, %v8943_v43  ;;  %v3418_v4 = vadd.f32 %v3417_v37, %v14090_v22  ;;  %v9040_v44 = vor.u32 %v10246_v56, %v9039_v33  ;;  %v9088_v22 = vor.u32 %v10258_v30, %v9087_v47  ;;  %v8867_v59 = vld [vmem:[#allocation2 + $0x8] sm:$0xf]  ;;  %v10211_v33 = vld [vmem:[%s15180_s3 + $0x7b4] sm:$0xf]  ;;  %v8905_v47 = vld [vmem:[%s15180_s3 + $0x7b8] sm:$0xf0] }
 0x233   :  { %5202 = vmatpush.bf16.msra.mxu3 %v9056_v31  ;;  %5179 = vmatpush.bf16.msrb.mxu2 %v8888_v0  ;;  %v8932_v12 = vor.u32 %v10217_v61, %v8929_v32  ;;  %v10203_v0 = vld [vmem:[#allocation2 + $0x18] sm:$0x70]  ;;  %v8924_v24 = vor.u32 %v10215_v52, %v8921_v54  ;;  %v3939_v55 = vpop.f32.mrf.mxu0  ;;  %v9057_v37 = vld [vmem:[%s15180_s3 + $0x8e8] sm:$0xf0]  ;;  %v10238_v61 = vld [vmem:[%s15180_s3 + $0x884] sm:$0xf0] }
 0x234   :  { %v14305_v41 = vor.u32 %v10203_v0, %v8867_v59  ;;  %v14323_v56 = vadd.f32 %v3939_v55, %v14192_v5  ;;  %v9007_v5 = vld [vmem:[%s15180_s3 + $0x880] sm:$0xf]  ;;  %v10235_v32 = vld [vmem:[%s15180_s3 + $0x874] sm:$0xf]  ;;  %v9049_v52 = vld [vmem:[%s15180_s3 + $0x8d8] sm:$0xf0] }
 0x235   :  { %5216 = vmatpush.bf16.msra.mxu1 %v9120_v19  ;;  %v9192_v19 = vor.u32 %v10284_v3, %v9191_v9  ;;  %v8913_v3 = vld [vmem:[%s15180_s3 + $0x7c8] sm:$0xf0]  ;;  %v9143_v25 = vld [vmem:[%s15180_s3 + $0x990] sm:$0xf]  ;;  %v10272_v8 = vld [vmem:[%s15180_s3 + $0x994] sm:$0xf0] }
 0x236   :  { %5193 = vmatpush.bf16.msrb.mxu0 %v8952_v18  ;;  %v9080_v18 = vor.u32 %v10256_v58, %v9079_v53  ;;  %v8916_v17 = vor.u32 %v10213_v26, %v8913_v3  ;;  %v4750_v38 = vshll.u32 %v14305_v41, 16  ;;  %v10274_v53 = vld [vmem:[%s15180_s3 + $0x9a4] sm:$0xf0]  ;;  %v3925_v59 = vpop.f32.mrf.mxu2  ;;  %v10207_v26 = vld [vmem:[%s15180_s3 + $0x794] sm:$0xf] }
 0x237   :  { %5203 = vmatpush.bf16.msra.mxu3 %v9048_v60  ;;  %5180 = vmatpush.bf16.msrb.mxu2 %v8880_v15  ;;  %v9065_v60 = vld [vmem:[%s15180_s3 + $0x8f8] sm:$0xf0]  ;;  %v10240_v15 = vld [vmem:[%s15180_s3 + $0x894] sm:$0xf0]  ;;  %v10205_v55 = vld [vmem:[%s15180_s3 + $0x784] sm:$0xf] }
 0x238   :  { %v3431_v35 = vpop.f32.mrf.mxu1  ;;  %v9068_v21 = vor.u32 %v10251_v10, %v9065_v60  ;;  %v9016_v30 = vor.u32 %v10240_v15, %v9015_v14  ;;  %v4752_v62 = vrot.slane %v4750_v38, 1  ;;  %v8889_v3 = vld [vmem:[%s15180_s3 + $0x798] sm:$0xf0]  ;;  %v10245_v10 = vld [vmem:[%s15180_s3 + $0x8c4] sm:$0xf] }
 0x239   :  { %5217 = vmatpush.bf16.msra.mxu1 %v9112_v46  ;;  %v10244_v46 = vld [vmem:[%s15180_s3 + $0x8b4] sm:$0xf0]  ;;  %v14253_v48 = vadd.f32 %v3431_v35, %v3418_v4  ;;  %v3897_v43 = vpop.f32.mrf.mxu3  ;;  %v10249_v35 = vld [vmem:[%s15180_s3 + $0x8e4] sm:$0xf]  ;;  %v9041_v60 = vld [vmem:[%s15180_s3 + $0x8c8] sm:$0xf0]  ;;  %v8892_v15 = vor.u32 %v10207_v26, %v8889_v3 }
 0x23a   :  { %5194 = vmatpush.bf16.msrb.mxu0 %v8944_v23  ;;  %5181 = vmatmul.bf16.vlgmr.msrb.gmra.mxu2 %v14232_v45  ;;  %v9032_v31 = vor.u32 %v10244_v46, %v9031_v49  ;;  %v3898_v9 = vadd.f32 %v3897_v43, %v14157_v50  ;;  %v9072_v50 = vor.u32 %v10254_v1, %v9071_v42  ;;  %v4759_v23 = vrot.slane %v4757_v63, 1  ;;  %v9151_v46 = vld [vmem:[%s15180_s3 + $0x9a0] sm:$0xf]  ;;  %v8993_v42 = vld [vmem:[%s15180_s3 + $0x868] sm:$0xf0] }
 0x23b   :  { %5229 = vmatpush.bf16.msra.mxu2 %v9192_v19  ;;  %5204 = vmatpush.bf16.msra.mxu3 %v9040_v44  ;;  %v10276_v19 = vld [vmem:[%s15180_s3 + $0x9b4] sm:$0xf0]  ;;  %v9001_v44 = vld [vmem:[%s15180_s3 + $0x878] sm:$0xf0]  ;;  %v9060_v49 = vor.u32 %v10249_v35, %v9057_v37  ;;  %v9135_v14 = vld [vmem:[%s15180_s3 + $0x980] sm:$0xf] }
 0x23c   :  { %v14347_v40 = vor.u32 %v4759_v23, %v4755_v28  ;;  %v9044_v23 = vor.u32 %v10245_v10, %v9041_v60  ;;  %v10283_v35 = vld [vmem:[%s15180_s3 + $0x9f4] sm:$0xf]  ;;  %v9193_v37 = vld [vmem:[%s15180_s3 + $0x9f8] sm:$0xf0]  ;;  %v9009_v3 = vld [vmem:[%s15180_s3 + $0x888] sm:$0xf0] }
 0x23d   :  { %5218 = vmatpush.bf16.msra.mxu1 %v9104_v2  ;;  %5195 = vmatmul.bf16.vlgmr.msrb.gmra.mxu0 %v14240_v7  ;;  %v10261_v10 = vld [vmem:[%s15180_s3 + $0x944] sm:$0xf] }
 0x23e   :  { %5243 = vmatpush.bf16.msra.mxu0 %v8940_v57  ;;  %v8875_v57 = vld [vmem:[#allocation2 + $0x10] sm:$0xf] }
 0x23f   :  { %5230 = vmatpush.bf16.msra.mxu2 %v9184_v20  ;;  %5205 = vmatpush.bf16.msra.mxu3 %v9032_v31  ;;  %v8908_v20 = vor.u32 %v10211_v33, %v8905_v47  ;;  %v9008_v31 = vor.u32 %v10238_v61, %v9007_v5  ;;  %v14370_v63 = vor.u32 %v10204_v39, %v8875_v57  ;;  %v3927_v33 = vpop.f32.mrf.mxu2  ;;  %v9129_v47 = vld [vmem:[%s15180_s3 + $0x978] sm:$0xf0] }
 0x240   :  { %v3911_v2 = vpop.f32.mrf.mxu1 }
 0x241   :  { %5219 = vmatpush.bf16.msra.mxu1 %v9096_v27  ;;  %v3912_v16 = vadd.f32 %v3911_v2, %v3898_v9  ;;  %v9159_v27 = vld [vmem:[%s15180_s3 + $0x9b0] sm:$0xf]  ;;  %v3941_v2 = vpop.f32.mrf.mxu0 }
 0x242   :  { %5244 = vmatpush.bf16.msra.mxu0 %v8932_v12  ;;  %v9160_v4 = vor.u32 %v10276_v19, %v9159_v27  ;;  %v10209_v12 = vld [vmem:[%s15180_s3 + $0x7a4] sm:$0xf]  ;;  %v14390_v9 = vadd.f32 %v3941_v2, %v14253_v48  ;;  %v8996_v48 = vor.u32 %v10233_v29, %v8993_v42  ;;  %v9033_v27 = vld [vmem:[%s15180_s3 + $0x8b8] sm:$0xf0]  ;;  %v10267_v19 = vld [vmem:[%s15180_s3 + $0x974] sm:$0xf] }
 0x243   :  { %5231 = vmatpush.bf16.msra.mxu2 %v9176_v36  ;;  %5206 = vmatpush.bf16.msra.mxu3 %v9024_v11  ;;  %v14372_v0 = vadd.f32 %v3925_v59, %v3912_v16  ;;  %v9152_v36 = vor.u32 %v10274_v53, %v9151_v46  ;;  %v8900_v43 = vor.u32 %v10209_v12, %v8897_v6  ;;  %v4764_v11 = vshll.u32 %v14370_v63, 16  ;;  %v10270_v16 = vld [vmem:[%s15180_s3 + $0x984] sm:$0xf0]  ;;  %v9025_v46 = vld [vmem:[%s15180_s3 + $0x8a8] sm:$0xf0] }
 0x244   :  { %v9136_v5 = vor.u32 %v10270_v16, %v9135_v14  ;;  %v10265_v53 = vld [vmem:[%s15180_s3 + $0x964] sm:$0xf]  ;;  %v9121_v12 = vld [vmem:[%s15180_s3 + $0x968] sm:$0xf0]  ;;  %v10227_v59 = vld [vmem:[%s15180_s3 + $0x834] sm:$0xf] }
 0x245   :  { %5220 = vmatpush.bf16.msra.mxu1 %v9088_v22  ;;  %v3899_v22 = vpop.f32.mrf.mxu3  ;;  %v4766_v61 = vrot.slane %v4764_v11, 1  ;;  %v9185_v6 = vld [vmem:[%s15180_s3 + $0x9e8] sm:$0xf0]  ;;  %v9113_v29 = vld [vmem:[%s15180_s3 + $0x958] sm:$0xf0] }
 0x246   :  { %5245 = vmatpush.bf16.msra.mxu0 %v8924_v24  ;;  %v3900_v58 = vadd.f32 %v3899_v22, %v14220_v34  ;;  %v4748_v34 = vshrl.u32 %v14305_v41, 16  ;;  %v9052_v24 = vor.u32 %v10247_v51, %v9049_v52  ;;  %v9144_v41 = vor.u32 %v10272_v8, %v9143_v25  ;;  %v10279_v42 = vld [vmem:[%s15180_s3 + $0x9d4] sm:$0xf]  ;;  %v8961_v25 = vld [vmem:[%s15180_s3 + $0x828] sm:$0xf0] }
 0x247   :  { %5232 = vmatpush.bf16.msra.mxu2 %v9168_v13  ;;  %5207 = vmatpush.bf16.msra.mxu3 %v9016_v30  ;;  %v8985_v13 = vld [vmem:[%s15180_s3 + $0x858] sm:$0xf0]  ;;  %v9132_v22 = vor.u32 %v10267_v19, %v9129_v47 }
 0x248   :  { %v3913_v54 = vpop.f32.mrf.mxu1  ;;  %v14402_v28 = vor.u32 %v4752_v62, %v4748_v34  ;;  %v9124_v34 = vor.u32 %v10265_v53, %v9121_v12  ;;  %v9097_v47 = vld [vmem:[%s15180_s3 + $0x938] sm:$0xf0]  ;;  %v9089_v53 = vld [vmem:[%s15180_s3 + $0x928] sm:$0xf0]  ;;  %v10273_v12 = vld [vmem:[%s15180_s3 + $0x9a4] sm:$0xf] }
 0x249   :  { %5221 = vmatpush.bf16.msra.mxu1 %v9080_v18  ;;  %v9004_v18 = vor.u32 %v10235_v32, %v9001_v44  ;;  %v3914_v1 = vadd.f32 %v3913_v54, %v3900_v58  ;;  %v10229_v32 = vld [vmem:[%s15180_s3 + $0x844] sm:$0xf]  ;;  %v8977_v44 = vld [vmem:[%s15180_s3 + $0x848] sm:$0xf0] }
 0x24a   :  { %5246 = vmatpush.bf16.msra.mxu0 %v8916_v17  ;;  %v8881_v17 = vld [vmem:[%s15180_s3 + $0x788] sm:$0xf0]  ;;  %v10281_v58 = vld [vmem:[%s15180_s3 + $0x9e4] sm:$0xf]  ;;  %v8980_v51 = vor.u32 %v10229_v32, %v8977_v44  ;;  %v9355_v44 = vld [vmem:[%s15180_s3 + $0xa70] sm:$0xf] }
 0x24b   :  { %5233 = vmatpush.bf16.msra.mxu2 %v9160_v4  ;;  %5208 = vmatpush.bf16.msra.mxu3 %v9008_v31  ;;  %v14441_v57 = vadd.f32 %v3927_v33, %v3914_v1  ;;  %v8884_v38 = vor.u32 %v10205_v55, %v8881_v17  ;;  %v4762_v4 = vshrl.u32 %v14370_v63, 16  ;;  %v8969_v31 = vld [vmem:[%s15180_s3 + $0x838] sm:$0xf0]  ;;  %v9188_v62 = vor.u32 %v10281_v58, %v9185_v6  ;;  %v10239_v63 = vld [vmem:[%s15180_s3 + $0x894] sm:$0xf] }
 0x24c   :  { %v9177_v1 = vld [vmem:[%s15180_s3 + $0x9d8] sm:$0xf0]  ;;  %v8972_v2 = vor.u32 %v10227_v59, %v8969_v31  ;;  %v10223_v55 = vld [vmem:[%s15180_s3 + $0x814] sm:$0xf]  ;;  %v9153_v58 = vld [vmem:[%s15180_s3 + $0x9a8] sm:$0xf0] }
 0x24d   :  { %5222 = vmatpush.bf16.msra.mxu1 %v9072_v50  ;;  %v10231_v50 = vld [vmem:[%s15180_s3 + $0x854] sm:$0xf]  ;;  %v14468_v52 = vor.u32 %v4766_v61, %v4762_v4  ;;  %v9180_v26 = vor.u32 %v10279_v42, %v9177_v1  ;;  %v8953_v17 = vld [vmem:[%s15180_s3 + $0x818] sm:$0xf0]  ;;  %v8945_v4 = vld [vmem:[%s15180_s3 + $0x808] sm:$0xf0] }
 0x24e   :  { %5247 = vmatpush.bf16.msra.mxu0 %v8908_v20  ;;  %5209 = vmatmul.bf16.vlgmr.msra.gmra.mxu3 %v14402_v28  ;;  %v8988_v30 = vor.u32 %v10231_v50, %v8985_v13  ;;  %v9196_v20 = vor.u32 %v10283_v35, %v9193_v37  ;;  %v9169_v50 = vld [vmem:[%s15180_s3 + $0x9c8] sm:$0xf0]  ;;  %v10275_v35 = vld [vmem:[%s15180_s3 + $0x9b4] sm:$0xf]  ;;  %v9161_v37 = vld [vmem:[%s15180_s3 + $0x9b8] sm:$0xf0] }
 0x24f   :  { %5257 = vmatpush.bf16.msrb.mxu3 %v9004_v18  ;;  %5234 = vmatpush.bf16.msra.mxu2 %v9152_v36  ;;  %v9017_v18 = vld [vmem:[%s15180_s3 + $0x898] sm:$0xf0]  ;;  %v10263_v36 = vld [vmem:[%s15180_s3 + $0x954] sm:$0xf]  ;;  %v9164_v32 = vor.u32 %v10275_v35, %v9161_v37  ;;  %v9403_v31 = vld [vmem:[%s15180_s3 + $0xad0] sm:$0xf] }
 0x250   :  { %5223 = vmatmul.bf16.vlgmr.msra.gmra.mxu1 %v14347_v40  ;;  %v9116_v8 = vor.u32 %v10263_v36, %v9113_v29  ;;  %v3967_v60 = vpop.f32.mrf.mxu1  ;;  %v3953_v11 = vpop.f32.mrf.mxu3  ;;  %v9156_v29 = vor.u32 %v10273_v12, %v9153_v58  ;;  %v10255_v42 = vld [vmem:[%s15180_s3 + $0x914] sm:$0xf]  ;;  %v10285_v37 = vld [vmem:[#allocation2 + $0x2c] sm:$0xf] }
 0x251   :  { %5271 = vmatpush.bf16.msrb.mxu1 %v9068_v21  ;;  %v10243_v21 = vld [vmem:[%s15180_s3 + $0x8b4] sm:$0xf]  ;;  %v3954_v13 = vadd.f32 %v3953_v11, %v14323_v56 }
 0x252   :  { %5248 = vmatpush.bf16.msra.mxu0 %v8900_v43  ;;  %v9036_v39 = vor.u32 %v10243_v21, %v9033_v27  ;;  %v9020_v43 = vor.u32 %v10239_v63, %v9017_v18  ;;  %v10259_v27 = vld [vmem:[%s15180_s3 + $0x934] sm:$0xf] }
 0x253   :  { %5258 = vmatpush.bf16.msrb.mxu3 %v8996_v48  ;;  %5235 = vmatpush.bf16.msra.mxu2 %v9144_v41  ;;  %v9105_v48 = vld [vmem:[%s15180_s3 + $0x948] sm:$0xf0]  ;;  %v10277_v41 = vld [vmem:[%s15180_s3 + $0x9c4] sm:$0xf]  ;;  %v3968_v19 = vadd.f32 %v3967_v60, %v3954_v13  ;;  %v9100_v61 = vor.u32 %v10259_v27, %v9097_v47  ;;  %v3995_v6 = vpop.f32.mrf.mxu0  ;;  %v9547_v27 = vld [vmem:[%s15180_s3 + $0xbf0] sm:$0xf] }
 0x254   :  { %v9108_v56 = vor.u32 %v10261_v10, %v9105_v48  ;;  %v9172_v21 = vor.u32 %v10277_v41, %v9169_v50  ;;  %v9339_v10 = vld [vmem:[%s15180_s3 + $0xa50] sm:$0xf]  ;;  %v10301_v48 = vld [vmem:[%s15180_s3 + $0xa54] sm:$0xf0]  ;;  %v10253_v41 = vld [vmem:[%s15180_s3 + $0x904] sm:$0xf] }
 0x255   :  { %5272 = vmatpush.bf16.msrb.mxu1 %v9060_v49  ;;  %v10241_v49 = vld [vmem:[%s15180_s3 + $0x8a4] sm:$0xf]  ;;  %v9073_v50 = vld [vmem:[%s15180_s3 + $0x908] sm:$0xf0] }
 0x256   :  { %5249 = vmatpush.bf16.msra.mxu0 %v8892_v15  ;;  %v9028_v54 = vor.u32 %v10241_v49, %v9025_v46  ;;  %v9419_v15 = vld [vmem:[%s15180_s3 + $0xaf0] sm:$0xf]  ;;  %v9076_v47 = vor.u32 %v10253_v41, %v9073_v50  ;;  %v10347_v50 = vld [vmem:[%s15180_s3 + $0xbc4] sm:$0xf0] }
 0x257   :  { %5259 = vmatpush.bf16.msrb.mxu3 %v8988_v30  ;;  %5236 = vmatpush.bf16.msra.mxu2 %v9136_v5  ;;  %v8956_v30 = vor.u32 %v10223_v55, %v8953_v17  ;;  %v9411_v5 = vld [vmem:[%s15180_s3 + $0xae0] sm:$0xf]  ;;  %v10313_v55 = vld [vmem:[%s15180_s3 + $0xab4] sm:$0xf0] }
 0x258   :  { %v3955_v49 = vpop.f32.mrf.mxu3  ;;  %v10337_v17 = vld [vmem:[%s15180_s3 + $0xb74] sm:$0xf0] }
 0x259   :  { %5273 = vmatpush.bf16.msrb.mxu1 %v9052_v24  ;;  %v10225_v24 = vld [vmem:[%s15180_s3 + $0x824] sm:$0xf] }
 0x25a   :  { %5250 = vmatpush.bf16.msra.mxu0 %v8884_v38  ;;  %5237 = vmatmul.bf16.vlgmr.msra.gmra.mxu2 %v14468_v52  ;;  %v8964_v14 = vor.u32 %v10225_v24, %v8961_v25  ;;  %v10319_v38 = vld [vmem:[%s15180_s3 + $0xae4] sm:$0xf0]  ;;  %v9081_v24 = vld [vmem:[%s15180_s3 + $0x918] sm:$0xf0]  ;;  %v10271_v25 = vld [vmem:[%s15180_s3 + $0x994] sm:$0xf] }
 0x25b   :  { %5285 = vmatpush.bf16.msrb.mxu2 %v9132_v22  ;;  %5260 = vmatpush.bf16.msrb.mxu3 %v8980_v51  ;;  %v10305_v22 = vld [vmem:[%s15180_s3 + $0xa74] sm:$0xf0]  ;;  %v9412_v46 = vor.u32 %v10319_v38, %v9411_v5  ;;  %v3956_v51 = vadd.f32 %v3955_v49, %v14390_v9  ;;  %v9347_v9 = vld [vmem:[%s15180_s3 + $0xa60] sm:$0xf]  ;;  %v9084_v60 = vor.u32 %v10255_v42, %v9081_v24  ;;  %v10335_v49 = vld [vmem:[%s15180_s3 + $0xb64] sm:$0xf0] }
 0x25c   :  { %v9356_v18 = vor.u32 %v10305_v22, %v9355_v44  ;;  %v10311_v22 = vld [vmem:[%s15180_s3 + $0xaa4] sm:$0xf0] }
 0x25d   :  { %5274 = vmatpush.bf16.msrb.mxu1 %v9044_v23  ;;  %5251 = vmatmul.bf16.vlgmr.msra.gmra.mxu0 %v14232_v45  ;;  %v10237_v45 = vld [vmem:[%s15180_s3 + $0x884] sm:$0xf]  ;;  %v10321_v23 = vld [vmem:[%s15180_s3 + $0xaf4] sm:$0xf0] }
 0x25e   :  { %5299 = vmatpush.bf16.msrb.mxu0 %v9196_v20  ;;  %v9012_v16 = vor.u32 %v10237_v45, %v9009_v3  ;;  %v9420_v33 = vor.u32 %v10321_v23, %v9419_v15  ;;  %v10257_v20 = vld [vmem:[%s15180_s3 + $0x924] sm:$0xf]  ;;  %v10315_v45 = vld [vmem:[%s15180_s3 + $0xac4] sm:$0xf0]  ;;  %v9137_v15 = vld [vmem:[%s15180_s3 + $0x988] sm:$0xf0] }
 0x25f   :  { %5286 = vmatpush.bf16.msrb.mxu2 %v9124_v34  ;;  %5261 = vmatpush.bf16.msrb.mxu3 %v8972_v2  ;;  %v10317_v34 = vld [vmem:[%s15180_s3 + $0xad4] sm:$0xf0]  ;;  %v9092_v36 = vor.u32 %v10257_v20, %v9089_v53  ;;  %v9387_v23 = vld [vmem:[%s15180_s3 + $0xab0] sm:$0xf]  ;;  %v9475_v20 = vld [vmem:[%s15180_s3 + $0xb60] sm:$0xf] }
 0x260   :  { %v9388_v38 = vor.u32 %v10313_v55, %v9387_v23  ;;  %v10351_v53 = vld [vmem:[%s15180_s3 + $0xbe4] sm:$0xf0] }
 0x261   :  { %5275 = vmatpush.bf16.msrb.mxu1 %v9036_v39  ;;  %v10221_v39 = vld [vmem:[%s15180_s3 + $0x804] sm:$0xf] }
 0x262   :  { %5300 = vmatpush.bf16.msrb.mxu0 %v9188_v62  ;;  %v8948_v59 = vor.u32 %v10221_v39, %v8945_v4  ;;  %v3969_v62 = vpop.f32.mrf.mxu1  ;;  %v9331_v4 = vld [vmem:[%s15180_s3 + $0xa40] sm:$0xf] }
 0x263   :  { %5287 = vmatpush.bf16.msrb.mxu2 %v9116_v8  ;;  %5262 = vmatpush.bf16.msrb.mxu3 %v8964_v14  ;;  %v3970_v1 = vadd.f32 %v3969_v62, %v3956_v51  ;;  %v9145_v8 = vld [vmem:[%s15180_s3 + $0x998] sm:$0xf0]  ;;  %v10269_v14 = vld [vmem:[%s15180_s3 + $0x984] sm:$0xf]  ;;  %v9371_v62 = vld [vmem:[%s15180_s3 + $0xa90] sm:$0xf] }
 0x264   :  { %v9148_v11 = vor.u32 %v10271_v25, %v9145_v8  ;;  %v9140_v35 = vor.u32 %v10269_v14, %v9137_v15  ;;  %v10287_v51 = vld [vmem:[#allocation2 + $0x38] sm:$0x70]  ;;  %v10295_v25 = vld [vmem:[%s15180_s3 + $0xa24] sm:$0xf0]  ;;  %v9363_v8 = vld [vmem:[%s15180_s3 + $0xa80] sm:$0xf] }
 0x265   :  { %5276 = vmatpush.bf16.msrb.mxu1 %v9028_v54  ;;  %v3981_v54 = vpop.f32.mrf.mxu2  ;;  %v9357_v14 = vld [vmem:[%s15180_s3 + $0xa78] sm:$0xf0] }
 0x266   :  { %5301 = vmatpush.bf16.msrb.mxu0 %v9180_v26  ;;  %v3982_v63 = vadd.f32 %v3981_v54, %v3968_v19  ;;  %v9395_v26 = vld [vmem:[%s15180_s3 + $0xac0] sm:$0xf]  ;;  %v10353_v19 = vld [vmem:[%s15180_s3 + $0xbf4] sm:$0xf0] }
 0x267   :  { %5288 = vmatpush.bf16.msrb.mxu2 %v9108_v56  ;;  %5263 = vmatpush.bf16.msrb.mxu3 %v8956_v30  ;;  %v9396_v13 = vor.u32 %v10315_v45, %v9395_v26  ;;  %v9281_v30 = vld [vmem:[#allocation2 + $0x3c] sm:$0x70]  ;;  %v9548_v44 = vor.u32 %v10353_v19, %v9547_v27  ;;  %v10307_v26 = vld [vmem:[%s15180_s3 + $0xa84] sm:$0xf0] }
 0x268   :  { %v14592_v2 = vadd.f32 %v3995_v6, %v3982_v63  ;;  %v14672_v58 = vor.u32 %v10285_v37, %v9281_v30  ;;  %v9279_v6 = vld [vmem:[#allocation2 + $0x28] sm:$0xf]  ;;  %v10345_v37 = vld [vmem:[%s15180_s3 + $0xbb4] sm:$0xf0]  ;;  %v10302_v30 = vld [vmem:[%s15180_s3 + $0xa64] sm:$0xf] }
 0x269   :  { %5277 = vmatpush.bf16.msrb.mxu1 %v9020_v43  ;;  %v9404_v43 = vor.u32 %v10317_v34, %v9403_v31  ;;  %v9323_v31 = vld [vmem:[%s15180_s3 + $0xa30] sm:$0xf]  ;;  %v10297_v34 = vld [vmem:[%s15180_s3 + $0xa34] sm:$0xf0]  ;;  %v14713_v45 = vor.u32 %v10287_v51, %v9279_v6 }
 0x26a   :  { %5302 = vmatpush.bf16.msrb.mxu0 %v9172_v21  ;;  %v9340_v21 = vor.u32 %v10301_v48, %v9339_v10  ;;  %v5435_v24 = vshll.u32 %v14672_v58, 16  ;;  %v9523_v48 = vld [vmem:[%s15180_s3 + $0xbc0] sm:$0xf]  ;;  %v5433_v23 = vshrl.u32 %v14672_v58, 16 }
 0x26b   :  { %5289 = vmatpush.bf16.msrb.mxu2 %v9100_v61  ;;  %5264 = vmatpush.bf16.msrb.mxu3 %v8948_v59  ;;  %v10299_v61 = vld [vmem:[%s15180_s3 + $0xa44] sm:$0xf0]  ;;  %v9476_v59 = vor.u32 %v10335_v49, %v9475_v20  ;;  %v9524_v27 = vor.u32 %v10347_v50, %v9523_v48  ;;  %v9611_v20 = vld [vmem:[%s15180_s3 + $0xc70] sm:$0xf]  ;;  %v10369_v49 = vld [vmem:[%s15180_s3 + $0xc74] sm:$0xf0] }
 0x26c   :  { %v9332_v12 = vor.u32 %v10299_v61, %v9331_v4  ;;  %v9299_v4 = vld [vmem:[%s15180_s3 + $0xa00] sm:$0xf]  ;;  %v10288_v61 = vld [vmem:[#allocation2 + $0x40] sm:$0x70]  ;;  %v10341_v48 = vld [vmem:[%s15180_s3 + $0xb94] sm:$0xf0] }
 0x26d   :  { %5278 = vmatpush.bf16.msrb.mxu1 %v9012_v16  ;;  %v3983_v16 = vpop.f32.mrf.mxu2  ;;  %v4504_v42 = vpop.f32.mrf.mxu1  ;;  %v9333_v50 = vld [vmem:[%s15180_s3 + $0xa48] sm:$0xf0] }
 0x26e   :  { %5303 = vmatpush.bf16.msrb.mxu0 %v9164_v32  ;;  %5265 = vmatmul.bf16.vlgmr.msrb.gmra.mxu3 %v14240_v7  ;;  %v9483_v7 = vld [vmem:[%s15180_s3 + $0xb70] sm:$0xf]  ;;  %v3984_v56 = vadd.f32 %v3983_v16, %v3970_v1  ;;  %v9379_v32 = vld [vmem:[%s15180_s3 + $0xaa0] sm:$0xf]  ;;  %v9324_v1 = vor.u32 %v10297_v34, %v9323_v31  ;;  %v9364_v16 = vor.u32 %v10307_v26, %v9363_v8  ;;  %v10327_v31 = vld [vmem:[%s15180_s3 + $0xb24] sm:$0xf0] }
 0x26f   :  { %5865 = vmatpush.bf16.msra.mxu3 %v9356_v18  ;;  %5290 = vmatpush.bf16.msrb.mxu2 %v9092_v36  ;;  %v9484_v39 = vor.u32 %v10337_v17, %v9483_v7  ;;  %v9380_v54 = vor.u32 %v10311_v22, %v9379_v32  ;;  %v10309_v18 = vld [vmem:[%s15180_s3 + $0xa94] sm:$0xf0]  ;;  %v9467_v36 = vld [vmem:[%s15180_s3 + $0xb50] sm:$0xf]  ;;  %v9289_v32 = vld [vmem:[#allocation2 + $0x44] sm:$0x70] }
 0x270   :  { %5279 = vmatmul.bf16.vlgmr.msrb.gmra.mxu1 %v14402_v28  ;;  %v10303_v28 = vld [vmem:[%s15180_s3 + $0xa64] sm:$0xf0]  ;;  %v9307_v7 = vld [vmem:[%s15180_s3 + $0xa10] sm:$0xf]  ;;  %v10293_v17 = vld [vmem:[%s15180_s3 + $0xa14] sm:$0xf0] }
 0x271   :  { %5879 = vmatpush.bf16.msra.mxu1 %v9420_v33  ;;  %v9348_v3 = vor.u32 %v10303_v28, %v9347_v9  ;;  %v3997_v33 = vpop.f32.mrf.mxu0  ;;  %v9531_v9 = vld [vmem:[%s15180_s3 + $0xbd0] sm:$0xf]  ;;  %v10349_v28 = vld [vmem:[%s15180_s3 + $0xbd4] sm:$0xf0]  ;;  %v10291_v22 = vld [vmem:[%s15180_s3 + $0xa04] sm:$0xf0] }
 0x272   :  { %5304 = vmatpush.bf16.msrb.mxu0 %v9156_v29  ;;  %v14646_v5 = vadd.f32 %v3997_v33, %v3984_v56  ;;  %v10333_v29 = vld [vmem:[%s15180_s3 + $0xb54] sm:$0xf0]  ;;  %v9532_v10 = vor.u32 %v10349_v28, %v9531_v9  ;;  %v5437_v56 = vrot.slane %v5435_v24, 1  ;;  %v9451_v33 = vld [vmem:[%s15180_s3 + $0xb30] sm:$0xf]  ;;  %v9300_v28 = vor.u32 %v10291_v22, %v9299_v4 }
 0x273   :  { %5866 = vmatpush.bf16.msra.mxu3 %v9348_v3  ;;  %5291 = vmatpush.bf16.msrb.mxu2 %v9084_v60  ;;  %v4490_v3 = vpop.f32.mrf.mxu3  ;;  %v9459_v60 = vld [vmem:[%s15180_s3 + $0xb40] sm:$0xf]  ;;  %v10367_v26 = vld [vmem:[%s15180_s3 + $0xc64] sm:$0xf0]  ;;  %v10336_v4 = vld [vmem:[%s15180_s3 + $0xb74] sm:$0xf] }
 0x274   :  { %v4505_v41 = vadd.f32 %v4504_v42, %v4490_v3  ;;  %v14771_v58 = vor.u32 %v5437_v56, %v5433_v23  ;;  %v9507_v34 = vld [vmem:[%s15180_s3 + $0xba0] sm:$0xf]  ;;  %v5426_v42 = vshrl.u32 %v14713_v45, 16 }
 0x275   :  { %5880 = vmatpush.bf16.msra.mxu1 %v9412_v46  ;;  %v9539_v46 = vld [vmem:[%s15180_s3 + $0xbe0] sm:$0xf] }
 0x276   :  { %5305 = vmatpush.bf16.msrb.mxu0 %v9148_v11  ;;  %v9540_v63 = vor.u32 %v10351_v53, %v9539_v46  ;;  %v10331_v11 = vld [vmem:[%s15180_s3 + $0xb44] sm:$0xf0]  ;;  %v9287_v46 = vld [vmem:[#allocation2 + $0x30] sm:$0xf]  ;;  %v10286_v53 = vld [vmem:[#allocation2 + $0x34] sm:$0xf] }
 0x277   :  { %5867 = vmatpush.bf16.msra.mxu3 %v9340_v21  ;;  %5292 = vmatpush.bf16.msrb.mxu2 %v9076_v47  ;;  %v9460_v55 = vor.u32 %v10331_v11, %v9459_v60  ;;  %v5428_v21 = vshll.u32 %v14713_v45, 16  ;;  %v10329_v47 = vld [vmem:[%s15180_s3 + $0xb34] sm:$0xf0]  ;;  %v9603_v8 = vld [vmem:[%s15180_s3 + $0xc60] sm:$0xf] }
 0x278   :  { %v10325_v60 = vld [vmem:[%s15180_s3 + $0xb14] sm:$0xf0]  ;;  %v9499_v11 = vld [vmem:[%s15180_s3 + $0xb90] sm:$0xf]  ;;  %v9427_v56 = vld [vmem:[%s15180_s3 + $0xb00] sm:$0xf] }
 0x279   :  { %5881 = vmatpush.bf16.msra.mxu1 %v9404_v43  ;;  %v9315_v43 = vld [vmem:[%s15180_s3 + $0xa20] sm:$0xf] }
 0x27a   :  { %5306 = vmatpush.bf16.msrb.mxu0 %v9140_v35  ;;  %5293 = vmatmul.bf16.vlgmr.msrb.gmra.mxu2 %v14347_v40  ;;  %v9372_v40 = vor.u32 %v10309_v18, %v9371_v62  ;;  %v9316_v15 = vor.u32 %v10295_v25, %v9315_v43  ;;  %v9515_v35 = vld [vmem:[%s15180_s3 + $0xbb0] sm:$0xf]  ;;  %v10300_v18 = vld [vmem:[%s15180_s3 + $0xa54] sm:$0xf]  ;;  %v14795_v43 = vor.u32 %v10286_v53, %v9289_v32  ;;  %v5430_v25 = vrot.slane %v5428_v21, 1 }
 0x27b   :  { %5893 = vmatpush.bf16.msra.mxu2 %v9484_v39  ;;  %5868 = vmatpush.bf16.msra.mxu3 %v9332_v12  ;;  %v9308_v39 = vor.u32 %v10293_v17, %v9307_v7  ;;  %v4506_v12 = vpop.f32.mrf.mxu1  ;;  %v4492_v6 = vpop.f32.mrf.mxu3  ;;  %v9516_v51 = vor.u32 %v10345_v37, %v9515_v35  ;;  %v9595_v7 = vld [vmem:[%s15180_s3 + $0xc50] sm:$0xf]  ;;  %v10365_v17 = vld [vmem:[%s15180_s3 + $0xc54] sm:$0xf0]  ;;  %v9500_v21 = vor.u32 %v10341_v48, %v9499_v11  ;;  %v10296_v35 = vld [vmem:[%s15180_s3 + $0xa34] sm:$0xf] }
 0x27c   :  { %v4507_v62 = vadd.f32 %v4506_v12, %v4492_v6  ;;  %v14825_v23 = vor.u32 %v5430_v25, %v5426_v42  ;;  %v9325_v37 = vld [vmem:[%s15180_s3 + $0xa38] sm:$0xf0] }
 0x27d   :  { %5882 = vmatpush.bf16.msra.mxu1 %v9396_v13  ;;  %5307 = vmatmul.bf16.vlgmr.msrb.gmra.mxu0 %v14468_v52  ;;  %v9468_v52 = vor.u32 %v10333_v29, %v9467_v36  ;;  %v10304_v13 = vld [vmem:[%s15180_s3 + $0xa74] sm:$0xf]  ;;  %v9341_v36 = vld [vmem:[%s15180_s3 + $0xa58] sm:$0xf0]  ;;  %v4532_v29 = vpop.f32.mrf.mxu0  ;;  %v4518_v9 = vpop.f32.mrf.mxu2  ;;  %v9328_v53 = vor.u32 %v10296_v35, %v9325_v37 }
 0x27e   :  { %5907 = vmatpush.bf16.msra.mxu0 %v9548_v44  ;;  %v9360_v19 = vor.u32 %v10304_v13, %v9357_v14  ;;  %v9452_v44 = vor.u32 %v10329_v47, %v9451_v33  ;;  %v4519_v24 = vadd.f32 %v4518_v9, %v4505_v41  ;;  %v9344_v3 = vor.u32 %v10300_v18, %v9341_v36  ;;  %v10298_v41 = vld [vmem:[%s15180_s3 + $0xa44] sm:$0xf]  ;;  %v9491_v33 = vld [vmem:[%s15180_s3 + $0xb80] sm:$0xf]  ;;  %v10339_v47 = vld [vmem:[%s15180_s3 + $0xb84] sm:$0xf0] }
 0x27f   :  { %5894 = vmatpush.bf16.msra.mxu2 %v9476_v59  ;;  %5869 = vmatpush.bf16.msra.mxu3 %v9324_v1  ;;  %v9443_v59 = vld [vmem:[%s15180_s3 + $0xb20] sm:$0xf]  ;;  %v14793_v1 = vor.u32 %v10288_v61, %v9287_v46  ;;  %v9485_v61 = vld [vmem:[%s15180_s3 + $0xb78] sm:$0xf0]  ;;  %v9492_v46 = vor.u32 %v10339_v47, %v9491_v33  ;;  %v9413_v36 = vld [vmem:[%s15180_s3 + $0xae8] sm:$0xf0] }
 0x280   :  { %v14821_v13 = vadd.f32 %v4532_v29, %v4519_v24  ;;  %v10334_v29 = vld [vmem:[%s15180_s3 + $0xb64] sm:$0xf]  ;;  %v9477_v9 = vld [vmem:[%s15180_s3 + $0xb68] sm:$0xf0]  ;;  %v9469_v11 = vld [vmem:[%s15180_s3 + $0xb58] sm:$0xf0] }
 0x281   :  { %5883 = vmatpush.bf16.msra.mxu1 %v9388_v38  ;;  %v9349_v38 = vld [vmem:[%s15180_s3 + $0xa68] sm:$0xf0]  ;;  %v5442_v14 = vshll.u32 %v14793_v1, 16  ;;  %v10368_v37 = vld [vmem:[%s15180_s3 + $0xc74] sm:$0xf] }
 0x282   :  { %5908 = vmatpush.bf16.msra.mxu0 %v9540_v63  ;;  %v10343_v63 = vld [vmem:[%s15180_s3 + $0xba4] sm:$0xf0]  ;;  %v9461_v33 = vld [vmem:[%s15180_s3 + $0xb48] sm:$0xf0] }
 0x283   :  { %5895 = vmatpush.bf16.msra.mxu2 %v9468_v52  ;;  %5870 = vmatpush.bf16.msra.mxu3 %v9316_v15  ;;  %v9444_v52 = vor.u32 %v10327_v31, %v9443_v59  ;;  %v9508_v45 = vor.u32 %v10343_v63, %v9507_v34  ;;  %v5449_v15 = vshll.u32 %v14795_v43, 16  ;;  %v5444_v12 = vrot.slane %v5442_v14, 1  ;;  %v10294_v34 = vld [vmem:[%s15180_s3 + $0xa24] sm:$0xf]  ;;  %v10359_v14 = vld [vmem:[%s15180_s3 + $0xc24] sm:$0xf0] }
 0x284   :  { %v9488_v31 = vor.u32 %v10336_v4, %v9485_v61  ;;  %v10318_v63 = vld [vmem:[%s15180_s3 + $0xae4] sm:$0xf]  ;;  %v9563_v4 = vld [vmem:[%s15180_s3 + $0xc10] sm:$0xf] }
 0x285   :  { %5884 = vmatpush.bf16.msra.mxu1 %v9380_v54  ;;  %v9352_v54 = vor.u32 %v10302_v30, %v9349_v38  ;;  %v10320_v30 = vld [vmem:[%s15180_s3 + $0xaf4] sm:$0xf]  ;;  %v4520_v38 = vpop.f32.mrf.mxu2  ;;  %v5451_v6 = vrot.slane %v5449_v15, 1  ;;  %v10289_v15 = vld [vmem:[#allocation2 + $0x48] sm:$0x70] }
 0x286   :  { %5909 = vmatpush.bf16.msra.mxu0 %v9532_v10  ;;  %v9435_v10 = vld [vmem:[%s15180_s3 + $0xb10] sm:$0xf]  ;;  %v4521_v32 = vadd.f32 %v4520_v38, %v4507_v62  ;;  %v9317_v62 = vld [vmem:[%s15180_s3 + $0xa28] sm:$0xf0]  ;;  %v9295_v38 = vld [vmem:[#allocation2 + $0x38] sm:$0xf] }
 0x287   :  { %5896 = vmatpush.bf16.msra.mxu2 %v9460_v55  ;;  %5871 = vmatpush.bf16.msra.mxu3 %v9308_v39  ;;  %v9436_v55 = vor.u32 %v10325_v60, %v9435_v10  ;;  %v9421_v39 = vld [vmem:[%s15180_s3 + $0xaf8] sm:$0xf0]  ;;  %v9320_v24 = vor.u32 %v10294_v34, %v9317_v62  ;;  %v10332_v60 = vld [vmem:[%s15180_s3 + $0xb54] sm:$0xf]  ;;  %v14959_v61 = vor.u32 %v10289_v15, %v9295_v38  ;;  %v9541_v15 = vld [vmem:[%s15180_s3 + $0xbe8] sm:$0xf0] }
 0x288   :  { %v9424_v59 = vor.u32 %v10320_v30, %v9421_v39  ;;  %v9405_v10 = vld [vmem:[%s15180_s3 + $0xad8] sm:$0xf0]  ;;  %v10306_v38 = vld [vmem:[%s15180_s3 + $0xa84] sm:$0xf] }
 0x289   :  { %5885 = vmatpush.bf16.msra.mxu1 %v9372_v40  ;;  %v9612_v40 = vor.u32 %v10369_v49, %v9611_v20  ;;  %v5440_v20 = vshrl.u32 %v14793_v1, 16  ;;  %v4534_v49 = vpop.f32.mrf.mxu0  ;;  %v9613_v30 = vld [vmem:[%s15180_s3 + $0xc78] sm:$0xf0] }
 0x28a   :  { %5910 = vmatpush.bf16.msra.mxu0 %v9524_v27  ;;  %v9336_v27 = vor.u32 %v10298_v41, %v9333_v50  ;;  %v14880_v18 = vadd.f32 %v4534_v49, %v4521_v32  ;;  %v9571_v50 = vld [vmem:[%s15180_s3 + $0xc20] sm:$0xf]  ;;  %v9616_v49 = vor.u32 %v10368_v37, %v9613_v30  ;;  %v10348_v37 = vld [vmem:[%s15180_s3 + $0xbd4] sm:$0xf]  ;;  %v9533_v30 = vld [vmem:[%s15180_s3 + $0xbd8] sm:$0xf0] }
 0x28b   :  { %5897 = vmatpush.bf16.msra.mxu2 %v9452_v44  ;;  %5872 = vmatpush.bf16.msra.mxu3 %v9300_v28  ;;  %v9596_v44 = vor.u32 %v10365_v17, %v9595_v7  ;;  %v5447_v28 = vshrl.u32 %v14795_v43, 16  ;;  %v14892_v1 = vor.u32 %v5444_v12, %v5440_v20  ;;  %v9480_v43 = vor.u32 %v10334_v29, %v9477_v9  ;;  %v10290_v7 = vld [vmem:[%s15180_s3 + $0xa04] sm:$0xf]  ;;  %v9301_v17 = vld [vmem:[%s15180_s3 + $0xa08] sm:$0xf0] }
 0x28c   :  { %v9572_v35 = vor.u32 %v10359_v14, %v9571_v50  ;;  %v9304_v39 = vor.u32 %v10290_v7, %v9301_v17  ;;  %v10312_v20 = vld [vmem:[%s15180_s3 + $0xab4] sm:$0xf]  ;;  %v9549_v29 = vld [vmem:[%s15180_s3 + $0xbf8] sm:$0xf0]  ;;  %v10310_v9 = vld [vmem:[%s15180_s3 + $0xaa4] sm:$0xf] }
 0x28d   :  { %5886 = vmatpush.bf16.msra.mxu1 %v9364_v16  ;;  %v9604_v16 = vor.u32 %v10367_v26, %v9603_v8  ;;  %v14900_v25 = vor.u32 %v5451_v6, %v5447_v28  ;;  %v9416_v8 = vor.u32 %v10318_v63, %v9413_v36  ;;  %v10292_v26 = vld [vmem:[%s15180_s3 + $0xa14] sm:$0xf]  ;;  %v10366_v6 = vld [vmem:[%s15180_s3 + $0xc64] sm:$0xf]  ;;  %v4560_v34 = vpop.f32.mrf.mxu1  ;;  %v9437_v17 = vld [vmem:[%s15180_s3 + $0xb18] sm:$0xf0] }
 0x28e   :  { %5911 = vmatpush.bf16.msra.mxu0 %v9516_v51  ;;  %5873 = vmatmul.bf16.vlgmr.msra.gmra.mxu3 %v14825_v23  ;;  %v9587_v51 = vld [vmem:[%s15180_s3 + $0xc40] sm:$0xf]  ;;  %v10352_v36 = vld [vmem:[%s15180_s3 + $0xbf4] sm:$0xf]  ;;  %v10350_v14 = vld [vmem:[%s15180_s3 + $0xbe4] sm:$0xf] }
 0x28f   :  { %5921 = vmatpush.bf16.msrb.mxu3 %v9612_v40  ;;  %5898 = vmatpush.bf16.msra.mxu2 %v9444_v52  ;;  %v9579_v40 = vld [vmem:[%s15180_s3 + $0xc30] sm:$0xf]  ;;  %v10361_v52 = vld [vmem:[%s15180_s3 + $0xc34] sm:$0xf0]  ;;  %v10324_v7 = vld [vmem:[%s15180_s3 + $0xb14] sm:$0xf] }
 0x290   :  { %5887 = vmatmul.bf16.vlgmr.msra.gmra.mxu1 %v14771_v58  ;;  %v9580_v48 = vor.u32 %v10361_v52, %v9579_v40  ;;  %v10326_v40 = vld [vmem:[%s15180_s3 + $0xb24] sm:$0xf]  ;;  %v9445_v52 = vld [vmem:[%s15180_s3 + $0xb28] sm:$0xf0] }
 0x291   :  { %5935 = vmatpush.bf16.msrb.mxu1 %v9360_v19  ;;  %v10323_v19 = vld [vmem:[%s15180_s3 + $0xb04] sm:$0xf0] }
 0x292   :  { %5912 = vmatpush.bf16.msra.mxu0 %v9508_v45  ;;  %v9428_v22 = vor.u32 %v10323_v19, %v9427_v56  ;;  %v9309_v45 = vld [vmem:[%s15180_s3 + $0xa18] sm:$0xf0]  ;;  %v10314_v56 = vld [vmem:[%s15180_s3 + $0xac4] sm:$0xf] }
 0x293   :  { %5922 = vmatpush.bf16.msrb.mxu3 %v9604_v16  ;;  %5899 = vmatpush.bf16.msra.mxu2 %v9436_v55  ;;  %v9312_v41 = vor.u32 %v10292_v26, %v9309_v45  ;;  %v9472_v55 = vor.u32 %v10332_v60, %v9469_v11  ;;  %v10330_v19 = vld [vmem:[%s15180_s3 + $0xb44] sm:$0xf]  ;;  %v9552_v11 = vor.u32 %v10352_v36, %v9549_v29  ;;  %v10344_v29 = vld [vmem:[%s15180_s3 + $0xbb4] sm:$0xf] }
 0x295   :  { %5936 = vmatpush.bf16.msrb.mxu1 %v9352_v54  ;;  %v10363_v54 = vld [vmem:[%s15180_s3 + $0xc44] sm:$0xf0] }
 0x296   :  { %5913 = vmatpush.bf16.msra.mxu0 %v9500_v21  ;;  %v9588_v42 = vor.u32 %v10363_v54, %v9587_v51  ;;  %v4546_v21 = vpop.f32.mrf.mxu3  ;;  %v9605_v51 = vld [vmem:[%s15180_s3 + $0xc68] sm:$0xf0]  ;;  %v9555_v54 = vld [vmem:[%s15180_s3 + $0xc00] sm:$0xf] }
 0x297   :  { %5923 = vmatpush.bf16.msrb.mxu3 %v9596_v44  ;;  %5900 = vmatpush.bf16.msra.mxu2 %v9428_v22  ;;  %v4547_v47 = vadd.f32 %v4546_v21, %v14821_v13  ;;  %v10357_v13 = vld [vmem:[%s15180_s3 + $0xc14] sm:$0xf0]  ;;  %v9464_v22 = vor.u32 %v10330_v19, %v9461_v33  ;;  %v10362_v21 = vld [vmem:[%s15180_s3 + $0xc44] sm:$0xf]  ;;  %v9544_v33 = vor.u32 %v10350_v14, %v9541_v15  ;;  %v9493_v14 = vld [vmem:[%s15180_s3 + $0xb88] sm:$0xf0] }
 0x298   :  { %v9564_v12 = vor.u32 %v10357_v13, %v9563_v4  ;;  %v9365_v4 = vld [vmem:[%s15180_s3 + $0xa88] sm:$0xf0]  ;;  %v10322_v13 = vld [vmem:[%s15180_s3 + $0xb04] sm:$0xf] }
 0x299   :  { %5937 = vmatpush.bf16.msrb.mxu1 %v9344_v3  ;;  %v10316_v3 = vld [vmem:[%s15180_s3 + $0xad4] sm:$0xf]  ;;  %v14962_v32 = vadd.f32 %v4547_v47, %v14372_v0  ;;  %v9453_v0 = vld [vmem:[%s15180_s3 + $0xb38] sm:$0xf0] }
 0x29a   :  { %5914 = vmatpush.bf16.msra.mxu0 %v9492_v46  ;;  %5901 = vmatmul.bf16.vlgmr.msra.gmra.mxu2 %v14892_v1  ;;  %v9408_v16 = vor.u32 %v10316_v3, %v9405_v10  ;;  %v9389_v46 = vld [vmem:[%s15180_s3 + $0xab8] sm:$0xf0]  ;;  %v10364_v3 = vld [vmem:[%s15180_s3 + $0xc54] sm:$0xf] }
 0x29b   :  { %5949 = vmatpush.bf16.msrb.mxu2 %v9424_v59  ;;  %5924 = vmatpush.bf16.msrb.mxu3 %v9588_v42  ;;  %v10355_v59 = vld [vmem:[%s15180_s3 + $0xc04] sm:$0xf0]  ;;  %v9392_v62 = vor.u32 %v10312_v20, %v9389_v46  ;;  %v9608_v42 = vor.u32 %v10366_v6, %v9605_v51  ;;  %v9597_v10 = vld [vmem:[%s15180_s3 + $0xc58] sm:$0xf0]  ;;  %v10360_v20 = vld [vmem:[%s15180_s3 + $0xc34] sm:$0xf] }
 0x29c   :  { %v9556_v45 = vor.u32 %v10355_v59, %v9555_v54  ;;  %v10346_v54 = vld [vmem:[%s15180_s3 + $0xbc4] sm:$0xf]  ;;  %v9525_v59 = vld [vmem:[%s15180_s3 + $0xbc8] sm:$0xf0] }
 0x29d   :  { %5938 = vmatpush.bf16.msrb.mxu1 %v9336_v27  ;;  %5915 = vmatmul.bf16.vlgmr.msra.gmra.mxu0 %v14900_v25  ;;  %v9397_v27 = vld [vmem:[%s15180_s3 + $0xac8] sm:$0xf0]  ;;  %v4574_v26 = vpop.f32.mrf.mxu2 }
 0x29e   :  { %5963 = vmatpush.bf16.msrb.mxu0 %v9488_v31  ;;  %v9400_v44 = vor.u32 %v10314_v56, %v9397_v27  ;;  %v5456_v31 = vshll.u32 %v14959_v61, 16  ;;  %v4548_v28 = vpop.f32.mrf.mxu3  ;;  %v4575_v60 = vadd.f32 %v4574_v26, %v4560_v34  ;;  %v9589_v27 = vld [vmem:[%s15180_s3 + $0xc48] sm:$0xf0]  ;;  %v10358_v34 = vld [vmem:[%s15180_s3 + $0xc24] sm:$0xf] }
 0x29f   :  { %5950 = vmatpush.bf16.msrb.mxu2 %v9416_v8  ;;  %5925 = vmatpush.bf16.msrb.mxu3 %v9580_v48  ;;  %v4588_v8 = vpop.f32.mrf.mxu0  ;;  %v5454_v48 = vshrl.u32 %v14959_v61, 16  ;;  %v9429_v61 = vld [vmem:[%s15180_s3 + $0xb08] sm:$0xf0] }
 0x2a0   :  { %v4589_v56 = vadd.f32 %v4588_v8, %v4575_v60  ;;  %v9432_v6 = vor.u32 %v10322_v13, %v9429_v61  ;;  %v9509_v8 = vld [vmem:[%s15180_s3 + $0xba8] sm:$0xf0] }
 0x2a1   :  { %5939 = vmatpush.bf16.msrb.mxu1 %v9328_v53  ;;  %v10328_v53 = vld [vmem:[%s15180_s3 + $0xb34] sm:$0xf] }
 0x2a2   :  { %5964 = vmatpush.bf16.msrb.mxu0 %v9480_v43  ;;  %v9456_v63 = vor.u32 %v10328_v53, %v9453_v0  ;;  %v4549_v43 = vadd.f32 %v4548_v28, %v14880_v18  ;;  %v9448_v18 = vor.u32 %v10326_v40, %v9445_v52  ;;  %v9536_v53 = vor.u32 %v10348_v37, %v9533_v30  ;;  %v10356_v28 = vld [vmem:[%s15180_s3 + $0xc14] sm:$0xf]  ;;  %v10342_v52 = vld [vmem:[%s15180_s3 + $0xba4] sm:$0xf] }
 0x2a3   :  { %5951 = vmatpush.bf16.msrb.mxu2 %v9408_v16  ;;  %5926 = vmatpush.bf16.msrb.mxu3 %v9572_v35  ;;  %v10308_v16 = vld [vmem:[%s15180_s3 + $0xa94] sm:$0xf]  ;;  %v9440_v35 = vor.u32 %v10324_v7, %v9437_v17 }
 0x2a4   :  { %v15017_v50 = vadd.f32 %v4549_v43, %v14441_v57  ;;  %v9373_v57 = vld [vmem:[%s15180_s3 + $0xa98] sm:$0xf0] }
 0x2a5   :  { %5940 = vmatpush.bf16.msrb.mxu1 %v9320_v24  ;;  %v9381_v24 = vld [vmem:[%s15180_s3 + $0xaa8] sm:$0xf0]  ;;  %v9376_v47 = vor.u32 %v10308_v16, %v9373_v57 }
 0x2a6   :  { %5965 = vmatpush.bf16.msrb.mxu0 %v9472_v55  ;;  %v9600_v55 = vor.u32 %v10364_v3, %v9597_v10  ;;  %v9512_v3 = vor.u32 %v10342_v52, %v9509_v8 }
 0x2a7   :  { %5952 = vmatpush.bf16.msrb.mxu2 %v9400_v44  ;;  %5927 = vmatpush.bf16.msrb.mxu3 %v9564_v12  ;;  %v4562_v44 = vpop.f32.mrf.mxu1  ;;  %v4590_v0 = vpop.f32.mrf.mxu0  ;;  %v9368_v12 = vor.u32 %v10306_v38, %v9365_v4 }
 0x2a9   :  { %5941 = vmatpush.bf16.msrb.mxu1 %v9312_v41  ;;  %v5458_v41 = vrot.slane %v5456_v31, 1 }
 0x2aa   :  { %5966 = vmatpush.bf16.msrb.mxu0 %v9464_v22  ;;  %v4576_v22 = vpop.f32.mrf.mxu2 }
 0x2ab   :  { %5953 = vmatpush.bf16.msrb.mxu2 %v9392_v62  ;;  %5928 = vmatpush.bf16.msrb.mxu3 %v9556_v45  ;;  %v15043_v19 = vor.u32 %v5458_v41, %v5454_v48  ;;  %v4577_v46 = vadd.f32 %v4576_v22, %v4562_v44  ;;  %v9573_v62 = vld [vmem:[%s15180_s3 + $0xc28] sm:$0xf0]  ;;  %v9501_v48 = vld [vmem:[%s15180_s3 + $0xb98] sm:$0xf0] }
 0x2ac   :  { %v9576_v36 = vor.u32 %v10358_v34, %v9573_v62  ;;  %v10371_v62 = vld [vmem:[%s15182_s5 + $0x8] sm:$0xff] }
 0x2ad   :  { %5942 = vmatpush.bf16.msrb.mxu1 %v9304_v39  ;;  %v9592_v39 = vor.u32 %v10362_v21, %v9589_v27  ;;  %v4591_v31 = vadd.f32 %v4590_v0, %v4577_v46  ;;  %v10375_v0 = vld [vmem:[%s15182_s5 + $0x28] sm:$0xff] }
 0x2ae   :  { %5967 = vmatpush.bf16.msrb.mxu0 %v9456_v63  ;;  %5929 = vmatmul.bf16.vlgmr.msrb.gmra.mxu3 %v15043_v19  ;;  %v9528_v63 = vor.u32 %v10346_v54, %v9525_v59  ;;  %v10372_v54 = vld [vmem:[%s15182_s5 + $0x10] sm:$0xff] }
 0x2af   :  { %5977 = vmatpush.bf16.msra.mxu3 %v9552_v11  ;;  %v4616_v43 = vpop.f32.mrf.mxu1  ;;  %v10340_v11 = vld [vmem:[%s15180_s3 + $0xb94] sm:$0xf] }
 0x2b0   :  { %5943 = vmatmul.bf16.vlgmr.msrb.gmra.mxu1 %v14825_v23  ;;  %v9384_v23 = vor.u32 %v10310_v9, %v9381_v24  ;;  %v9517_v9 = vld [vmem:[%s15180_s3 + $0xbb8] sm:$0xf0] }
 0x2b1   :  { %5991 = vmatpush.bf16.msra.mxu1 %v9616_v49  ;;  %v9581_v49 = vld [vmem:[%s15180_s3 + $0xc38] sm:$0xf0]  ;;  %v9520_v24 = vor.u32 %v10344_v29, %v9517_v9  ;;  %v4602_v26 = vpop.f32.mrf.mxu3 }
 0x2b2   :  { %5954 = vmatpush.bf16.msrb.mxu2 %v9384_v23  ;;  %5968 = vmatpush.bf16.msrb.mxu0 %v9448_v18  ;;  %v9584_v51 = vor.u32 %v10360_v20, %v9581_v49  ;;  %v4603_v45 = vadd.f32 %v4602_v26, %v4589_v56  ;;  %v9504_v23 = vor.u32 %v10340_v11, %v9501_v48  ;;  %v10338_v18 = vld [vmem:[%s15180_s3 + $0xb84] sm:$0xf]  ;;  %v10377_v49 = vld [vmem:[%s15182_s5 + $0x38] sm:$0xff] }
 0x2b3   :  { %5978 = vmatpush.bf16.msra.mxu3 %v9544_v33  ;;  %v9496_v57 = vor.u32 %v10338_v18, %v9493_v14  ;;  %v6009_v18 = vld [vmem:[%s15181_s4] sm:$0x3] }
 0x2b4   :  { %v4617_v10 = vadd.f32 %v4616_v43, %v4603_v45 }
 0x2b5   :  { %5992 = vmatpush.bf16.msra.mxu1 %v9608_v42  ;;  %v9565_v42 = vld [vmem:[%s15180_s3 + $0xc18] sm:$0xf0] }
 0x2b6   :  { %5955 = vmatpush.bf16.msrb.mxu2 %v9376_v47  ;;  %5969 = vmatpush.bf16.msrb.mxu0 %v9440_v35  ;;  %v9568_v40 = vor.u32 %v10356_v28, %v9565_v42  ;;  %v4622_v41 = vadd.f32 %v4617_v10, %v14592_v2 }
 0x2b7   :  { %5979 = vmatpush.bf16.msra.mxu3 %v9536_v53  ;;  %v10376_v53 = vld [vmem:[%s15182_s5 + $0x30] sm:$0xff] }
 0x2b9   :  { %5993 = vmatpush.bf16.msra.mxu1 %v9600_v55  ;;  %v4604_v15 = vpop.f32.mrf.mxu3  ;;  %v4618_v55 = vpop.f32.mrf.mxu1 }
 0x2ba   :  { %5956 = vmatpush.bf16.msrb.mxu2 %v9368_v12  ;;  %5970 = vmatpush.bf16.msrb.mxu0 %v9432_v6  ;;  %v4605_v16 = vadd.f32 %v4604_v15, %v4591_v31  ;;  %v5196_v56 = vpop.f32.mrf.mxu0  ;;  %v10374_v12 = vld [vmem:[%s15182_s5 + $0x20] sm:$0xff] }
 0x2bb   :  { %5980 = vmatpush.bf16.msra.mxu3 %v9528_v63  ;;  %v10370_v63 = vld [vmem:[%s15182_s5] sm:$0xff] }
 0x2bc   :  { %v4619_v7 = vadd.f32 %v4618_v55, %v4605_v16 }
 0x2bd   :  { %5994 = vmatpush.bf16.msra.mxu1 %v9592_v39  ;;  %5957 = vmatmul.bf16.vlgmr.msrb.gmra.mxu2 %v14771_v58  ;;  %v10354_v58 = vld [vmem:[%s15180_s3 + $0xc04] sm:$0xf]  ;;  %v5182_v17 = vpop.f32.mrf.mxu2 }
 0x2be   :  { %5971 = vmatmul.bf16.vlgmr.msrb.gmra.mxu0 %v14892_v1  ;;  %v9557_v1 = vld [vmem:[%s15180_s3 + $0xc08] sm:$0xf0]  ;;  %v15123_v2 = vadd.f32 %v4619_v7, %v14646_v5  ;;  %6111 = vmatpush.bf16.msra.mxu2 %v10377_v49  ;;  %v5197_v42 = vadd.f32 %v5196_v56, %v5182_v17 }
 0x2bf   :  { %5981 = vmatpush.bf16.msra.mxu3 %v9520_v24  ;;  %v9560_v60 = vor.u32 %v10354_v58, %v9557_v1  ;;  %v10379_v17 = vld [vmem:[%s15182_s5 + $0x48] sm:$0xff] }
 0x2c0   :  { %6131 = vmatpush.bf16.msra.mxu0 %v10379_v17 }
 0x2c1   :  { %5995 = vmatpush.bf16.msra.mxu1 %v9584_v51  ;;  %v10373_v51 = vld [vmem:[%s15182_s5 + $0x18] sm:$0xff] }
 0x2c2   :  { %v5198_v33 = vpop.f32.mrf.mxu0  ;;  %6112 = vmatpush.bf16.msra.mxu2 %v10376_v53 }
 0x2c3   :  { %5982 = vmatpush.bf16.msra.mxu3 %v9512_v3 }
 0x2c5   :  { %5996 = vmatpush.bf16.msra.mxu1 %v9576_v36  ;;  %v5184_v27 = vpop.f32.mrf.mxu2 }
 0x2c6   :  { %6113 = vmatpush.bf16.msra.mxu2 %v10375_v0  ;;  %v5199_v8 = vadd.f32 %v5198_v33, %v5184_v27 }
 0x2c7   :  { %5983 = vmatpush.bf16.msra.mxu3 %v9504_v23 }
 0x2c9   :  { %5997 = vmatpush.bf16.msra.mxu1 %v9568_v40 }
 0x2ca   :  { %6114 = vmatpush.bf16.msra.mxu2 %v10374_v12 }
 0x2cb   :  { %5984 = vmatpush.bf16.msra.mxu3 %v9496_v57  ;;  %v6011_v57 = vperm.slane %v6009_v18, 0 }
 0x2cd   :  { %5998 = vmatpush.bf16.msra.mxu1 %v9560_v60  ;;  %v5224_v47 = vpop.f32.mrf.mxu1 }
 0x2ce   :  { %5985 = vmatmul.bf16.vlgmr.msra.gmra.mxu3 %v14900_v25  ;;  %6115 = vmatpush.bf16.msra.mxu2 %v10373_v51 }
 0x2d0   :  { %5999 = vmatmul.bf16.vlgmr.msra.gmra.mxu1 %v15043_v19 }
 0x2d1   :  { %v5210_v21 = vpop.f32.mrf.mxu3 }
 0x2d2   :  { %6116 = vmatpush.bf16.msra.mxu2 %v10372_v54  ;;  %v5211_v24 = vadd.f32 %v5210_v21, %v5197_v42 }
 0x2d4   :  { %v5225_v58 = vadd.f32 %v5224_v47, %v5211_v24 }
 0x2d5   :  { %v5226_v38 = vpop.f32.mrf.mxu1 }
 0x2d6   :  { %6117 = vmatpush.bf16.msra.mxu2 %v10371_v62 }
 0x2d9   :  { %v5212_v35 = vpop.f32.mrf.mxu3 }
 0x2da   :  { %v5252_v30 = vpop.f32.mrf.mxu0  ;;  %6118 = vmatpush.bf16.msra.mxu2 %v10370_v63  ;;  %v5213_v26 = vadd.f32 %v5212_v35, %v5199_v8 }
 0x2dc   :  { %v5227_v48 = vadd.f32 %v5226_v38, %v5213_v26 }
 0x2dd   :  { %v5238_v37 = vpop.f32.mrf.mxu2 }
 0x2de   :  { %v5239_v10 = vadd.f32 %v5238_v37, %v5225_v58 }
 0x2e0   :  { %v5313_v14 = vadd.f32 %v5239_v10, %v14962_v32 }
 0x2e2   :  { %v15126_v13 = vpop.f32.mrf.mxu0 }
 0x2e5   :  { %v5240_v4 = vpop.f32.mrf.mxu2 }
 0x2e6   :  { %v5241_v15 = vadd.f32 %v5240_v4, %v5227_v48 }
 0x2e8   :  { %v5315_v21 = vadd.f32 %v5241_v15, %v15017_v50 }
 0x2ed   :  { %v5280_v5 = vpop.f32.mrf.mxu1 }
 0x2f1   :  { %v5266_v39 = vpop.f32.mrf.mxu3 }
 0x2f2   :  { %v5267_v19 = vadd.f32 %v5266_v39, %v5252_v30  ;;  %v10378_v39 = vld [vmem:[%s15182_s5 + $0x40] sm:$0xff] }
 0x2f3   :  { %6132 = vmatpush.bf16.msra.mxu0 %v10378_v39 }
 0x2f4   :  { %v5281_v61 = vadd.f32 %v5280_v5, %v5267_v19 }
 0x2f5   :  { %v5282_v59 = vpop.f32.mrf.mxu1 }
 0x2f9   :  { %v5268_v6 = vpop.f32.mrf.mxu3 }
 0x2fa   :  { %v5308_v25 = vpop.f32.mrf.mxu0  ;;  %v5269_v50 = vadd.f32 %v5268_v6, %v15126_v13 }
 0x2fc   :  { %v5283_v49 = vadd.f32 %v5282_v59, %v5269_v50 }
 0x2fd   :  { %v5294_v44 = vpop.f32.mrf.mxu2 }
 0x2fe   :  { %v5295_v22 = vadd.f32 %v5294_v44, %v5281_v61 }
 0x300   :  { %v5309_v20 = vadd.f32 %v5308_v25, %v5295_v22 }
 0x302   :  { %v15131_v46 = vadd.f32 %v5309_v20, %v4622_v41  ;;  %v5310_v36 = vpop.f32.mrf.mxu0 }
 0x305   :  { %v5296_v31 = vpop.f32.mrf.mxu2 }
 0x306   :  { %v5297_v0 = vadd.f32 %v5296_v31, %v5283_v49 }
 0x30d   :  { %v5888_v29 = vpop.f32.mrf.mxu1 }
 0x311   :  { %v5874_v34 = vpop.f32.mrf.mxu3 }
 0x312   :  { %v5889_v40 = vadd.f32 %v5888_v29, %v5874_v34  ;;  %v5311_v34 = vadd.f32 %v5310_v36, %v5297_v0  ;;  %v6045_v36 = vld [vmem:[%s15183_s6] sm:$0xff] }
 0x314   :  { %v5316_v13 = vadd.f32 %v5311_v34, %v15123_v2  ;;  %v6046_v2 = vld [vmem:[%s15183_s6 + $0x8] sm:$0xf] }
 0x315   :  { %v5890_v1 = vpop.f32.mrf.mxu1 }
 0x319   :  { %v5876_v28 = vpop.f32.mrf.mxu3 }
 0x31a   :  { %v5916_v52 = vpop.f32.mrf.mxu0  ;;  %v5891_v60 = vadd.f32 %v5890_v1, %v5876_v28 }
 0x31d   :  { %v5902_v9 = vpop.f32.mrf.mxu2 }
 0x31e   :  { %v5903_v43 = vadd.f32 %v5902_v9, %v5889_v40  ;;  %v6012_v9 = vperm.slane %v6009_v18, 1 }
 0x320   :  { %v5917_v11 = vadd.f32 %v5916_v52, %v5903_v43 }
 0x322   :  { %v5918_v16 = vpop.f32.mrf.mxu0 }
 0x325   :  { %v5904_v45 = vpop.f32.mrf.mxu2 }
 0x326   :  { %v5905_v41 = vadd.f32 %v5904_v45, %v5891_v60 }
 0x328   :  { %v5919_v7 = vadd.f32 %v5918_v16, %v5905_v41 }
 0x32d   :  { %v5944_v33 = vpop.f32.mrf.mxu1 }
 0x331   :  { %v5930_v3 = vpop.f32.mrf.mxu3 }
 0x332   :  { %v5931_v23 = vadd.f32 %v5930_v3, %v5917_v11 }
 0x334   :  { %v6005_v55 = vadd.f32 %v5931_v23, %v5313_v14 }
 0x335   :  { %v5946_v4 = vpop.f32.mrf.mxu1 }
 0x336   :  { %v6015_v47 = vadd.f32 %v6011_v57, %v6005_v55 }
 0x338   :  { %v6019_v30 = vmax.f32 %v6015_v47, 0.0 }
 0x339   :  { %v5932_v56 = vpop.f32.mrf.mxu3 }
 0x33a   :  { %v5933_v27 = vadd.f32 %v5932_v56, %v5919_v7 }
 0x33b   :  { %v5972_v61 = vpop.f32.mrf.mxu0 }
 0x33c   :  { %v6007_v35 = vadd.f32 %v5933_v27, %v5315_v21 }
 0x33e   :  { %v6017_v37 = vadd.f32 %v6011_v57, %v6007_v35 }
 0x340   :  { %v6021_v32 = vmax.f32 %v6017_v37, 0.0  ;;  %v5958_v19 = vpop.f32.mrf.mxu2 }
 0x341   :  { %v5959_v5 = vadd.f32 %v5958_v19, %v5944_v33 }
 0x342   :  { %v6023_v38 = vpack.c.bf16 %v6021_v32, %v6019_v30 }
 0x343   :  { %v5973_v22 = vadd.f32 %v5972_v61, %v5959_v5  ;;  %v5974_v54 = vpop.f32.mrf.mxu0 }
 0x344   :  { %6119 = vmatmul.bf16.vlgmr.msra.gmra.mxu2 %v6023_v38 }
 0x348   :  { %v5960_v25 = vpop.f32.mrf.mxu2 }
 0x349   :  { %v5961_v12 = vadd.f32 %v5960_v25, %v5946_v4 }
 0x34b   :  { %v5975_v62 = vadd.f32 %v5974_v54, %v5961_v12 }
 0x34d   :  { %v6000_v44 = vpop.f32.mrf.mxu1 }
 0x351   :  { %v5986_v20 = vpop.f32.mrf.mxu3 }
 0x352   :  { %v5987_v53 = vadd.f32 %v5986_v20, %v5973_v22 }
 0x354   :  { %v6001_v51 = vadd.f32 %v6000_v44, %v5987_v53 }
 0x355   :  { %v6002_v42 = vpop.f32.mrf.mxu1 }
 0x356   :  { %v6006_v29 = vadd.f32 %v6001_v51, %v15131_v46 }
 0x358   :  { %v6016_v24 = vadd.f32 %v6012_v9, %v6006_v29 }
 0x359   :  { %v5988_v63 = vpop.f32.mrf.mxu3 }
 0x35a   :  { %v5989_v28 = vadd.f32 %v5988_v63, %v5975_v62  ;;  %v6020_v59 = vmax.f32 %v6016_v24, 0.0 }
 0x35c   :  { %v6003_v6 = vadd.f32 %v6002_v42, %v5989_v28 }
 0x35e   :  { %v6008_v40 = vadd.f32 %v6003_v6, %v5316_v13 }
 0x360   :  { %v6018_v52 = vadd.f32 %v6012_v9, %v6008_v40 }
 0x362   :  { %v6022_v8 = vmax.f32 %v6018_v52, 0.0 }
 0x364   :  { %v6024_v31 = vpack.c.bf16 %v6022_v8, %v6020_v59 }
 0x366   :  { %9657 = vmatmul.msk.bf16.vlgmr.msra.gmra.mxu0 %vm6107_vm9, %v6024_v31 }
 0x3c7   :  { %v6120_v43 = vpop.f32.mrf.mxu2 }
 0x3c8   :  { %v6121_v46 = vadd.f32 %v6120_v43, %v6045_v36 }
 0x3cf   :  { %v6122_v1 = vpop.f32.mrf.mxu2 }
 0x3d0   :  { %v6123_v45 = vadd.f32 %v6122_v1, %v6046_v2 }
 0x3e3   :  { %v6134_v26 = vpop.f32.mrf.mxu0 }
 0x3e4   :  { %v6135_v58 = vadd.f32 %v6134_v26, %v6121_v46 }
 0x3e6   :  { %6139 = vst [vmem:[#allocation3] sm:$0xff] %v6135_v58 }
 0x3eb   :  { %v6136_v3 = vpop.f32.mrf.mxu0 }
 0x3ec   :  { %v6137_v10 = vadd.f32 %v6136_v3, %v6123_v45 }
 0x3ee   :  { %6140 = vst [vmem:[#allocation3 + $0x8] sm:$0xf] %v6137_v10 }
 0x3ef   :  { %6153 = dma.vmem_to_hbm [thread:$0]  %s6146_s22, 256, %s6148_s24, [#allocation4], %s10410_s25, %s10410_s25, %s10411_s26  }
 0x3f0   :  { %10407 = dma.done.wait [#allocation4], 256  }
 0x3f1   :  { %10408 = vsyncadd [#allocation4], 4294967040 }
 0x3f2   :  { %6158 = vsyncpa [#allocation4], 1 }

</bundles_post_ra>
